<compile_context>
chip_gen: v5e
topology: v5e:2x2
jax: 0.10.0
libtpu: 0.0.40
codegen_flags: <defaults>
</compile_context>

<pallas_src>
import functools

import jax
import jax.numpy as jnp
from jax import lax
from jax.experimental import pallas as pl
from jax.experimental.pallas import tpu as pltpu


def _round_up(a, b):
    return (a + b - 1) // b * b


# ---------------------------------------------------------------------------
# Kernel: one (batch, output-row-tile) grid step.
# ---------------------------------------------------------------------------
def _conv_kernel(x_ref, w_ref, b_ref, o_ref, *, k, stride, th, wo, rows_slab,
                 precision):
    """Fused conv for one output row tile.

    x_ref: (1, stride*rows_slab, Wo, k*C_in)  halo row slab, kw pre-folded
    w_ref: (k, k*C_in, C_out_pad)             packed weights (grid invariant)
    b_ref: (1, C_out_pad)                     f32 bias (grid invariant)
    o_ref: (1, th, Wo, C_out_pad)             NHWC output tile (lane dense)
    """
    kc = x_ref.shape[-1]
    c_out_pad = o_ref.shape[-1]

    acc = jnp.zeros((th * wo, c_out_pad), jnp.float32)
    for kh in range(k):
        # Rows for tap kh live in phase (kh % stride) at within-phase offset
        # (kh // stride), so the slice is contiguous (unit stride) regardless
        # of the conv stride.  `base` is a static Python int.
        base = (kh % stride) * rows_slab + (kh // stride)
        xs = x_ref[0, pl.ds(base, th), :, :].reshape(th * wo, kc)
        acc = acc + jnp.dot(xs, w_ref[kh],
                            preferred_element_type=jnp.float32,
                            precision=precision)
    acc = acc + b_ref[...]
    o_ref[...] = acc.reshape(1, th, wo, c_out_pad).astype(o_ref.dtype)


# ---------------------------------------------------------------------------
# Wrapper
# ---------------------------------------------------------------------------
@functools.partial(
    jax.jit,
    static_argnames=("kernel_size", "stride", "tile_positions", "compute_dtype"))
def conv_layer_forward(x, weight, bias, *, kernel_size, stride,
                       tile_positions=2048, compute_dtype=jnp.bfloat16):
    """ConvLayer.forward: ReflectionPad2d(k//2) then Conv2d(k, stride).

    x:      (N, C_in, H, W)       float32
    weight: (C_out, C_in, k, k)   float32
    bias:   (C_out,)              float32
    returns (N, C_out, H_out, W_out) float32  (PyTorch NCHW contract)
    """
    n, c_in, _, _ = x.shape
    c_out = weight.shape[0]
    k = kernel_size
    pad = k // 2
    kc = k * c_in

    precision = (lax.Precision.HIGHEST
                 if jnp.dtype(compute_dtype) == jnp.float32
                 else lax.Precision.DEFAULT)

    # --- thin JAX glue on the (small) input --------------------------------
    # NCHW -> NHWC + reflection pad, cast to the MXU compute dtype.
    x_nhwc = jnp.transpose(x, (0, 2, 3, 1))
    x_pad = jnp.pad(x_nhwc, ((0, 0), (pad, pad), (pad, pad), (0, 0)),
                    mode="reflect").astype(compute_dtype)
    hp, wp = x_pad.shape[1], x_pad.shape[2]
    ho = (hp - k) // stride + 1
    wo = (wp - k) // stride + 1

    # kw fold + column stride (item 1/7/8):
    #   x_shift[n, h, ow, kw*C_in + c] = x_pad[n, h, ow*stride + kw, c]
    cols = [x_pad[:, :, kw: kw + (wo - 1) * stride + 1: stride, :]
            for kw in range(k)]
    x_shift = jnp.stack(cols, axis=3).reshape(n, hp, wo, kc)

    # Sublane-align the output width (item 6); extra columns are sliced off.
    wo_pad = _round_up(wo, 8)
    if wo_pad > wo:
        x_shift = jnp.pad(x_shift, ((0, 0), (0, 0), (0, wo_pad - wo), (0, 0)))

    # Lane-dense output channels (unmasked NHWC stores).
    c_out_pad = _round_up(c_out, 128)

    # --- output row tile under a generation-aware VMEM budget (items 2/3/4) -
    hh = (k - 1) // stride            # halo rows per stride phase
    itemsize = jnp.dtype(compute_dtype).itemsize
    lanes_in = _round_up(kc, 128)     # real lane footprint of the slab

    try:
        vmem_cap = int(pltpu.get_tpu_info().vmem_capacity_bytes)
    except Exception:
        vmem_cap = 64 << 20           # conservative fallback (v7x-sized)
    budget = (vmem_cap * 3) // 4

    def vmem_est(t):
        slab = stride * (t + hh) * wo_pad * lanes_in * itemsize      # x2 buf
        otile = t * wo_pad * c_out_pad * 4                           # x2 buf
        wts = k * _round_up(kc, 8) * c_out_pad * itemsize            # x2 buf
        acc = t * wo_pad * c_out_pad * 4
        return 2 * (slab + otile + wts) + acc + (2 << 20)

    th = max(1, min(ho, tile_positions // max(wo_pad, 1)))
    while th > 1 and vmem_est(th) > budget:
        th = max(1, th // 2)
    n_h = pl.cdiv(ho, th)
    ho_pad = n_h * th
    rows_slab = th + hh

    # --- per-tile halo row slabs with stride-phase decomposition ------------
    # x_slab[b*n_h + i, p*rows_slab + j, ow, :] =
    #     x_shift[b, i*th*stride + p + j*stride, ow, :]
    # so tap kh reads the contiguous rows [kh//stride, kh//stride + th) of
    # phase kh % stride.  Out-of-range rows (ragged last tile / halo) are
    # clipped; the affected output rows (>= ho) are sliced off below.
    rows = (jnp.arange(n_h)[:, None, None] * (th * stride)
            + jnp.arange(stride)[None, :, None]
            + jnp.arange(rows_slab)[None, None, :] * stride)
    rows = jnp.clip(rows, 0, hp - 1).reshape(n_h, stride * rows_slab)
    x_slab = jnp.take(x_shift, rows, axis=1)        # (n, n_h, S, wo_pad, kc)
    x_slab = x_slab.reshape(n * n_h, stride * rows_slab, wo_pad, kc)

    # --- packed weights / bias ----------------------------------------------
    # weight[co, ci, kh, kw] -> w_packed[kh, kw*C_in + ci, co_padded]
    w_packed = jnp.transpose(weight, (2, 3, 1, 0)).reshape(k, kc, c_out)
    w_packed = jnp.pad(w_packed, ((0, 0), (0, 0), (0, c_out_pad - c_out)))
    w_packed = w_packed.astype(compute_dtype)
    b_packed = jnp.pad(bias, (0, c_out_pad - c_out)).reshape(1, c_out_pad)
    b_packed = b_packed.astype(jnp.float32)

    vmem_limit = int(min(max(vmem_est(th), 16 << 20), budget))

    cost = pl.CostEstimate(
        flops=2 * n * ho * wo * c_in * c_out * k * k,
        transcendentals=0,
        bytes_accessed=int(x.size * x.dtype.itemsize
                           + weight.size * weight.dtype.itemsize
                           + n * ho * wo * c_out * 4))

    kernel = functools.partial(_conv_kernel, k=k, stride=stride, th=th,
                               wo=wo_pad, rows_slab=rows_slab,
                               precision=precision)

    # NOTE: weights/bias are grid-invariant (constant index_map) so Pallas
    # only DMAs them once; their second pipeline buffer is a few hundred KiB
    # at most, so default buffering is kept instead of pl.Buffered(1).
    out_nhwc = pl.pallas_call(
        kernel,
        out_shape=jax.ShapeDtypeStruct((n, ho_pad, wo_pad, c_out_pad),
                                       jnp.float32),
        grid=(n, n_h),
        in_specs=[
            pl.BlockSpec((1, stride * rows_slab, wo_pad, kc),
                         lambda b, i: (b * n_h + i, 0, 0, 0)),
            pl.BlockSpec((k, kc, c_out_pad), lambda b, i: (0, 0, 0)),
            pl.BlockSpec((1, c_out_pad), lambda b, i: (0, 0)),
        ],
        out_specs=pl.BlockSpec((1, th, wo_pad, c_out_pad),
                               lambda b, i: (b, i, 0, 0)),
        compiler_params=pltpu.CompilerParams(
            dimension_semantics=("parallel", "parallel"),
            vmem_limit_bytes=vmem_limit,
        ),
        cost_estimate=cost,
    )(x_slab, w_packed, b_packed)

    # Trim channel / row / column padding, restore the PyTorch NCHW contract.
    # TODO(synk): for small C_out a transposed-output (direct NCHW) kernel
    # path would avoid the 128-lane channel padding and this final transpose
    # (one extra HBM pass over the output).
    out = out_nhwc[:, :ho, :wo, :c_out].astype(x.dtype)
    return jnp.transpose(out, (0, 3, 1, 2))


# ---------------------------------------------------------------------------
# Reference + self-test
# ---------------------------------------------------------------------------
def _reference(x, weight, bias, kernel_size, stride):
    pad = kernel_size // 2
    x_pad = jnp.pad(x, ((0, 0), (0, 0), (pad, pad), (pad, pad)), mode="reflect")
    y = lax.conv_general_dilated(
        x_pad, weight, window_strides=(stride, stride), padding="VALID",
        dimension_numbers=("NCHW", "OIHW", "NCHW"))
    return y + bias.reshape(1, -1, 1, 1)


if __name__ == "__main__":
    master_key = jax.random.PRNGKey(0)

    def run_case(n, c_in, h, w, c_out, k, stride, key):
        kx, kw_, kb = jax.random.split(key, 3)
        x = jax.random.normal(kx, (n, c_in, h, w), dtype=jnp.float32)
        fan_in = c_in * k * k
        bound = 1.0 / (fan_in ** 0.5)
        weight = jax.random.uniform(kw_, (c_out, c_in, k, k), jnp.float32,
                                    -bound, bound)
        bias = jax.random.uniform(kb, (c_out,), jnp.float32, -bound, bound)
        ref = _reference(x, weight, bias, k, stride)

        # f32 MXU path (precision=HIGHEST): tight numerical check.
        out_f32 = conv_layer_forward(x, weight, bias, kernel_size=k,
                                     stride=stride, compute_dtype=jnp.float32)
        out_f32 = jax.block_until_ready(out_f32)
        assert out_f32.shape == ref.shape, (out_f32.shape, ref.shape)
        assert jnp.allclose(out_f32, ref, atol=1e-4, rtol=1e-4), \
            f"f32 mismatch vs reference (k={k}, stride={stride})"

        # bf16 MXU path (default, f32 accumulation): looser tolerance.
        out_bf16 = conv_layer_forward(x, weight, bias, kernel_size=k,
                                      stride=stride)
        out_bf16 = jax.block_until_ready(out_bf16)
        assert out_bf16.shape == ref.shape, (out_bf16.shape, ref.shape)
        assert jnp.allclose(out_bf16, ref, atol=3e-2, rtol=3e-2), \
            f"bf16 mismatch vs reference (k={k}, stride={stride})"

    k1, k2 = jax.random.split(master_key)
    # Small deterministic configs consistent with the style-transfer ConvLayer.
    run_case(2, 4, 16, 16, 8, 3, 1, k1)   # stride-1 conv layer
    run_case(2, 4, 16, 16, 8, 3, 2, k2)   # stride-2 downsampling conv layer

    print("KERNEL_OK")
</pallas_src>

<mosaic_0001>
module attributes {stable_mosaic.version = 11 : i64} {
  func.func @_conv_kernel(%arg0: i32, %arg1: i32, %arg2: memref<1x18x16x12xf32, #tpu.memory_space<vmem>>, %arg3: memref<3x12x128xf32, #tpu.memory_space<vmem>>, %arg4: memref<1x128xf32, #tpu.memory_space<vmem>>, %arg5: memref<1x16x16x128xf32, #tpu.memory_space<vmem>>) attributes {dimension_semantics = [#tpu.dimension_semantics<parallel>, #tpu.dimension_semantics<parallel>], iteration_bounds = array<i64: 2, 1>, scalar_prefetch = 0 : i64, scratch_operands = 0 : i64, tpu.core_type = #tpu.core_type<tc>, window_params = [{transform_indices = @transform_0, window_bounds = array<i64: 1, 18, 16, 12>}, {pipeline_mode = #tpu.pipeline_mode<synchronous>, transform_indices = @transform_1, window_bounds = array<i64: 3, 12, 128>}, {pipeline_mode = #tpu.pipeline_mode<synchronous>, transform_indices = @transform_2, window_bounds = array<i64: 1, 128>}, {transform_indices = @transform_3, window_bounds = array<i64: 1, 16, 16, 128>}]} {
    %cst = arith.constant 0.000000e+00 : f32
    %0 = vector.broadcast %cst : f32 to vector<256x128xf32>
    %c0 = arith.constant 0 : index
    %c0_0 = arith.constant 0 : index
    %c0_1 = arith.constant 0 : index
    %c0_2 = arith.constant 0 : index
    %1 = vector.load %arg2[%c0, %c0_0, %c0_1, %c0_2] : memref<1x18x16x12xf32, #tpu.memory_space<vmem>>, vector<1x16x16x12xf32>
    %2 = vector.shape_cast %1 : vector<1x16x16x12xf32> to vector<16x16x12xf32>
    %3 = vector.shape_cast %2 : vector<16x16x12xf32> to vector<256x12xf32>
    %c0_3 = arith.constant 0 : index
    %c0_4 = arith.constant 0 : index
    %c0_5 = arith.constant 0 : index
    %4 = vector.load %arg3[%c0_3, %c0_4, %c0_5] : memref<3x12x128xf32, #tpu.memory_space<vmem>>, vector<1x12x128xf32>
    %5 = vector.shape_cast %4 : vector<1x12x128xf32> to vector<12x128xf32>
    %cst_6 = arith.constant dense<0.000000e+00> : vector<256x128xf32>
    %6 = tpu.matmul %3, %5, %cst_6 {dimension_numbers = #tpu.dot_dimension_numbers<[1], [0], [0], [1], [0, 0, 1, 1], [], []>, precision = #tpu.contract_precision<fp32>} : vector<256x12xf32>, vector<12x128xf32>, vector<256x128xf32> -> vector<256x128xf32>
    %7 = arith.addf %0, %6 : vector<256x128xf32>
    %c0_7 = arith.constant 0 : index
    %c1 = arith.constant 1 : index
    %c0_8 = arith.constant 0 : index
    %c0_9 = arith.constant 0 : index
    %8 = vector.load %arg2[%c0_7, %c1, %c0_8, %c0_9] : memref<1x18x16x12xf32, #tpu.memory_space<vmem>>, vector<1x16x16x12xf32>
    %9 = vector.shape_cast %8 : vector<1x16x16x12xf32> to vector<16x16x12xf32>
    %10 = vector.shape_cast %9 : vector<16x16x12xf32> to vector<256x12xf32>
    %c1_10 = arith.constant 1 : index
    %c0_11 = arith.constant 0 : index
    %c0_12 = arith.constant 0 : index
    %11 = vector.load %arg3[%c1_10, %c0_11, %c0_12] : memref<3x12x128xf32, #tpu.memory_space<vmem>>, vector<1x12x128xf32>
    %12 = vector.shape_cast %11 : vector<1x12x128xf32> to vector<12x128xf32>
    %cst_13 = arith.constant dense<0.000000e+00> : vector<256x128xf32>
    %13 = tpu.matmul %10, %12, %cst_13 {dimension_numbers = #tpu.dot_dimension_numbers<[1], [0], [0], [1], [0, 0, 1, 1], [], []>, precision = #tpu.contract_precision<fp32>} : vector<256x12xf32>, vector<12x128xf32>, vector<256x128xf32> -> vector<256x128xf32>
    %14 = arith.addf %7, %13 : vector<256x128xf32>
    %c0_14 = arith.constant 0 : index
    %c2 = arith.constant 2 : index
    %c0_15 = arith.constant 0 : index
    %c0_16 = arith.constant 0 : index
    %15 = vector.load %arg2[%c0_14, %c2, %c0_15, %c0_16] : memref<1x18x16x12xf32, #tpu.memory_space<vmem>>, vector<1x16x16x12xf32>
    %16 = vector.shape_cast %15 : vector<1x16x16x12xf32> to vector<16x16x12xf32>
    %17 = vector.shape_cast %16 : vector<16x16x12xf32> to vector<256x12xf32>
    %c2_17 = arith.constant 2 : index
    %c0_18 = arith.constant 0 : index
    %c0_19 = arith.constant 0 : index
    %18 = vector.load %arg3[%c2_17, %c0_18, %c0_19] : memref<3x12x128xf32, #tpu.memory_space<vmem>>, vector<1x12x128xf32>
    %19 = vector.shape_cast %18 : vector<1x12x128xf32> to vector<12x128xf32>
    %cst_20 = arith.constant dense<0.000000e+00> : vector<256x128xf32>
    %20 = tpu.matmul %17, %19, %cst_20 {dimension_numbers = #tpu.dot_dimension_numbers<[1], [0], [0], [1], [0, 0, 1, 1], [], []>, precision = #tpu.contract_precision<fp32>} : vector<256x12xf32>, vector<12x128xf32>, vector<256x128xf32> -> vector<256x128xf32>
    %21 = arith.addf %14, %20 : vector<256x128xf32>
    %c0_21 = arith.constant 0 : index
    %c0_22 = arith.constant 0 : index
    %22 = vector.load %arg4[%c0_21, %c0_22] : memref<1x128xf32, #tpu.memory_space<vmem>>, vector<1x128xf32>
    %23 = vector.broadcast %22 : vector<1x128xf32> to vector<256x128xf32>
    %24 = arith.addf %21, %23 : vector<256x128xf32>
    %25 = vector.shape_cast %24 : vector<256x128xf32> to vector<1x16x16x128xf32>
    %c0_23 = arith.constant 0 : index
    %c0_24 = arith.constant 0 : index
    %c0_25 = arith.constant 0 : index
    %c0_26 = arith.constant 0 : index
    %26 = vector.load %arg5[%c0_23, %c0_24, %c0_25, %c0_26] : memref<1x16x16x128xf32, #tpu.memory_space<vmem>>, vector<1x16x16x128xf32>
    tpu.vector_store %arg5[%c0_23, %c0_24, %c0_25, %c0_26], %25 {strides = array<i32>} : memref<1x16x16x128xf32, #tpu.memory_space<vmem>>, vector<1x16x16x128xf32>,
    return
  }
  func.func @transform_0(%arg0: i32, %arg1: i32) -> (i32, i32, i32, i32) {
    %c1_i32 = arith.constant 1 : i32
    %0 = arith.muli %arg0, %c1_i32 : i32
    %1 = arith.addi %0, %arg1 : i32
    %c0_i32 = arith.constant 0 : i32
    %c0_i32_0 = arith.constant 0 : i32
    %c0_i32_1 = arith.constant 0 : i32
    %c0_i32_2 = arith.constant 0 : i32
    return %1, %c0_i32, %c0_i32_0, %c0_i32_1 : i32, i32, i32, i32
  }
  func.func @transform_1(%arg0: i32, %arg1: i32) -> (i32, i32, i32) {
    %c0_i32 = arith.constant 0 : i32
    %c0_i32_0 = arith.constant 0 : i32
    %c0_i32_1 = arith.constant 0 : i32
    %c0_i32_2 = arith.constant 0 : i32
    return %c0_i32, %c0_i32_0, %c0_i32_1 : i32, i32, i32
  }
  func.func @transform_2(%arg0: i32, %arg1: i32) -> (i32, i32) {
    %c0_i32 = arith.constant 0 : i32
    %c0_i32_0 = arith.constant 0 : i32
    %c0_i32_1 = arith.constant 0 : i32
    return %c0_i32, %c0_i32_0 : i32, i32
  }
  func.func @transform_3(%arg0: i32, %arg1: i32) -> (i32, i32, i32, i32) {
    %c0_i32 = arith.constant 0 : i32
    %c0_i32_0 = arith.constant 0 : i32
    %c0_i32_1 = arith.constant 0 : i32
    return %arg0, %arg1, %c0_i32, %c0_i32_0 : i32, i32, i32, i32
  }
}

</mosaic_0001>

<bundles_post_ra>
// kernel: conv_layer_forward.1
= control target key start
LH: loop header
LB: loop body
LE: loop exit
PB: predicated region body
PF: predicated region fallthrough
CT: control target
= control target key end

     0   :  { %s4308_s12 = smov 0   ;;  %s4310_s13 = smov 0   ;;  %s6444_s0 = inlined_call_operand.vmem [shape: f32[2,18,16,12], index: 0, kind: input, shape index: {}]   ;;  %s6445_s1 = inlined_call_operand.vmem [shape: f32[3,12,128], index: 1, kind: input, shape index: {}]   ;;  %s6446_s2 = inlined_call_operand.vmem [shape: f32[1,128], index: 2, kind: input, shape index: {}]   ;;  %s6447_s3 = inlined_call_operand.vmem [shape: f32[2,16,16,128], index: 3, kind: output, shape index: {}]  }
   0x1   :  { %s4312_s14 = smov 0  }
   0x2 LB: > { %s25_s15 = sadd.s32 1, %s4282_s13  ;;  %p4159_p0 = scmp.ge.s32.totalorder %s4286_s14, 1  ;;  %s4286_s14 = sphi %s4312_s14, %s13_s14   ;;  %s4282_s13 = sphi %s4310_s13, %s7031_s13   ;;  %s4278_s12 = sphi %s4308_s12, %s7030_s12  }
   0x3   : > { %p27_p1 = scmp.ge.s32.totalorder %s25_s15, 2  ;;  %p155_p2 = scmp.lt.s32.totalorder %s4286_s14, 3 }
   0x5   : > { %s7033_s15 = smov (%p27_p1, %s25_s15), 0  ;;  %p156_p3 = pnand %p4159_p0, %p155_p2 }
   0x7   : > { %159 = sbr.rel (%p156_p3) target bundleno = 1320 (0x528), region = 32 }
   0xc   : > { %v4196_v0 = vld [vmem:[%s6445_s1 + $0x18] sm:$0xf]  ;;  %vm370_vm0 = vcmask 1043456   ;;  %v4195_v1 = vld [vmem:[%s6445_s1 + $0x10] sm:$0xff]  ;;  %p186_p4 = scmp.lt.s32.totalorder %s4278_s12, 1  ;;  %vm273_vm1 = vcmask 97280  }
   0xd   : > { %v372_v2 = vsel %vm370_vm0, %v4196_v0, 0  ;;  %v4333_v3 = vand.u32 4294901760, %v4195_v1 }
   0xe   : > { %v388_v4 = vand.u32 4294901760, %v372_v2  ;;  %s7035_s12 = smov (!%p186_p4, %s4278_s12), 1 }
   0xf   : > { %v670_v5 = vsub.f32 %v4195_v1, %v4333_v3  ;;  %s4238_s20 = smul.u32 288, %s7035_s12  ;;  %s4233_s5 = sshll.u32 %s7035_s12, 8 }
  0x10   : > { %4234 = vmatpush.msra.mxu2 %v388_v4  ;;  %v664_v6 = vsub.f32 %v372_v2, %v388_v4  ;;  %389 = vmatpush.msra.mxu0 %v388_v4  ;;  %s6211_s10 = scalar_lea.vmem %s6447_s3, %s4233_s5 }
  0x11   : > { %v671_v7 = vand.u32 4294901760, %v670_v5  ;;  %s4343_s23 = scalar_lea.vmem %s6444_s0, %s4238_s20 }
  0x12   : > { %v665_v8 = vand.u32 4294901760, %v664_v6  ;;  %4235 = vmatpush.msra.mxu2 %v4333_v3  ;;  %391 = vmatpush.msra.mxu0 %v4333_v3  ;;  %v4179_v10 = vld [vmem:[%s4343_s23 + $0x90] sm:$0xff]  ;;  %v4180_v11 = vld [vmem:[%s4343_s23 + $0x98] sm:$0xff]  ;;  %v4181_v17 = vld [vmem:[%s4343_s23 + $0xa0] sm:$0xff] }
  0x13   : > { %v672_v9 = vsub.f32 %v670_v5, %v671_v7  ;;  %v4163_v12 = vld [vmem:[%s4343_s23 + $0x10] sm:$0xff]  ;;  %v323_v14 = vsel %vm273_vm1, %v4179_v10, 0  ;;  %v326_v15 = vsel %vm273_vm1, %v4180_v11, 0  ;;  %v4164_v18 = vld [vmem:[%s4343_s23 + $0x18] sm:$0xff]  ;;  %v4165_v22 = vld [vmem:[%s4343_s23 + $0x20] sm:$0xff]  ;;  %v329_v29 = vsel %vm273_vm1, %v4181_v17, 0 }
  0x14   : > { %820 = vmatpush.msrb.mxu2 %v664_v6  ;;  %v666_v13 = vsub.f32 %v664_v6, %v665_v8  ;;  %v275_v16 = vsel %vm273_vm1, %v4163_v12, 0  ;;  %1213 = vmatpush.msrb.mxu0 %v665_v8  ;;  %v4354_v19 = vand.u32 4294901760, %v323_v14  ;;  %v4356_v20 = vand.u32 4294901760, %v326_v15  ;;  %v4182_v41 = vld [vmem:[%s4343_s23 + $0xa8] sm:$0xff]  ;;  %v4183_v57 = vld [vmem:[%s4343_s23 + $0xb0] sm:$0xff]  ;;  %v4168_v8 = vld [vmem:[%s4343_s23 + $0x38] sm:$0xff] }
  0x15   : > { %v4358_v21 = vand.u32 4294901760, %v275_v16  ;;  %v673_v24 = vand.u32 4294901760, %v672_v9  ;;  %v278_v25 = vsel %vm273_vm1, %v4164_v18, 0  ;;  %v281_v31 = vsel %vm273_vm1, %v4165_v22, 0  ;;  %v4166_v44 = vld [vmem:[%s4343_s23 + $0x28] sm:$0xff]  ;;  %v4167_v58 = vld [vmem:[%s4343_s23 + $0x30] sm:$0xff] }
  0x16   : > { %823 = vmatpush.msrb.mxu2 %v670_v5  ;;  %v667_v23 = vand.u32 4294901760, %v666_v13  ;;  %1217 = vmatpush.msrb.mxu0 %v671_v7  ;;  %v4363_v26 = vsub.f32 %v323_v14, %v4354_v19  ;;  %v4366_v27 = vsub.f32 %v326_v15, %v4356_v20  ;;  %v4372_v30 = vand.u32 4294901760, %v278_v25  ;;  %v4184_v7 = vld [vmem:[%s4343_s23 + $0xb8] sm:$0xff] }
  0x17   : > { %v4369_v28 = vsub.f32 %v275_v16, %v4358_v21  ;;  %v4377_v34 = vand.u32 4294901760, %v329_v29  ;;  %v4391_v39 = vand.u32 4294901760, %v281_v31  ;;  %v332_v48 = vsel %vm273_vm1, %v4182_v41, 0 }
  0x18   : > { %4236 = vmatpush.msra.mxu3 %v667_v23  ;;  %668 = vmatpush.msra.mxu1 %v667_v23  ;;  %v6456_v32 = vand.u32 4294901760, %v4363_v26  ;;  %v4380_v35 = vsub.f32 %v278_v25, %v4372_v30  ;;  %v6455_v37 = vand.u32 4294901760, %v4366_v27  ;;  %v284_v50 = vsel %vm273_vm1, %v4166_v44, 0  ;;  %v4169_v25 = vld [vmem:[%s4343_s23 + $0x40] sm:$0xff] }
  0x19   : > { %v6469_v33 = vand.u32 4294901760, %v4369_v28  ;;  %v4397_v45 = vsub.f32 %v329_v29, %v4377_v34  ;;  %v4409_v49 = vsub.f32 %v281_v31, %v4391_v39  ;;  %v4413_v52 = vand.u32 4294901760, %v332_v48 }
  0x1a   : > { %4237 = vmatpush.msra.mxu3 %v673_v24  ;;  %674 = vmatpush.msra.mxu1 %v673_v24  ;;  %v523_v36 = vsub.f32 %v4363_v26, %v6456_v32  ;;  %v6468_v40 = vand.u32 4294901760, %v4380_v35  ;;  %v531_v46 = vsub.f32 %v4366_v27, %v6455_v37  ;;  %v4418_v56 = vand.u32 4294901760, %v284_v50  ;;  %v4185_v24 = vld [vmem:[%s4343_s23 + $0xc0] sm:$0xff]  ;;  %v4174_v37 = vld [vmem:[%s4343_s23 + $0x68] sm:$0xff] }
  0x1b   : > { %740 = vmatmul.f32.vlgmr.msra.gmra.mxu3 %v4354_v19  ;;  %v395_v38 = vsub.f32 %v4369_v28, %v6469_v33  ;;  %676 = vmatmul.f32.vlgmr.msra.gmra.mxu1 %v4358_v21  ;;  %v6454_v51 = vand.u32 4294901760, %v4397_v45  ;;  %v6467_v55 = vand.u32 4294901760, %v4409_v49  ;;  %v4423_v59 = vsub.f32 %v332_v48, %v4413_v52 }
  0x1c   : > { %1000 = vmatpush.msrb.mxu3 %v388_v4  ;;  %1362 = vmatpush.msrb.mxu1 %v388_v4  ;;  %v524_v42 = vand.u32 4294901760, %v523_v36  ;;  %v403_v47 = vsub.f32 %v4380_v35, %v6468_v40  ;;  %v532_v53 = vand.u32 4294901760, %v531_v46  ;;  %v335_v62 = vsel %vm273_vm1, %v4183_v57, 0 }
  0x1d   : > { %v396_v43 = vand.u32 4294901760, %v395_v38  ;;  %v539_v60 = vsub.f32 %v4397_v45, %v6454_v51  ;;  %v411_v61 = vsub.f32 %v4409_v49, %v6467_v55  ;;  %v4433_v63 = vsub.f32 %v284_v50, %v4418_v56  ;;  %v4176_v55 = vld [vmem:[%s4343_s23 + $0x78] sm:$0xff] }
  0x1e   : > { %1002 = vmatpush.msrb.mxu3 %v4333_v3  ;;  %1364 = vmatpush.msrb.mxu1 %v4333_v3  ;;  %v404_v54 = vand.u32 4294901760, %v403_v47  ;;  %v287_v0 = vsel %vm273_vm1, %v4167_v58, 0  ;;  %v6452_v1 = vand.u32 4294901760, %v4423_v59  ;;  %v4437_v2 = vand.u32 4294901760, %v335_v62 }
  0x1f   : > { %525 = vmatmul.f32.vlgmr.msra.gmra.mxu2 %v524_v42  ;;  %397 = vmatmul.f32.vlgmr.msra.gmra.mxu0 %v396_v43  ;;  %v540_v3 = vand.u32 4294901760, %v539_v60  ;;  %v412_v4 = vand.u32 4294901760, %v411_v61  ;;  %v6464_v5 = vand.u32 4294901760, %v4433_v63  ;;  %v4442_v6 = vand.u32 4294901760, %v287_v0 }
  0x20   : > { %v4447_v9 = vsub.f32 %v335_v62, %v4437_v2  ;;  %v547_v10 = vsub.f32 %v4423_v59, %v6452_v1  ;;  %v338_v12 = vsel %vm273_vm1, %v4184_v7, 0  ;;  %v290_v14 = vsel %vm273_vm1, %v4168_v8, 0 }
  0x21   : > { %v419_v11 = vsub.f32 %v4433_v63, %v6464_v5  ;;  %v4457_v13 = vsub.f32 %v287_v0, %v4442_v6  ;;  %v4461_v16 = vand.u32 4294901760, %v338_v12  ;;  %v4466_v23 = vand.u32 4294901760, %v290_v14 }
  0x22   : > { %v6451_v15 = vand.u32 4294901760, %v4447_v9  ;;  %v548_v17 = vand.u32 4294901760, %v547_v10  ;;  %v341_v41 = vsel %vm273_vm1, %v4185_v24, 0  ;;  %v293_v42 = vsel %vm273_vm1, %v4169_v25, 0 }
  0x23   : > { %744 = vmatmul.f32.gmra.mxu3 %v4356_v20  ;;  %680 = vmatmul.f32.gmra.mxu1 %v4372_v30  ;;  %v420_v18 = vand.u32 4294901760, %v419_v11  ;;  %v6463_v22 = vand.u32 4294901760, %v4457_v13  ;;  %v4474_v31 = vsub.f32 %v338_v12, %v4461_v16  ;;  %v4480_v38 = vsub.f32 %v290_v14, %v4466_v23  ;;  %v4187_v12 = vld [vmem:[%s4343_s23 + $0xd0] sm:$0xff] }
  0x24   : > { %v555_v29 = vsub.f32 %v4447_v9, %v6451_v15  ;;  %v4487_v47 = vand.u32 4294901760, %v341_v41  ;;  %v4490_v50 = vand.u32 4294901760, %v293_v42  ;;  %v4171_v14 = vld [vmem:[%s4343_s23 + $0x50] sm:$0xff]  ;;  %v347_v25 = vsel %vm273_vm1, %v4187_v12, 0 }
  0x25   : > { %v427_v36 = vsub.f32 %v4457_v13, %v6463_v22  ;;  %v6450_v44 = vand.u32 4294901760, %v4474_v31  ;;  %v6462_v48 = vand.u32 4294901760, %v4480_v38  ;;  %v314_v33 = vsel %vm273_vm1, %v4176_v55, 0 }
  0x26   : > { %v556_v43 = vand.u32 4294901760, %v555_v29  ;;  %v4498_v58 = vsub.f32 %v341_v41, %v4487_v47  ;;  %v4505_v62 = vsub.f32 %v293_v42, %v4490_v50  ;;  %v4533_v42 = vand.u32 4294901760, %v347_v25 }
  0x27   : > { %533 = vmatmul.f32.gmra.mxu2 %v532_v53  ;;  %405 = vmatmul.f32.gmra.mxu0 %v404_v54  ;;  %v428_v46 = vand.u32 4294901760, %v427_v36  ;;  %v4186_v53 = vld [vmem:[%s4343_s23 + $0xc8] sm:$0xff]  ;;  %v563_v57 = vsub.f32 %v4474_v31, %v6450_v44  ;;  %v435_v60 = vsub.f32 %v4480_v38, %v6462_v48  ;;  %v299_v36 = vsel %vm273_vm1, %v4171_v14, 0 }
  0x28   : > { %v4170_v54 = vld [vmem:[%s4343_s23 + $0x48] sm:$0xff]  ;;  %v344_v61 = vsel %vm273_vm1, %v4186_v53, 0  ;;  %v6449_v7 = vand.u32 4294901760, %v4498_v58  ;;  %v6461_v10 = vand.u32 4294901760, %v4505_v62  ;;  %6656 = vst [vmem:[#allocation4_spill] sm:$0xff] %v4533_v42 }
  0x29   : > { %v296_v0 = vsel %vm273_vm1, %v4170_v54, 0  ;;  %v436_v8 = vand.u32 4294901760, %v435_v60  ;;  %v4538_v54 = vand.u32 4294901760, %v299_v36  ;;  %v4172_v60 = vld [vmem:[%s4343_s23 + $0x58] sm:$0xff] }
  0x2a   : > { %v4514_v11 = vand.u32 4294901760, %v296_v0  ;;  %v443_v24 = vsub.f32 %v4505_v62, %v6461_v10  ;;  %v302_v14 = vsel %vm273_vm1, %v4172_v60, 0  ;;  %v4175_v10 = vld [vmem:[%s4343_s23 + $0x70] sm:$0xff] }
  0x2b   : > { %748 = vmatmul.f32.gmra.mxu3 %v4377_v34  ;;  %684 = vmatmul.f32.gmra.mxu1 %v4391_v39  ;;  %v311_v22 = vsel %vm273_vm1, %v4175_v10, 0 }
  0x2c   : > { %v4529_v29 = vsub.f32 %v296_v0, %v4514_v11  ;;  %v4546_v0 = vsub.f32 %v347_v25, %v4533_v42 }
  0x2e   : > { %v6458_v53 = vand.u32 4294901760, %v4529_v29  ;;  %6657 = vst [vmem:[#allocation5_spill] sm:$0xff] %v4546_v0 }
  0x2f   : > { %541 = vmatmul.f32.gmra.mxu2 %v540_v3  ;;  %413 = vmatmul.f32.gmra.mxu0 %v412_v4  ;;  %v564_v3 = vand.u32 4294901760, %v563_v57  ;;  %v4508_v4 = vand.u32 4294901760, %v344_v61  ;;  %v4188_v57 = vld [vmem:[%s4343_s23 + $0xd8] sm:$0xff] }
  0x30   : > { %v350_v12 = vsel %vm273_vm1, %v4188_v57, 0 }
  0x31   : > { %6654 = vst [vmem:[#allocation2_spill] sm:$0xff] %v4508_v4 }
  0x33   : > { %752 = vmatmul.f32.gmra.mxu3 %v4413_v52  ;;  %688 = vmatmul.f32.gmra.mxu1 %v4418_v56 }
  0x37   : > { %549 = vmatmul.f32.gmra.mxu2 %v548_v17  ;;  %421 = vmatmul.f32.gmra.mxu0 %v420_v18  ;;  %v4519_v17 = vsub.f32 %v344_v61, %v4508_v4  ;;  %v571_v18 = vsub.f32 %v4498_v58, %v6449_v7  ;;  %v4173_v7 = vld [vmem:[%s4343_s23 + $0x60] sm:$0xff] }
  0x38   : > { %v305_v15 = vsel %vm273_vm1, %v4173_v7, 0 }
  0x39   : > { %6655 = vst [vmem:[#allocation3_spill] sm:$0xff] %v4519_v17  ;;  %v6448_v41 = vand.u32 4294901760, %v4519_v17  ;;  %v4586_v51 = vand.u32 4294901760, %v305_v15 }
  0x3b   : > { %756 = vmatmul.f32.gmra.mxu3 %v4437_v2  ;;  %692 = vmatmul.f32.gmra.mxu1 %v4442_v6  ;;  %v579_v61 = vsub.f32 %v4519_v17, %v6448_v41  ;;  %v4562_v41 = vand.u32 4294901760, %v302_v14  ;;  %v4601_v32 = vsub.f32 %v305_v15, %v4586_v51 }
  0x3d   : > { %v4577_v44 = vsub.f32 %v302_v14, %v4562_v41 }
  0x3f   : > { %557 = vmatmul.f32.gmra.mxu2 %v556_v43  ;;  %429 = vmatmul.f32.gmra.mxu0 %v428_v46  ;;  %v572_v43 = vand.u32 4294901760, %v571_v18  ;;  %v444_v46 = vand.u32 4294901760, %v443_v24  ;;  %v580_v18 = vand.u32 4294901760, %v579_v61  ;;  %v6453_v24 = vand.u32 4294901760, %v4546_v0 }
  0x41   : > { %v587_v57 = vsub.f32 %v4546_v0, %v6453_v24 }
  0x43   : > { %760 = vmatmul.f32.gmra.mxu3 %v4461_v16  ;;  %696 = vmatmul.f32.gmra.mxu1 %v4466_v23  ;;  %v588_v1 = vand.u32 4294901760, %v587_v57 }
  0x47   : > { %565 = vmatmul.f32.gmra.mxu2 %v564_v3  ;;  %437 = vmatmul.f32.gmra.mxu0 %v436_v8  ;;  %v451_v3 = vsub.f32 %v4529_v29, %v6458_v53  ;;  %v4552_v8 = vsub.f32 %v299_v36, %v4538_v54  ;;  %v4189_v36 = vld [vmem:[%s4343_s23 + $0xe0] sm:$0xff] }
  0x49   : > { %v452_v25 = vand.u32 4294901760, %v451_v3  ;;  %v353_v3 = vsel %vm273_vm1, %v4189_v36, 0  ;;  %v4190_v36 = vld [vmem:[%s4343_s23 + $0xe8] sm:$0xff] }
  0x4a   : > { %v4580_v24 = vand.u32 4294901760, %v353_v3 }
  0x4b   : > { %764 = vmatmul.f32.gmra.mxu3 %v4487_v47  ;;  %700 = vmatmul.f32.gmra.mxu1 %v4490_v50 }
  0x4c   : > { %6660 = vst [vmem:[#allocation8_spill] sm:$0xff] %v4580_v24  ;;  %v4591_v14 = vsub.f32 %v353_v3, %v4580_v24  ;;  %v308_v3 = vsel %vm273_vm1, %v4174_v37, 0 }
  0x4e   : > { %6661 = vst [vmem:[#allocation9_spill] sm:$0xff] %v4591_v14 }
  0x4f   : > { %573 = vmatmul.f32.gmra.mxu2 %v572_v43  ;;  %445 = vmatmul.f32.gmra.mxu0 %v444_v46  ;;  %v4559_v43 = vand.u32 4294901760, %v350_v12  ;;  %v6457_v46 = vand.u32 4294901760, %v4552_v8 }
  0x51   : > { %6658 = vst [vmem:[#allocation6_spill] sm:$0xff] %v4559_v43  ;;  %v4570_v60 = vsub.f32 %v350_v12, %v4559_v43  ;;  %v459_v61 = vsub.f32 %v4552_v8, %v6457_v46  ;;  %v6465_v46 = vand.u32 4294901760, %v4591_v14 }
  0x53   : > { %768 = vmatmul.f32.gmra.mxu3 %v4508_v4  ;;  %704 = vmatmul.f32.gmra.mxu1 %v4514_v11  ;;  %6659 = vst [vmem:[#allocation7_spill] sm:$0xff] %v4570_v60  ;;  %v460_v12 = vand.u32 4294901760, %v459_v61  ;;  %v356_v61 = vsel %vm273_vm1, %v4190_v36, 0  ;;  %v4191_v36 = vld [vmem:[%s4343_s23 + $0xf0] sm:$0xff]  ;;  %v603_v37 = vsub.f32 %v4591_v14, %v6465_v46 }
  0x54   : > { %v359_v48 = vsel %vm273_vm1, %v4191_v36, 0 }
  0x55   : > { %v604_v5 = vand.u32 4294901760, %v603_v37 }
  0x57   : > { %581 = vmatmul.f32.gmra.mxu2 %v580_v18  ;;  %453 = vmatmul.f32.gmra.mxu0 %v452_v25  ;;  %v6459_v18 = vand.u32 4294901760, %v4570_v60  ;;  %v6460_v25 = vand.u32 4294901760, %v4577_v44 }
  0x59   : > { %v595_v7 = vsub.f32 %v4570_v60, %v6459_v18  ;;  %v467_v57 = vsub.f32 %v4577_v44, %v6460_v25  ;;  %v4610_v25 = vand.u32 4294901760, %v308_v3  ;;  %v236_v60 = vld [vmem:[%s6445_s1 + $0x8] sm:$0xf] }
  0x5b   : > { %772 = vmatmul.f32.gmra.mxu3 %v4533_v42  ;;  %708 = vmatmul.f32.gmra.mxu1 %v4538_v54  ;;  %v596_v53 = vand.u32 4294901760, %v595_v7  ;;  %v468_v18 = vand.u32 4294901760, %v467_v57  ;;  %v4624_v57 = vsub.f32 %v308_v3, %v4610_v25  ;;  %v4192_v3 = vld [vmem:[%s4343_s23 + $0xf8] sm:$0xff] }
  0x5f   : > { %589 = vmatmul.f32.gmra.mxu2 %v588_v1  ;;  %461 = vmatmul.f32.gmra.mxu0 %v460_v12  ;;  %v4605_v1 = vand.u32 4294901760, %v356_v61  ;;  %v6466_v12 = vand.u32 4294901760, %v4601_v32 }
  0x61   : > { %6662 = vst [vmem:[#allocation10_spill] sm:$0xff] %v4605_v1  ;;  %v4618_v15 = vsub.f32 %v356_v61, %v4605_v1  ;;  %v475_v7 = vsub.f32 %v4601_v32, %v6466_v12  ;;  %v4634_v12 = vand.u32 4294901760, %v311_v22 }
  0x63   : > { %776 = vmatmul.f32.gmra.mxu3 %v4559_v43  ;;  %712 = vmatmul.f32.gmra.mxu1 %v4562_v41  ;;  %6663 = vst [vmem:[#allocation11_spill] sm:$0xff] %v4618_v15  ;;  %v6472_v46 = vand.u32 4294901760, %v4618_v15  ;;  %v476_v61 = vand.u32 4294901760, %v475_v7  ;;  %v362_v7 = vsel %vm273_vm1, %v4192_v3, 0  ;;  %v4649_v40 = vsub.f32 %v311_v22, %v4634_v12  ;;  %v4193_v3 = vld [vmem:[%s4343_s23 + $0x100] sm:$0xff] }
  0x65   : > { %v611_v10 = vsub.f32 %v4618_v15, %v6472_v46  ;;  %v4652_v46 = vand.u32 4294901760, %v362_v7  ;;  %v4177_v15 = vld [vmem:[%s4343_s23 + $0x80] sm:$0xff] }
  0x67   : > { %597 = vmatmul.f32.gmra.mxu2 %v596_v53  ;;  %469 = vmatmul.f32.gmra.mxu0 %v468_v18  ;;  %v4631_v53 = vand.u32 4294901760, %v359_v48  ;;  %v6473_v18 = vand.u32 4294901760, %v4624_v57  ;;  %6666 = vst [vmem:[#allocation14_spill] sm:$0xff] %v4652_v46  ;;  %v4663_v22 = vsub.f32 %v362_v7, %v4652_v46  ;;  %v317_v7 = vsel %vm273_vm1, %v4177_v15, 0 }
  0x69   : > { %6664 = vst [vmem:[#allocation12_spill] sm:$0xff] %v4631_v53  ;;  %v4642_v36 = vsub.f32 %v359_v48, %v4631_v53  ;;  %v483_v37 = vsub.f32 %v4624_v57, %v6473_v18  ;;  %v4658_v18 = vand.u32 4294901760, %v314_v33  ;;  %v6490_v14 = vand.u32 4294901760, %v4663_v22 }
  0x6a   : > { %6667 = vst [vmem:[#allocation15_spill] sm:$0xff] %v4663_v22 }
  0x6b   : > { %780 = vmatmul.f32.gmra.mxu3 %v4580_v24  ;;  %716 = vmatmul.f32.gmra.mxu1 %v4586_v51  ;;  %6665 = vst [vmem:[#allocation13_spill] sm:$0xff] %v4642_v36  ;;  %v612_v24 = vand.u32 4294901760, %v611_v10  ;;  %v484_v48 = vand.u32 4294901760, %v483_v37  ;;  %v365_v37 = vsel %vm273_vm1, %v4193_v3, 0  ;;  %v4194_v3 = vld [vmem:[%s4343_s23 + $0x108] sm:$0xff] }
  0x6f   : > { %605 = vmatmul.f32.gmra.mxu2 %v604_v5  ;;  %477 = vmatmul.f32.gmra.mxu0 %v476_v61  ;;  %v6482_v5 = vand.u32 4294901760, %v4642_v36  ;;  %v6483_v61 = vand.u32 4294901760, %v4649_v40 }
  0x71   : > { %v619_v55 = vsub.f32 %v4642_v36, %v6482_v5  ;;  %v491_v10 = vsub.f32 %v4649_v40, %v6483_v61  ;;  %v4682_v61 = vand.u32 4294901760, %v317_v7  ;;  %v4178_v36 = vld [vmem:[%s4343_s23 + $0x88] sm:$0xff] }
  0x73   : > { %784 = vmatmul.f32.gmra.mxu3 %v4605_v1  ;;  %720 = vmatmul.f32.gmra.mxu1 %v4610_v25  ;;  %v4673_v1 = vsub.f32 %v314_v33, %v4658_v18  ;;  %v620_v43 = vand.u32 4294901760, %v619_v55  ;;  %v492_v5 = vand.u32 4294901760, %v491_v10  ;;  %v627_v33 = vsub.f32 %v4663_v22, %v6490_v14 }
  0x74   : > { %v368_v10 = vsel %vm273_vm1, %v4194_v3, 0  ;;  %v1591_v14 = vsel %vm370_vm0, %v236_v60, 0 }
  0x75   : > { %v4704_v22 = vand.u32 4294901760, %v1591_v14  ;;  %v4707_v42 = vand.u32 4294901760, %v368_v10 }
  0x77   : > { %613 = vmatmul.f32.gmra.mxu2 %v612_v24  ;;  %485 = vmatmul.f32.gmra.mxu0 %v484_v48  ;;  %v4677_v24 = vand.u32 4294901760, %v365_v37  ;;  %v6495_v48 = vand.u32 4294901760, %v4673_v1  ;;  %6668 = vst [vmem:[#allocation16_spill] sm:$0xff] %v4707_v42 }
  0x78   : > { %1608 = vmatpush.msra.mxu2 %v4704_v22  ;;  %2219 = vmatpush.msra.mxu1 %v4704_v22 }
  0x79   : > { %v4690_v15 = vsub.f32 %v365_v37, %v4677_v24  ;;  %v499_v55 = vsub.f32 %v4673_v1, %v6495_v48  ;;  %v320_v37 = vsel %vm273_vm1, %v4178_v36, 0  ;;  %v4713_v48 = vsub.f32 %v1591_v14, %v4704_v22 }
  0x7a   : > { %v4715_v60 = vand.u32 4294901760, %v320_v37 }
  0x7b   : > { %788 = vmatmul.f32.gmra.mxu3 %v4631_v53  ;;  %724 = vmatmul.f32.gmra.mxu1 %v4634_v12  ;;  %v4697_v53 = vsub.f32 %v317_v7, %v4682_v61  ;;  %v500_v3 = vand.u32 4294901760, %v499_v55  ;;  %v6508_v36 = vand.u32 4294901760, %v4713_v48  ;;  %v4725_v55 = vsub.f32 %v368_v10, %v4707_v42 }
  0x7c   : > { %2039 = vmatpush.msra.mxu0 %v4713_v48 }
  0x7d   : > { %v6507_v7 = vand.u32 4294901760, %v4697_v53  ;;  %v1885_v0 = vsub.f32 %v4713_v48, %v6508_v36  ;;  %v6505_v10 = vand.u32 4294901760, %v4725_v55 }
  0x7f   : > { %621 = vmatmul.f32.gmra.mxu2 %v620_v43  ;;  %493 = vmatmul.f32.gmra.mxu0 %v492_v5  ;;  %v628_v43 = vand.u32 4294901760, %v627_v33  ;;  %v6504_v5 = vand.u32 4294901760, %v4690_v15  ;;  %v507_v14 = vsub.f32 %v4697_v53, %v6507_v7  ;;  %v1886_v4 = vand.u32 4294901760, %v1885_v0 }
  0x81   : > { %v635_v33 = vsub.f32 %v4690_v15, %v6504_v5  ;;  %v508_v5 = vand.u32 4294901760, %v507_v14  ;;  %1887 = vmatpush.msra.mxu3 %v1886_v4  ;;  %v6669_v4 = vand.u32 4294901760, %v4369_v28 }
  0x83   : > { %792 = vmatmul.f32.gmra.mxu3 %v4652_v46  ;;  %728 = vmatmul.f32.gmra.mxu1 %v4658_v18  ;;  %v4731_v46 = vsub.f32 %v320_v37, %v4715_v60  ;;  %v636_v17 = vand.u32 4294901760, %v635_v33  ;;  %v643_v37 = vsub.f32 %v4725_v55, %v6505_v10 }
  0x87   : > { %629 = vmatmul.f32.gmra.mxu2 %v628_v43  ;;  %501 = vmatmul.f32.gmra.mxu0 %v500_v3  ;;  %v6506_v43 = vand.u32 4294901760, %v4731_v46  ;;  %v644_v3 = vand.u32 4294901760, %v643_v37 }
  0x89   : > { %v515_v0 = vsub.f32 %v4731_v46, %v6506_v43 }
  0x8b   : > { %796 = vmatmul.f32.gmra.mxu3 %v4677_v24  ;;  %732 = vmatmul.f32.gmra.mxu1 %v4682_v61  ;;  %v516_v33 = vand.u32 4294901760, %v515_v0 }
  0x8f   : > { %637 = vmatmul.f32.gmra.mxu2 %v636_v17  ;;  %509 = vmatmul.f32.gmra.mxu0 %v508_v5 }
  0x93   : > { %800 = vmatmul.f32.gmra.mxu3 %v4707_v42  ;;  %736 = vmatmul.f32.gmra.mxu1 %v4715_v60 }
  0x97   : > { %645 = vmatmul.f32.gmra.mxu2 %v644_v3  ;;  %517 = vmatmul.f32.gmra.mxu0 %v516_v33  ;;  %v6671_v3 = vand.u32 4294901760, %v4380_v35 }
  0x98   : > { %v4748_v14 = vpop.f32.mrf.mxu1 }
  0x9b   : > { %1006 = vmatmul.f32.vlgmr.msrb.gmra.mxu3 %v6669_v4  ;;  %1366 = vmatmul.f32.vlgmr.msrb.gmra.mxu1 %v4358_v21 }
  0x9c   : > { %v4753_v17 = vpop.f32.mrf.mxu0 }
  0x9e   : > { %v741_v5 = vpop.f32.mrf.mxu3 }
  0x9f   : > { %826 = vmatmul.f32.vlgmr.msrb.gmra.mxu2 %v4369_v28  ;;  %1219 = vmatmul.f32.vlgmr.msrb.gmra.mxu0 %v4358_v21 }
  0xa0   : > { %v4757_v37 = vpop.f32.mrf.mxu1 }
  0xa2   : > { %v526_v0 = vpop.f32.mrf.mxu2 }
  0xa3   : > { %v4759_v10 = vadd.f32 %v741_v5, %v526_v0  ;;  %1012 = vmatmul.f32.gmra.mxu3 %v6671_v3  ;;  %1370 = vmatmul.f32.gmra.mxu1 %v4372_v30  ;;  %v6673_v5 = vand.u32 4294901760, %v4409_v49 }
  0xa4   : > { %v4764_v33 = vpop.f32.mrf.mxu0 }
  0xa5   : > { %6670 = vst [vmem:[#allocation17_spill] sm:$0xff] %v4759_v10 }
  0xa6   : > { %v745_v4 = vpop.f32.mrf.mxu3 }
  0xa7   : > { %831 = vmatmul.f32.gmra.mxu2 %v4380_v35  ;;  %1223 = vmatmul.f32.gmra.mxu0 %v4372_v30 }
  0xa8   : > { %v4768_v28 = vpop.f32.mrf.mxu1 }
  0xaa   : > { %v534_v21 = vpop.f32.mrf.mxu2 }
  0xab   : > { %v4770_v43 = vadd.f32 %v745_v4, %v534_v21  ;;  %1018 = vmatmul.f32.gmra.mxu3 %v6673_v5  ;;  %1374 = vmatmul.f32.gmra.mxu1 %v4391_v39  ;;  %v6675_v4 = vand.u32 4294901760, %v4433_v63 }
  0xac   : > { %v4775_v0 = vpop.f32.mrf.mxu0 }
  0xad   : > { %6672 = vst [vmem:[#allocation18_spill] sm:$0xff] %v4770_v43  ;;  %v6696_v43 = vand.u32 4294901760, %v4713_v48 }
  0xae   : > { %v749_v3 = vpop.f32.mrf.mxu3 }
  0xaf   : > { %836 = vmatmul.f32.gmra.mxu2 %v4409_v49  ;;  %1227 = vmatmul.f32.gmra.mxu0 %v4391_v39 }
  0xb0   : > { %v4779_v35 = vpop.f32.mrf.mxu1 }
  0xb2   : > { %v542_v30 = vpop.f32.mrf.mxu2 }
  0xb3   : > { %v4781_v7 = vadd.f32 %v749_v3, %v542_v30  ;;  %1024 = vmatmul.f32.gmra.mxu3 %v6675_v4  ;;  %1378 = vmatmul.f32.gmra.mxu1 %v4418_v56  ;;  %v6677_v3 = vand.u32 4294901760, %v4457_v13 }
  0xb4   : > { %v4786_v21 = vpop.f32.mrf.mxu0 }
  0xb5   : > { %6674 = vst [vmem:[#allocation19_spill] sm:$0xff] %v4781_v7 }
  0xb6   : > { %v753_v5 = vpop.f32.mrf.mxu3 }
  0xb7   : > { %841 = vmatmul.f32.gmra.mxu2 %v4433_v63  ;;  %1231 = vmatmul.f32.gmra.mxu0 %v4418_v56 }
  0xb8   : > { %v4790_v49 = vpop.f32.mrf.mxu1 }
  0xba   : > { %v550_v39 = vpop.f32.mrf.mxu2 }
  0xbb   : > { %v4792_v36 = vadd.f32 %v753_v5, %v550_v39  ;;  %1030 = vmatmul.f32.gmra.mxu3 %v6677_v3  ;;  %1382 = vmatmul.f32.gmra.mxu1 %v4442_v6  ;;  %v6679_v5 = vand.u32 4294901760, %v4480_v38 }
  0xbc   : > { %v4797_v30 = vpop.f32.mrf.mxu0 }
  0xbd   : > { %6676 = vst [vmem:[#allocation20_spill] sm:$0xff] %v4792_v36 }
  0xbe   : > { %v757_v4 = vpop.f32.mrf.mxu3 }
  0xbf   : > { %846 = vmatmul.f32.gmra.mxu2 %v4457_v13  ;;  %1235 = vmatmul.f32.gmra.mxu0 %v4442_v6 }
  0xc0   : > { %v4801_v63 = vpop.f32.mrf.mxu1 }
  0xc2   : > { %v558_v56 = vpop.f32.mrf.mxu2 }
  0xc3   : > { %v4803_v7 = vadd.f32 %v757_v4, %v558_v56  ;;  %1036 = vmatmul.f32.gmra.mxu3 %v6679_v5  ;;  %1386 = vmatmul.f32.gmra.mxu1 %v4466_v23  ;;  %v6681_v4 = vand.u32 4294901760, %v4505_v62 }
  0xc4   : > { %v4808_v39 = vpop.f32.mrf.mxu0 }
  0xc5   : > { %6678 = vst [vmem:[#allocation21_spill] sm:$0xff] %v4803_v7 }
  0xc6   : > { %v761_v3 = vpop.f32.mrf.mxu3 }
  0xc7   : > { %851 = vmatmul.f32.gmra.mxu2 %v4480_v38  ;;  %1239 = vmatmul.f32.gmra.mxu0 %v4466_v23 }
  0xc8   : > { %v4812_v13 = vpop.f32.mrf.mxu1 }
  0xca   : > { %v566_v6 = vpop.f32.mrf.mxu2 }
  0xcb   : > { %v4814_v36 = vadd.f32 %v761_v3, %v566_v6  ;;  %1042 = vmatmul.f32.gmra.mxu3 %v6681_v4  ;;  %1390 = vmatmul.f32.gmra.mxu1 %v4490_v50  ;;  %v6683_v3 = vand.u32 4294901760, %v4529_v29 }
  0xcc   : > { %v4819_v56 = vpop.f32.mrf.mxu0 }
  0xcd   : > { %6680 = vst [vmem:[#allocation22_spill] sm:$0xff] %v4814_v36 }
  0xce   : > { %v765_v5 = vpop.f32.mrf.mxu3 }
  0xcf   : > { %856 = vmatmul.f32.gmra.mxu2 %v4505_v62  ;;  %1243 = vmatmul.f32.gmra.mxu0 %v4490_v50 }
  0xd0   : > { %v4823_v38 = vpop.f32.mrf.mxu1 }
  0xd2   : > { %v574_v23 = vpop.f32.mrf.mxu2 }
  0xd3   : > { %v4825_v7 = vadd.f32 %v765_v5, %v574_v23  ;;  %1048 = vmatmul.f32.gmra.mxu3 %v6683_v3  ;;  %1394 = vmatmul.f32.gmra.mxu1 %v4514_v11  ;;  %v6685_v5 = vand.u32 4294901760, %v4552_v8 }
  0xd4   : > { %v4830_v6 = vpop.f32.mrf.mxu0 }
  0xd5   : > { %6682 = vst [vmem:[#allocation23_spill] sm:$0xff] %v4825_v7 }
  0xd6   : > { %v769_v4 = vpop.f32.mrf.mxu3 }
  0xd7   : > { %861 = vmatmul.f32.gmra.mxu2 %v4529_v29  ;;  %1247 = vmatmul.f32.gmra.mxu0 %v4514_v11 }
  0xd8   : > { %v4834_v62 = vpop.f32.mrf.mxu1 }
  0xda   : > { %v582_v50 = vpop.f32.mrf.mxu2 }
  0xdb   : > { %v4836_v36 = vadd.f32 %v769_v4, %v582_v50  ;;  %1054 = vmatmul.f32.gmra.mxu3 %v6685_v5  ;;  %1398 = vmatmul.f32.gmra.mxu1 %v4538_v54  ;;  %v6687_v4 = vand.u32 4294901760, %v4577_v44 }
  0xdc   : > { %v4841_v23 = vpop.f32.mrf.mxu0 }
  0xdd   : > { %6684 = vst [vmem:[#allocation24_spill] sm:$0xff] %v4836_v36 }
  0xde   : > { %v773_v3 = vpop.f32.mrf.mxu3 }
  0xdf   : > { %866 = vmatmul.f32.gmra.mxu2 %v4552_v8  ;;  %1251 = vmatmul.f32.gmra.mxu0 %v4538_v54 }
  0xe0   : > { %v4845_v29 = vpop.f32.mrf.mxu1 }
  0xe2   : > { %v590_v11 = vpop.f32.mrf.mxu2 }
  0xe3   : > { %v4847_v7 = vadd.f32 %v773_v3, %v590_v11  ;;  %1060 = vmatmul.f32.gmra.mxu3 %v6687_v4  ;;  %1402 = vmatmul.f32.gmra.mxu1 %v4562_v41  ;;  %v6689_v3 = vand.u32 4294901760, %v4601_v32 }
  0xe4   : > { %v4852_v50 = vpop.f32.mrf.mxu0 }
  0xe5   : > { %6686 = vst [vmem:[#allocation25_spill] sm:$0xff] %v4847_v7 }
  0xe6   : > { %v777_v5 = vpop.f32.mrf.mxu3 }
  0xe7   : > { %871 = vmatmul.f32.gmra.mxu2 %v4577_v44  ;;  %1255 = vmatmul.f32.gmra.mxu0 %v4562_v41 }
  0xe8   : > { %v4856_v8 = vpop.f32.mrf.mxu1 }
  0xea   : > { %v598_v54 = vpop.f32.mrf.mxu2 }
  0xeb   : > { %v4858_v36 = vadd.f32 %v777_v5, %v598_v54  ;;  %1066 = vmatmul.f32.gmra.mxu3 %v6689_v3  ;;  %1406 = vmatmul.f32.gmra.mxu1 %v4586_v51  ;;  %v6691_v5 = vand.u32 4294901760, %v4624_v57 }
  0xec   : > { %v4863_v11 = vpop.f32.mrf.mxu0 }
  0xed   : > { %6688 = vst [vmem:[#allocation26_spill] sm:$0xff] %v4858_v36 }
  0xee   : > { %v781_v4 = vpop.f32.mrf.mxu3 }
  0xef   : > { %876 = vmatmul.f32.gmra.mxu2 %v4601_v32  ;;  %1259 = vmatmul.f32.gmra.mxu0 %v4586_v51 }
  0xf0   : > { %v4867_v44 = vpop.f32.mrf.mxu1 }
  0xf2   : > { %v606_v41 = vpop.f32.mrf.mxu2 }
  0xf3   : > { %v4869_v7 = vadd.f32 %v781_v4, %v606_v41  ;;  %1072 = vmatmul.f32.gmra.mxu3 %v6691_v5  ;;  %1410 = vmatmul.f32.gmra.mxu1 %v4610_v25  ;;  %v6693_v4 = vand.u32 4294901760, %v4649_v40 }
  0xf4   : > { %v4874_v54 = vpop.f32.mrf.mxu0 }
  0xf5   : > { %6690 = vst [vmem:[#allocation27_spill] sm:$0xff] %v4869_v7  ;;  %v6695_v7 = vand.u32 4294901760, %v4673_v1 }
  0xf6   : > { %v785_v3 = vpop.f32.mrf.mxu3 }
  0xf7   : > { %881 = vmatmul.f32.gmra.mxu2 %v4624_v57  ;;  %1263 = vmatmul.f32.gmra.mxu0 %v4610_v25  ;;  %v235_v25 = vld [vmem:[%s6445_s1] sm:$0xff] }
  0xf8   : > { %v4878_v32 = vpop.f32.mrf.mxu1 }
  0xfa   : > { %v614_v51 = vpop.f32.mrf.mxu2 }
  0xfb   : > { %v4880_v36 = vadd.f32 %v785_v3, %v614_v51  ;;  %1078 = vmatmul.f32.gmra.mxu3 %v6693_v4  ;;  %1414 = vmatmul.f32.gmra.mxu1 %v4634_v12  ;;  %v1609_v3 = vand.u32 4294901760, %v235_v25 }
  0xfc   : > { %v4885_v41 = vpop.f32.mrf.mxu0 }
  0xfd   : > { %6692 = vst [vmem:[#allocation28_spill] sm:$0xff] %v4880_v36  ;;  %1610 = vmatpush.msra.mxu2 %v1609_v3  ;;  %v1889_v36 = vsub.f32 %v235_v25, %v1609_v3  ;;  %2221 = vmatpush.msra.mxu1 %v1609_v3 }
  0xfe   : > { %v789_v5 = vpop.f32.mrf.mxu3 }
  0xff   : > { %886 = vmatmul.f32.gmra.mxu2 %v4649_v40  ;;  %1267 = vmatmul.f32.gmra.mxu0 %v4634_v12  ;;  %v1890_v12 = vand.u32 4294901760, %v1889_v36 }
 0x100   : > { %v4892_v57 = vpop.f32.mrf.mxu1  ;;  %2042 = vmatpush.msra.mxu0 %v1889_v36  ;;  %2432 = vmatpush.msrb.mxu2 %v6696_v43 }
 0x101   : > { %v1891_v42 = vsub.f32 %v1889_v36, %v1890_v12 }
 0x102   : > { %v622_v51 = vpop.f32.mrf.mxu2  ;;  %2436 = vmatpush.msrb.mxu2 %v1890_v12 }
 0x103   : > { %v4894_v4 = vadd.f32 %v789_v5, %v622_v51  ;;  %1084 = vmatmul.f32.gmra.mxu3 %v6695_v7  ;;  %1418 = vmatmul.f32.gmra.mxu1 %v4658_v18  ;;  %v1892_v25 = vand.u32 4294901760, %v1891_v42 }
 0x104   : > { %v4899_v40 = vpop.f32.mrf.mxu0 }
 0x105   : > { %6694 = vst [vmem:[#allocation29_spill] sm:$0xff] %v4894_v4  ;;  %1893 = vmatpush.msra.mxu3 %v1892_v25  ;;  %v6697_v4 = vand.u32 4294901760, %v4697_v53 }
 0x106   : > { %v793_v10 = vpop.f32.mrf.mxu3 }
 0x107   : > { %891 = vmatmul.f32.gmra.mxu2 %v4673_v1  ;;  %1271 = vmatmul.f32.gmra.mxu0 %v4658_v18 }
 0x108   : > { %v4905_v5 = vpop.f32.mrf.mxu1  ;;  %2581 = vmatpush.msrb.mxu3 %v4704_v22 }
 0x10a   : > { %v630_v7 = vpop.f32.mrf.mxu2  ;;  %2583 = vmatpush.msrb.mxu3 %v1609_v3  ;;  %v6699_v3 = vand.u32 4294901760, %v4363_v26 }
 0x10b   : > { %v4907_v51 = vadd.f32 %v793_v10, %v630_v7  ;;  %1090 = vmatmul.f32.gmra.mxu3 %v6697_v4  ;;  %1422 = vmatmul.f32.gmra.mxu1 %v4682_v61  ;;  %v6698_v10 = vand.u32 4294901760, %v4731_v46 }
 0x10c   : > { %v4912_v48 = vpop.f32.mrf.mxu0 }
 0x10e   : > { %v797_v36 = vpop.f32.mrf.mxu3 }
 0x10f   : > { %896 = vmatmul.f32.gmra.mxu2 %v4697_v53  ;;  %1275 = vmatmul.f32.gmra.mxu0 %v4682_v61 }
 0x110   : > { %v4917_v42 = vpop.f32.mrf.mxu1 }
 0x112   : > { %v638_v1 = vpop.f32.mrf.mxu2 }
 0x113   : > { %v4919_v18 = vadd.f32 %v797_v36, %v638_v1  ;;  %1096 = vmatmul.f32.gmra.mxu3 %v6698_v10  ;;  %1426 = vmatmul.f32.gmra.mxu1 %v4715_v60  ;;  %v6700_v1 = vand.u32 4294901760, %v4366_v27 }
 0x114   : > { %v4924_v43 = vpop.f32.mrf.mxu0 }
 0x116   : > { %v801_v4 = vpop.f32.mrf.mxu3 }
 0x117   : > { %901 = vmatmul.f32.gmra.mxu2 %v4731_v46  ;;  %1279 = vmatmul.f32.gmra.mxu0 %v4715_v60  ;;  %v678_v46 = vadd.f32 %v4748_v14, %v4753_v17 }
 0x118   : > { %v1367_v53 = vpop.f32.mrf.mxu1 }
 0x11a   : > { %v646_v22 = vpop.f32.mrf.mxu2 }
 0x11b   : > { %v4928_v61 = vadd.f32 %v801_v4, %v646_v22  ;;  %1102 = vmatmul.f32.gmra.mxu3 %v6699_v3  ;;  %1430 = vmatmul.f32.gmra.mxu1 %v4354_v19 }
 0x11c   : > { %v1220_v12 = vpop.f32.mrf.mxu0 }
 0x11e   : > { %v1007_v25 = vpop.f32.mrf.mxu3 }
 0x11f   : > { %906 = vmatmul.f32.gmra.mxu2 %v4363_v26  ;;  %1283 = vmatmul.f32.gmra.mxu0 %v4354_v19  ;;  %v682_v26 = vadd.f32 %v4757_v37, %v4764_v33 }
 0x120   : > { %v1371_v7 = vpop.f32.mrf.mxu1 }
 0x122   : > { %v827_v60 = vpop.f32.mrf.mxu2 }
 0x123   : > { %v828_v36 = vadd.f32 %v827_v60, %v678_v46  ;;  %1108 = vmatmul.f32.gmra.mxu3 %v6700_v1  ;;  %1434 = vmatmul.f32.gmra.mxu1 %v4356_v20  ;;  %v6701_v60 = vand.u32 4294901760, %v4397_v45 }
 0x124   : > { %v1224_v10 = vpop.f32.mrf.mxu0 }
 0x125   : > { %v1008_v4 = vadd.f32 %v1007_v25, %v828_v36 }
 0x126   : > { %v1013_v22 = vpop.f32.mrf.mxu3 }
 0x127   : > { %v1221_v3 = vadd.f32 %v1220_v12, %v1008_v4  ;;  %911 = vmatmul.f32.gmra.mxu2 %v4366_v27  ;;  %1287 = vmatmul.f32.gmra.mxu0 %v4356_v20  ;;  %v686_v27 = vadd.f32 %v4768_v28, %v4775_v0  ;;  %v6702_v4 = vand.u32 4294901760, %v4423_v59 }
 0x128   : > { %v1375_v19 = vpop.f32.mrf.mxu1 }
 0x129   : > { %v4944_v14 = vadd.f32 %v1367_v53, %v1221_v3 }
 0x12a   : > { %v832_v17 = vpop.f32.mrf.mxu2 }
 0x12b   : > { %v833_v46 = vadd.f32 %v832_v17, %v682_v26  ;;  %1114 = vmatmul.f32.gmra.mxu3 %v6701_v60  ;;  %1438 = vmatmul.f32.gmra.mxu1 %v4377_v34  ;;  %v6703_v17 = vand.u32 4294901760, %v4447_v9 }
 0x12c   : > { %v1228_v25 = vpop.f32.mrf.mxu0 }
 0x12d   : > { %v1014_v36 = vadd.f32 %v1013_v22, %v833_v46 }
 0x12e   : > { %v1019_v12 = vpop.f32.mrf.mxu3 }
 0x12f   : > { %v1225_v1 = vadd.f32 %v1224_v10, %v1014_v36  ;;  %916 = vmatmul.f32.gmra.mxu2 %v4397_v45  ;;  %1291 = vmatmul.f32.gmra.mxu0 %v4377_v34  ;;  %v690_v45 = vadd.f32 %v4779_v35, %v4786_v21 }
 0x130   : > { %v1379_v20 = vpop.f32.mrf.mxu1 }
 0x131   : > { %v4953_v37 = vadd.f32 %v1371_v7, %v1225_v1 }
 0x132   : > { %v837_v33 = vpop.f32.mrf.mxu2 }
 0x133   : > { %v838_v53 = vadd.f32 %v837_v33, %v686_v27  ;;  %1120 = vmatmul.f32.gmra.mxu3 %v6702_v4  ;;  %1442 = vmatmul.f32.gmra.mxu1 %v4413_v52  ;;  %v6705_v4 = vand.u32 4294901760, %v4498_v58 }
 0x134   : > { %v1232_v22 = vpop.f32.mrf.mxu0 }
 0x135   : > { %v1020_v3 = vadd.f32 %v1019_v12, %v838_v53  ;;  %v6704_v12 = vand.u32 4294901760, %v4474_v31 }
 0x136   : > { %v1025_v10 = vpop.f32.mrf.mxu3 }
 0x137   : > { %v1229_v26 = vadd.f32 %v1228_v25, %v1020_v3  ;;  %921 = vmatmul.f32.gmra.mxu2 %v4423_v59  ;;  %1295 = vmatmul.f32.gmra.mxu0 %v4413_v52  ;;  %v694_v59 = vadd.f32 %v4790_v49, %v4797_v30 }
 0x138   : > { %v1383_v34 = vpop.f32.mrf.mxu1 }
 0x139   : > { %v4962_v28 = vadd.f32 %v1375_v19, %v1229_v26 }
 0x13a   : > { %v842_v0 = vpop.f32.mrf.mxu2 }
 0x13b   : > { %v843_v7 = vadd.f32 %v842_v0, %v690_v45  ;;  %1126 = vmatmul.f32.gmra.mxu3 %v6703_v17  ;;  %1446 = vmatmul.f32.gmra.mxu1 %v4437_v2  ;;  %v6706_v45 = vld [vmem:[#allocation3_spill] sm:$0xff] }
 0x13c   : > { %v1236_v46 = vpop.f32.mrf.mxu0  ;;  %v6707_v0 = vand.u32 4294901760, %v6706_v45 }
 0x13d   : > { %v1026_v60 = vadd.f32 %v1025_v10, %v843_v7  ;;  %v6708_v7 = vld [vmem:[#allocation2_spill] sm:$0xff] }
 0x13e   : > { %v1031_v25 = vpop.f32.mrf.mxu3 }
 0x13f   : > { %v1233_v36 = vadd.f32 %v1232_v22, %v1026_v60  ;;  %926 = vmatmul.f32.gmra.mxu2 %v4447_v9  ;;  %1299 = vmatmul.f32.gmra.mxu0 %v4437_v2  ;;  %v698_v9 = vadd.f32 %v4801_v63, %v4808_v39 }
 0x140   : > { %v1387_v52 = vpop.f32.mrf.mxu1 }
 0x141   : > { %v4971_v35 = vadd.f32 %v1379_v20, %v1233_v36 }
 0x142   : > { %v847_v21 = vpop.f32.mrf.mxu2 }
 0x143   : > { %v848_v19 = vadd.f32 %v847_v21, %v694_v59  ;;  %1132 = vmatmul.f32.gmra.mxu3 %v6704_v12  ;;  %1450 = vmatmul.f32.gmra.mxu1 %v4461_v16  ;;  %v6711_v21 = vld [vmem:[#allocation4_spill] sm:$0xff] }
 0x144   : > { %v1240_v1 = vpop.f32.mrf.mxu0 }
 0x145   : > { %v1032_v27 = vadd.f32 %v1031_v25, %v848_v19 }
 0x146   : > { %v1037_v33 = vpop.f32.mrf.mxu3 }
 0x147   : > { %v1237_v53 = vadd.f32 %v1236_v46, %v1032_v27  ;;  %931 = vmatmul.f32.gmra.mxu2 %v4474_v31  ;;  %1303 = vmatmul.f32.gmra.mxu0 %v4461_v16  ;;  %v702_v31 = vadd.f32 %v4812_v13, %v4819_v56 }
 0x148   : > { %v1391_v2 = vpop.f32.mrf.mxu1 }
 0x149   : > { %v4980_v49 = vadd.f32 %v1383_v34, %v1237_v53 }
 0x14a   : > { %v852_v30 = vpop.f32.mrf.mxu2 }
 0x14b   : > { %v853_v20 = vadd.f32 %v852_v30, %v698_v9  ;;  %1138 = vmatmul.f32.gmra.mxu3 %v6705_v4  ;;  %1454 = vmatmul.f32.gmra.mxu1 %v4487_v47  ;;  %v6712_v9 = vld [vmem:[#allocation7_spill] sm:$0xff] }
 0x14c   : > { %v1244_v22 = vpop.f32.mrf.mxu0  ;;  %v6713_v30 = vand.u32 4294901760, %v6712_v9 }
 0x14d   : > { %v1038_v3 = vadd.f32 %v1037_v33, %v853_v20  ;;  %v6714_v20 = vld [vmem:[#allocation6_spill] sm:$0xff] }
 0x14e   : > { %v1043_v10 = vpop.f32.mrf.mxu3 }
 0x14f   : > { %v1241_v26 = vadd.f32 %v1240_v1, %v1038_v3  ;;  %936 = vmatmul.f32.gmra.mxu2 %v4498_v58  ;;  %1307 = vmatmul.f32.gmra.mxu0 %v4487_v47  ;;  %v706_v58 = vadd.f32 %v4823_v38, %v4830_v6  ;;  %v710_v38 = vadd.f32 %v4834_v62, %v4841_v23 }
 0x150   : > { %v1395_v16 = vpop.f32.mrf.mxu1  ;;  %v714_v62 = vadd.f32 %v4845_v29, %v4852_v50  ;;  %v718_v29 = vadd.f32 %v4856_v8, %v4863_v11  ;;  %v722_v8 = vadd.f32 %v4867_v44, %v4874_v54  ;;  %v726_v44 = vadd.f32 %v4878_v32, %v4885_v41 }
 0x151   : > { %v4989_v63 = vadd.f32 %v1387_v52, %v1241_v26  ;;  %v6709_v52 = vld [vmem:[#allocation5_spill] sm:$0xff] }
 0x152   : > { %v857_v39 = vpop.f32.mrf.mxu2  ;;  %v6710_v59 = vand.u32 4294901760, %v6709_v52 }
 0x153   : > { %v858_v34 = vadd.f32 %v857_v39, %v702_v31  ;;  %1144 = vmatmul.f32.gmra.mxu3 %v6707_v0  ;;  %1458 = vmatmul.f32.gmra.mxu1 %v6708_v7  ;;  %v6715_v39 = vld [vmem:[#allocation9_spill] sm:$0xff] }
 0x154   : > { %v1248_v17 = vpop.f32.mrf.mxu0 }
 0x155   : > { %v1044_v46 = vadd.f32 %v1043_v10, %v858_v34  ;;  %v6716_v34 = vand.u32 4294901760, %v6715_v39 }
 0x156   : > { %v1049_v60 = vpop.f32.mrf.mxu3 }
 0x157   : > { %v1245_v25 = vadd.f32 %v1244_v22, %v1044_v46  ;;  %941 = vmatmul.f32.gmra.mxu2 %v6706_v45  ;;  %1311 = vmatmul.f32.gmra.mxu0 %v6708_v7  ;;  %v6717_v45 = vld [vmem:[#allocation8_spill] sm:$0xff] }
 0x158   : > { %v1399_v47 = vpop.f32.mrf.mxu1 }
 0x159   : > { %v4998_v13 = vadd.f32 %v1391_v2, %v1245_v25 }
 0x15a   : > { %v862_v56 = vpop.f32.mrf.mxu2 }
 0x15b   : > { %v863_v36 = vadd.f32 %v862_v56, %v706_v58  ;;  %1150 = vmatmul.f32.gmra.mxu3 %v6710_v59  ;;  %1462 = vmatmul.f32.gmra.mxu1 %v6711_v21  ;;  %v6718_v58 = vld [vmem:[#allocation11_spill] sm:$0xff] }
 0x15c   : > { %v1252_v19 = vpop.f32.mrf.mxu0  ;;  %v6719_v56 = vand.u32 4294901760, %v6718_v58 }
 0x15d   : > { %v1050_v12 = vadd.f32 %v1049_v60, %v863_v36  ;;  %v6720_v36 = vld [vmem:[#allocation10_spill] sm:$0xff] }
 0x15e   : > { %v1055_v1 = vpop.f32.mrf.mxu3 }
 0x15f   : > { %v1249_v27 = vadd.f32 %v1248_v17, %v1050_v12  ;;  %946 = vmatmul.f32.gmra.mxu2 %v6709_v52  ;;  %1315 = vmatmul.f32.gmra.mxu0 %v6711_v21 }
 0x160   : > { %v1403_v33 = vpop.f32.mrf.mxu1 }
 0x161   : > { %v5007_v6 = vadd.f32 %v1395_v16, %v1249_v27 }
 0x162   : > { %v867_v53 = vpop.f32.mrf.mxu2 }
 0x163   : > { %v868_v2 = vadd.f32 %v867_v53, %v710_v38  ;;  %1156 = vmatmul.f32.gmra.mxu3 %v6713_v30  ;;  %1466 = vmatmul.f32.gmra.mxu1 %v6714_v20  ;;  %v6723_v53 = vld [vmem:[#allocation12_spill] sm:$0xff] }
 0x164   : > { %v1256_v4 = vpop.f32.mrf.mxu0 }
 0x165   : > { %v1056_v22 = vadd.f32 %v1055_v1, %v868_v2 }
 0x166   : > { %v1061_v3 = vpop.f32.mrf.mxu3 }
 0x167   : > { %v1253_v10 = vadd.f32 %v1252_v19, %v1056_v22  ;;  %951 = vmatmul.f32.gmra.mxu2 %v6712_v9  ;;  %1319 = vmatmul.f32.gmra.mxu0 %v6714_v20 }
 0x168   : > { %v1407_v26 = vpop.f32.mrf.mxu1 }
 0x169   : > { %v5016_v23 = vadd.f32 %v1399_v47, %v1253_v10  ;;  %v6724_v10 = vld [vmem:[#allocation15_spill] sm:$0xff] }
 0x16a   : > { %v872_v16 = vpop.f32.mrf.mxu2 }
 0x16b   : > { %v873_v31 = vadd.f32 %v872_v16, %v714_v62  ;;  %1162 = vmatmul.f32.gmra.mxu3 %v6716_v34  ;;  %1470 = vmatmul.f32.gmra.mxu1 %v6717_v45  ;;  %v6726_v62 = vld [vmem:[#allocation14_spill] sm:$0xff] }
 0x16c   : > { %v1260_v0 = vpop.f32.mrf.mxu0 }
 0x16d   : > { %v1062_v7 = vadd.f32 %v1061_v3, %v873_v31 }
 0x16e   : > { %v1067_v17 = vpop.f32.mrf.mxu3 }
 0x16f   : > { %v1257_v46 = vadd.f32 %v1256_v4, %v1062_v7  ;;  %956 = vmatmul.f32.gmra.mxu2 %v6715_v39  ;;  %1323 = vmatmul.f32.gmra.mxu0 %v6717_v45  ;;  %v203_v39 = vld [vmem:[%s4343_s23] sm:$0xff] }
 0x170   : > { %v1411_v60 = vpop.f32.mrf.mxu1  ;;  %v1495_v41 = vsel %vm273_vm1, %v203_v39, 0 }
 0x171   : > { %v5025_v50 = vadd.f32 %v1403_v33, %v1257_v46  ;;  %v6721_v33 = vld [vmem:[#allocation13_spill] sm:$0xff] }
 0x172   : > { %v877_v25 = vpop.f32.mrf.mxu2  ;;  %v6722_v38 = vand.u32 4294901760, %v6721_v33 }
 0x173   : > { %v878_v47 = vadd.f32 %v877_v25, %v718_v29  ;;  %1168 = vmatmul.f32.gmra.mxu3 %v6719_v56  ;;  %1474 = vmatmul.f32.gmra.mxu1 %v6720_v36  ;;  %v6727_v25 = vand.u32 4294901760, %v4690_v15  ;;  %v204_v56 = vld [vmem:[%s4343_s23 + $0x8] sm:$0xff] }
 0x174   : > { %v1264_v52 = vpop.f32.mrf.mxu0 }
 0x175   : > { %v1068_v59 = vadd.f32 %v1067_v17, %v878_v47  ;;  %v4230_v17 = vld [vmem:[%s6445_s1 + $0x28] sm:$0xf]  ;;  %v5063_v47 = vand.u32 4294901760, %v1495_v41 }
 0x176   : > { %v1073_v21 = vpop.f32.mrf.mxu3 }
 0x177   : > { %v1261_v19 = vadd.f32 %v1260_v0, %v1068_v59  ;;  %961 = vmatmul.f32.gmra.mxu2 %v6718_v58  ;;  %1327 = vmatmul.f32.gmra.mxu0 %v6720_v36  ;;  %v730_v0 = vadd.f32 %v4892_v57, %v4899_v40 }
 0x178   : > { %v1415_v12 = vpop.f32.mrf.mxu1 }
 0x179   : > { %v5034_v11 = vadd.f32 %v1407_v26, %v1261_v19  ;;  %v6725_v26 = vand.u32 4294901760, %v6724_v10 }
 0x17a   : > { %v882_v1 = vpop.f32.mrf.mxu2 }
 0x17b   : > { %v883_v27 = vadd.f32 %v882_v1, %v722_v8  ;;  %1174 = vmatmul.f32.gmra.mxu3 %v6722_v38  ;;  %1478 = vmatmul.f32.gmra.mxu1 %v6723_v53  ;;  %v1498_v8 = vsel %vm273_vm1, %v204_v56, 0  ;;  %v734_v1 = vadd.f32 %v4905_v5, %v4912_v48  ;;  %v205_v5 = vld [vmem:[%s4343_s23 + $0x10] sm:$0xff] }
 0x17c   : > { %v1268_v2 = vpop.f32.mrf.mxu0 }
 0x17d   : > { %v1074_v9 = vadd.f32 %v1073_v21, %v883_v27  ;;  %v1612_v21 = vsub.f32 %v1495_v41, %v5063_v47 }
 0x17e   : > { %v1079_v30 = vpop.f32.mrf.mxu3 }
 0x17f   : > { %v1265_v20 = vadd.f32 %v1264_v52, %v1074_v9  ;;  %966 = vmatmul.f32.gmra.mxu2 %v6721_v33  ;;  %1331 = vmatmul.f32.gmra.mxu0 %v6723_v53  ;;  %v1613_v53 = vand.u32 4294901760, %v1612_v21  ;;  %v5087_v9 = vand.u32 4294901760, %v1498_v8 }
 0x180   : > { %v1419_v4 = vpop.f32.mrf.mxu1 }
 0x181   : > { %v5043_v54 = vadd.f32 %v1411_v60, %v1265_v20  ;;  %v2846_v60 = vsel %vm370_vm0, %v4230_v17, 0  ;;  %v206_v17 = vld [vmem:[%s4343_s23 + $0x18] sm:$0xff] }
 0x182   : > { %v887_v22 = vpop.f32.mrf.mxu2  ;;  %v5065_v58 = vand.u32 4294901760, %v2846_v60 }
 0x183   : > { %v888_v3 = vadd.f32 %v887_v22, %v726_v44  ;;  %1180 = vmatmul.f32.gmra.mxu3 %v6725_v26  ;;  %1482 = vmatmul.f32.gmra.mxu1 %v6726_v62  ;;  %v1614_v22 = vsub.f32 %v1612_v21, %v1613_v53  ;;  %v1501_v26 = vsel %vm273_vm1, %v205_v5, 0 }
 0x184   : > { %v1272_v16 = vpop.f32.mrf.mxu0  ;;  %2863 = vmatpush.msrb.mxu0 %v5065_v58  ;;  %v5070_v36 = vsub.f32 %v2846_v60, %v5065_v58 }
 0x185   : > { %v1080_v31 = vadd.f32 %v1079_v30, %v888_v3  ;;  %v1620_v3 = vsub.f32 %v1498_v8, %v5087_v9 }
 0x186   : > { %v1085_v34 = vpop.f32.mrf.mxu3  ;;  %v6511_v19 = vand.u32 4294901760, %v5070_v36 }
 0x187   : > { %v1269_v45 = vadd.f32 %v1268_v2, %v1080_v31  ;;  %971 = vmatmul.f32.gmra.mxu2 %v6724_v10  ;;  %1335 = vmatmul.f32.gmra.mxu0 %v6726_v62  ;;  %v6729_v2 = vld [vmem:[#allocation16_spill] sm:$0xff]  ;;  %v738_v62 = vadd.f32 %v4917_v42, %v4924_v43 }
 0x188   : > { %v1423_v32 = vpop.f32.mrf.mxu1  ;;  %v3140_v33 = vsub.f32 %v5070_v36, %v6511_v19 }
 0x189   : > { %v5054_v7 = vadd.f32 %v1415_v12, %v1269_v45  ;;  %v5099_v45 = vand.u32 4294901760, %v1501_v26 }
 0x18a   : > { %v892_v46 = vpop.f32.mrf.mxu2  ;;  %v3141_v30 = vand.u32 4294901760, %v3140_v33  ;;  %v207_v33 = vld [vmem:[%s4343_s23 + $0x20] sm:$0xff] }
 0x18b   : > { %v893_v29 = vadd.f32 %v892_v46, %v730_v0  ;;  %1186 = vmatmul.f32.gmra.mxu3 %v6727_v25  ;;  %1486 = vmatmul.f32.gmra.mxu1 %v4677_v24  ;;  %v1628_v43 = vsub.f32 %v1501_v26, %v5099_v45 }
 0x18c   : > { %v1276_v57 = vpop.f32.mrf.mxu0  ;;  %3142 = vmatpush.msrb.mxu1 %v3141_v30 }
 0x18d   : > { %v1086_v40 = vadd.f32 %v1085_v34, %v893_v29  ;;  %v1615_v34 = vand.u32 4294901760, %v1614_v22  ;;  %v1504_v29 = vsel %vm273_vm1, %v206_v17, 0 }
 0x18e   : > { %v1091_v52 = vpop.f32.mrf.mxu3  ;;  %v5110_v8 = vand.u32 4294901760, %v1504_v29 }
 0x18f   : > { %v1273_v59 = vadd.f32 %v1272_v16, %v1086_v40  ;;  %976 = vmatmul.f32.gmra.mxu2 %v4690_v15  ;;  %1339 = vmatmul.f32.gmra.mxu0 %v4677_v24  ;;  %v6728_v24 = vand.u32 4294901760, %v4725_v55  ;;  %v6730_v40 = vld [vmem:[#allocation17_spill] sm:$0xff] }
 0x190   : > { %v1427_v12 = vpop.f32.mrf.mxu1 }
 0x191   : > { %v5079_v27 = vadd.f32 %v1419_v4, %v1273_v59  ;;  %v1629_v59 = vand.u32 4294901760, %v1628_v43 }
 0x192   : > { %v897_v15 = vpop.f32.mrf.mxu2 }
 0x193   : > { %v898_v38 = vadd.f32 %v897_v15, %v734_v1  ;;  %1192 = vmatmul.f32.gmra.mxu3 %v6728_v24  ;;  %1490 = vmatmul.f32.gmra.mxu1 %v6729_v2  ;;  %v1630_v24 = vsub.f32 %v1628_v43, %v1629_v59 }
 0x194   : > { %v1280_v20 = vpop.f32.mrf.mxu0 }
 0x195   : > { %v1092_v44 = vadd.f32 %v1091_v52, %v898_v38 }
 0x196   : > { %v1097_v48 = vpop.f32.mrf.mxu3 }
 0x197   : > { %v1277_v4 = vadd.f32 %v1276_v57, %v1092_v44  ;;  %981 = vmatmul.f32.gmra.mxu2 %v4725_v55  ;;  %1343 = vmatmul.f32.gmra.mxu0 %v6729_v2  ;;  %v1621_v55 = vand.u32 4294901760, %v1620_v3  ;;  %v1507_v2 = vsel %vm273_vm1, %v207_v33, 0  ;;  %v6731_v44 = vld [vmem:[#allocation18_spill] sm:$0xff] }
 0x198   : > { %v1431_v10 = vpop.f32.mrf.mxu1  ;;  %v5119_v22 = vand.u32 4294901760, %v1507_v2 }
 0x199   : > { %v5096_v16 = vadd.f32 %v1423_v32, %v1277_v4  ;;  %v1622_v42 = vsub.f32 %v1620_v3, %v1621_v55 }
 0x19a   : > { %v902_v31 = vpop.f32.mrf.mxu2 }
 0x19b   : > { %v903_v39 = vadd.f32 %v902_v31, %v738_v62  ;;  %1895 = vmatmul.f32.vlgmr.msra.gmra.mxu3 %v5063_v47  ;;  %2225 = vmatmul.f32.vlgmr.msra.gmra.mxu1 %v1613_v53  ;;  %v1623_v52 = vand.u32 4294901760, %v1622_v42 }
 0x19c   : > { %v1284_v41 = vpop.f32.mrf.mxu0  ;;  %3474 = vmatpush.msra.mxu3 %v5065_v58 }
 0x19d   : > { %v1098_v0 = vadd.f32 %v1097_v48, %v903_v39  ;;  %v1631_v48 = vand.u32 4294901760, %v1630_v24  ;;  %v6733_v24 = vld [vmem:[#allocation20_spill] sm:$0xff] }
 0x19e   : > { %v1103_v46 = vpop.f32.mrf.mxu3 }
 0x19f   : > { %v1281_v60 = vadd.f32 %v1280_v20, %v1098_v0  ;;  %1616 = vmatmul.f32.vlgmr.msra.gmra.mxu2 %v1615_v34  ;;  %2045 = vmatmul.f32.vlgmr.msra.gmra.mxu0 %v1612_v21 }
 0x1a0   : > { %v1435_v32 = vpop.f32.mrf.mxu1  ;;  %3294 = vmatpush.msra.mxu2 %v5070_v36 }
 0x1a1   : > { %v5106_v25 = vadd.f32 %v1427_v12, %v1281_v60  ;;  %v1636_v12 = vsub.f32 %v1504_v29, %v5110_v8 }
 0x1a2   : > { %v907_v57 = vpop.f32.mrf.mxu2 }
 0x1a3   : > { %v908_v56 = vadd.f32 %v907_v57, %v6730_v40  ;;  %1899 = vmatmul.f32.gmra.mxu3 %v5087_v9  ;;  %2231 = vmatmul.f32.gmra.mxu1 %v1621_v55  ;;  %v1637_v4 = vand.u32 4294901760, %v1636_v12 }
 0x1a4   : > { %v1288_v21 = vpop.f32.mrf.mxu0 }
 0x1a5   : > { %v1104_v1 = vadd.f32 %v1103_v46, %v908_v56  ;;  %v1638_v34 = vsub.f32 %v1636_v12, %v1637_v4  ;;  %v6732_v46 = vld [vmem:[#allocation19_spill] sm:$0xff] }
 0x1a6   : > { %v1109_v15 = vpop.f32.mrf.mxu3 }
 0x1a7   : > { %v1285_v38 = vadd.f32 %v1284_v41, %v1104_v1  ;;  %1624 = vmatmul.f32.gmra.mxu2 %v1623_v52  ;;  %2050 = vmatmul.f32.gmra.mxu0 %v1620_v3  ;;  %v208_v3 = vld [vmem:[%s4343_s23 + $0x28] sm:$0xff]  ;;  %v1639_v42 = vand.u32 4294901760, %v1638_v34 }
 0x1a8   : > { %v1439_v53 = vpop.f32.mrf.mxu1  ;;  %v1510_v41 = vsel %vm273_vm1, %v208_v3, 0 }
 0x1a9   : > { %v5115_v30 = vadd.f32 %v1431_v10, %v1285_v38  ;;  %v1644_v10 = vsub.f32 %v1507_v2, %v5119_v22  ;;  %v5128_v57 = vand.u32 4294901760, %v1510_v41 }
 0x1aa   : > { %v912_v20 = vpop.f32.mrf.mxu2 }
 0x1ab   : > { %v913_v5 = vadd.f32 %v912_v20, %v6731_v44  ;;  %1903 = vmatmul.f32.gmra.mxu3 %v5099_v45  ;;  %2237 = vmatmul.f32.gmra.mxu1 %v1629_v59  ;;  %v1645_v29 = vand.u32 4294901760, %v1644_v10 }
 0x1ac   : > { %v1292_v26 = vpop.f32.mrf.mxu0 }
 0x1ad   : > { %v1110_v62 = vadd.f32 %v1109_v15, %v913_v5 }
 0x1ae   : > { %v1115_v31 = vpop.f32.mrf.mxu3 }
 0x1af   : > { %v1289_v39 = vadd.f32 %v1288_v21, %v1110_v62  ;;  %1632 = vmatmul.f32.gmra.mxu2 %v1631_v48  ;;  %2055 = vmatmul.f32.gmra.mxu0 %v1628_v43  ;;  %v209_v43 = vld [vmem:[%s4343_s23 + $0x30] sm:$0xff]  ;;  %v1646_v21 = vsub.f32 %v1644_v10, %v1645_v29 }
 0x1b0   : > { %v1443_v55 = vpop.f32.mrf.mxu1  ;;  %v1513_v33 = vsel %vm273_vm1, %v209_v43, 0 }
 0x1b1   : > { %v5124_v0 = vadd.f32 %v1435_v32, %v1289_v39  ;;  %v1652_v32 = vsub.f32 %v1510_v41, %v5128_v57  ;;  %v1647_v20 = vand.u32 4294901760, %v1646_v21  ;;  %v5137_v5 = vand.u32 4294901760, %v1513_v33 }
 0x1b2   : > { %v917_v17 = vpop.f32.mrf.mxu2 }
 0x1b3   : > { %v918_v60 = vadd.f32 %v917_v17, %v6732_v46  ;;  %1907 = vmatmul.f32.gmra.mxu3 %v5110_v8  ;;  %2243 = vmatmul.f32.gmra.mxu1 %v1637_v4  ;;  %v1653_v44 = vand.u32 4294901760, %v1652_v32  ;;  %v6734_v17 = vld [vmem:[#allocation21_spill] sm:$0xff] }
 0x1b4   : > { %v1296_v40 = vpop.f32.mrf.mxu0 }
 0x1b5   : > { %v1116_v56 = vadd.f32 %v1115_v31, %v918_v60  ;;  %v1654_v3 = vsub.f32 %v1652_v32, %v1653_v44 }
 0x1b6   : > { %v1121_v52 = vpop.f32.mrf.mxu3 }
 0x1b7   : > { %v1293_v59 = vadd.f32 %v1292_v26, %v1116_v56  ;;  %1640 = vmatmul.f32.gmra.mxu2 %v1639_v42  ;;  %2060 = vmatmul.f32.gmra.mxu0 %v1636_v12  ;;  %v210_v12 = vld [vmem:[%s4343_s23 + $0x38] sm:$0xff]  ;;  %v1655_v60 = vand.u32 4294901760, %v1654_v3 }
 0x1b8   : > { %v1447_v1 = vpop.f32.mrf.mxu1  ;;  %v1516_v39 = vsel %vm273_vm1, %v210_v12, 0 }
 0x1b9   : > { %v5133_v15 = vadd.f32 %v1439_v53, %v1293_v59  ;;  %v1660_v53 = vsub.f32 %v1513_v33, %v5137_v5 }
 0x1ba   : > { %v922_v38 = vpop.f32.mrf.mxu2 }
 0x1bb   : > { %v923_v2 = vadd.f32 %v922_v38, %v6733_v24  ;;  %1911 = vmatmul.f32.gmra.mxu3 %v5119_v22  ;;  %2249 = vmatmul.f32.gmra.mxu1 %v1645_v29  ;;  %v1661_v42 = vand.u32 4294901760, %v1660_v53  ;;  %v5146_v29 = vand.u32 4294901760, %v1516_v39 }
 0x1bc   : > { %v1300_v48 = vpop.f32.mrf.mxu0 }
 0x1bd   : > { %v1122_v4 = vadd.f32 %v1121_v52, %v923_v2  ;;  %v1662_v59 = vsub.f32 %v1660_v53, %v1661_v42  ;;  %v6735_v2 = vld [vmem:[#allocation22_spill] sm:$0xff] }
 0x1be   : > { %v1127_v26 = vpop.f32.mrf.mxu3 }
 0x1bf   : > { %v1297_v62 = vadd.f32 %v1296_v40, %v1122_v4  ;;  %1648 = vmatmul.f32.gmra.mxu2 %v1647_v20  ;;  %2065 = vmatmul.f32.gmra.mxu0 %v1644_v10  ;;  %v211_v10 = vld [vmem:[%s4343_s23 + $0x40] sm:$0xff] }
 0x1c0   : > { %v1451_v31 = vpop.f32.mrf.mxu1  ;;  %v1519_v33 = vsel %vm273_vm1, %v211_v10, 0 }
 0x1c1   : > { %v5142_v34 = vadd.f32 %v1443_v55, %v1297_v62  ;;  %v1668_v55 = vsub.f32 %v1516_v39, %v5146_v29 }
 0x1c2   : > { %v927_v41 = vpop.f32.mrf.mxu2 }
 0x1c3   : > { %v928_v46 = vadd.f32 %v927_v41, %v6734_v17  ;;  %1915 = vmatmul.f32.gmra.mxu3 %v5128_v57  ;;  %2255 = vmatmul.f32.gmra.mxu1 %v1653_v44  ;;  %v1663_v44 = vand.u32 4294901760, %v1662_v59  ;;  %v1669_v4 = vand.u32 4294901760, %v1668_v55 }
 0x1c4   : > { %v1304_v40 = vpop.f32.mrf.mxu0 }
 0x1c5   : > { %v1128_v56 = vadd.f32 %v1127_v26, %v928_v46  ;;  %v1670_v39 = vsub.f32 %v1668_v55, %v1669_v4 }
 0x1c6   : > { %v1133_v43 = vpop.f32.mrf.mxu3 }
 0x1c7   : > { %v1301_v52 = vadd.f32 %v1300_v48, %v1128_v56  ;;  %1656 = vmatmul.f32.gmra.mxu2 %v1655_v60  ;;  %2070 = vmatmul.f32.gmra.mxu0 %v1652_v32  ;;  %v5155_v48 = vand.u32 4294901760, %v1519_v33  ;;  %v212_v32 = vld [vmem:[%s4343_s23 + $0x48] sm:$0xff]  ;;  %v1671_v10 = vand.u32 4294901760, %v1670_v39 }
 0x1c8   : > { %v1455_v21 = vpop.f32.mrf.mxu1  ;;  %v1522_v17 = vsel %vm273_vm1, %v212_v32, 0 }
 0x1c9   : > { %v5151_v38 = vadd.f32 %v1447_v1, %v1301_v52  ;;  %6736 = vst [vmem:[#allocation3_spill] sm:$0xff] %v5155_v48  ;;  %v1676_v1 = vsub.f32 %v1519_v33, %v5155_v48 }
 0x1ca   : > { %v932_v24 = vpop.f32.mrf.mxu2 }
 0x1cb   : > { %v933_v20 = vadd.f32 %v932_v24, %v6735_v2  ;;  %1919 = vmatmul.f32.gmra.mxu3 %v5137_v5  ;;  %2261 = vmatmul.f32.gmra.mxu1 %v1661_v42  ;;  %v6737_v42 = vld [vmem:[#allocation23_spill] sm:$0xff] }
 0x1cc   : > { %v1308_v12 = vpop.f32.mrf.mxu0 }
 0x1cd   : > { %v1134_v26 = vadd.f32 %v1133_v43, %v933_v20  ;;  %v1677_v43 = vand.u32 4294901760, %v1676_v1 }
 0x1ce   : > { %v1139_v62 = vpop.f32.mrf.mxu3 }
 0x1cf   : > { %v1305_v3 = vadd.f32 %v1304_v40, %v1134_v26  ;;  %1664 = vmatmul.f32.gmra.mxu2 %v1663_v44  ;;  %2075 = vmatmul.f32.gmra.mxu0 %v1660_v53  ;;  %v5164_v40 = vand.u32 4294901760, %v1522_v17  ;;  %v213_v53 = vld [vmem:[%s4343_s23 + $0x50] sm:$0xff]  ;;  %v1678_v2 = vsub.f32 %v1676_v1, %v1677_v43 }
 0x1d0   : > { %v1459_v41 = vpop.f32.mrf.mxu1  ;;  %v1525_v44 = vsel %vm273_vm1, %v213_v53, 0 }
 0x1d1   : > { %v5160_v46 = vadd.f32 %v1451_v31, %v1305_v3  ;;  %6738 = vst [vmem:[#allocation2_spill] sm:$0xff] %v5164_v40  ;;  %v1684_v31 = vsub.f32 %v1522_v17, %v5164_v40  ;;  %v1679_v39 = vand.u32 4294901760, %v1678_v2 }
 0x1d2   : > { %v937_v60 = vpop.f32.mrf.mxu2 }
 0x1d3   : > { %v938_v56 = vadd.f32 %v937_v60, %v6737_v42  ;;  %1923 = vmatmul.f32.gmra.mxu3 %v5146_v29  ;;  %2267 = vmatmul.f32.gmra.mxu1 %v1669_v4  ;;  %v6739_v4 = vld [vmem:[#allocation24_spill] sm:$0xff] }
 0x1d4   : > { %v1312_v52 = vpop.f32.mrf.mxu0 }
 0x1d5   : > { %v1140_v59 = vadd.f32 %v1139_v62, %v938_v56  ;;  %v1685_v62 = vand.u32 4294901760, %v1684_v31 }
 0x1d6   : > { %v1145_v24 = vpop.f32.mrf.mxu3 }
 0x1d7   : > { %v1309_v33 = vadd.f32 %v1308_v12, %v1140_v59  ;;  %1672 = vmatmul.f32.gmra.mxu2 %v1671_v10  ;;  %2080 = vmatmul.f32.gmra.mxu0 %v1668_v55  ;;  %v5173_v12 = vand.u32 4294901760, %v1525_v44  ;;  %v214_v55 = vld [vmem:[%s4343_s23 + $0x58] sm:$0xff]  ;;  %v1686_v10 = vsub.f32 %v1684_v31, %v1685_v62 }
 0x1d8   : > { %v1463_v20 = vpop.f32.mrf.mxu1  ;;  %v1528_v53 = vsel %vm273_vm1, %v214_v55, 0 }
 0x1d9   : > { %v5169_v26 = vadd.f32 %v1455_v21, %v1309_v33  ;;  %6740 = vst [vmem:[#allocation5_spill] sm:$0xff] %v5173_v12  ;;  %v1692_v21 = vsub.f32 %v1525_v44, %v5173_v12 }
 0x1da   : > { %v942_v32 = vpop.f32.mrf.mxu2 }
 0x1db   : > { %v943_v3 = vadd.f32 %v942_v32, %v6739_v4  ;;  %1927 = vmatmul.f32.gmra.mxu3 %v5155_v48  ;;  %2273 = vmatmul.f32.gmra.mxu1 %v1677_v43  ;;  %v6741_v43 = vld [vmem:[#allocation25_spill] sm:$0xff]  ;;  %v1687_v4 = vand.u32 4294901760, %v1686_v10 }
 0x1dc   : > { %v1316_v60 = vpop.f32.mrf.mxu0 }
 0x1dd   : > { %v1146_v42 = vadd.f32 %v1145_v24, %v943_v3  ;;  %v1693_v24 = vand.u32 4294901760, %v1692_v21 }
 0x1de   : > { %v1151_v56 = vpop.f32.mrf.mxu3 }
 0x1df   : > { %v1313_v17 = vadd.f32 %v1312_v52, %v1146_v42  ;;  %1680 = vmatmul.f32.gmra.mxu2 %v1679_v39  ;;  %2085 = vmatmul.f32.gmra.mxu0 %v1676_v1  ;;  %v5182_v52 = vand.u32 4294901760, %v1528_v53  ;;  %v215_v1 = vld [vmem:[%s4343_s23 + $0x60] sm:$0xff]  ;;  %v1694_v55 = vsub.f32 %v1692_v21, %v1693_v24 }
 0x1e0   : > { %v1467_v59 = vpop.f32.mrf.mxu1  ;;  %v1531_v10 = vsel %vm273_vm1, %v215_v1, 0 }
 0x1e1   : > { %v5178_v33 = vadd.f32 %v1459_v41, %v1313_v17  ;;  %6742 = vst [vmem:[#allocation4_spill] sm:$0xff] %v5182_v52  ;;  %v1700_v41 = vsub.f32 %v1528_v53, %v5182_v52 }
 0x1e2   : > { %v947_v2 = vpop.f32.mrf.mxu2 }
 0x1e3   : > { %v948_v32 = vadd.f32 %v947_v2, %v6741_v43  ;;  %1931 = vmatmul.f32.gmra.mxu3 %v5164_v40  ;;  %2279 = vmatmul.f32.gmra.mxu1 %v1685_v62  ;;  %v6744_v62 = vld [vmem:[#allocation26_spill] sm:$0xff]  ;;  %v1695_v40 = vand.u32 4294901760, %v1694_v55 }
 0x1e4   : > { %v1320_v3 = vpop.f32.mrf.mxu0 }
 0x1e5   : > { %v1152_v39 = vadd.f32 %v1151_v56, %v948_v32  ;;  %v1701_v56 = vand.u32 4294901760, %v1700_v41 }
 0x1e6   : > { %v1157_v42 = vpop.f32.mrf.mxu3 }
 0x1e7   : > { %v1317_v44 = vadd.f32 %v1316_v60, %v1152_v39  ;;  %1688 = vmatmul.f32.gmra.mxu2 %v1687_v4  ;;  %2090 = vmatmul.f32.gmra.mxu0 %v1684_v31  ;;  %v5191_v60 = vand.u32 4294901760, %v1531_v10  ;;  %v216_v31 = vld [vmem:[%s4343_s23 + $0x68] sm:$0xff]  ;;  %v1702_v1 = vsub.f32 %v1700_v41, %v1701_v56 }
 0x1e8   : > { %v1471_v17 = vpop.f32.mrf.mxu1  ;;  %v1534_v55 = vsel %vm273_vm1, %v216_v31, 0 }
 0x1e9   : > { %v5187_v2 = vadd.f32 %v1463_v20, %v1317_v44  ;;  %6745 = vst [vmem:[#allocation6_spill] sm:$0xff] %v5191_v60  ;;  %v1708_v20 = vsub.f32 %v1531_v10, %v5191_v60 }
 0x1ea   : > { %v952_v43 = vpop.f32.mrf.mxu2 }
 0x1eb   : > { %6743 = vst [vmem:[#allocation7_spill] sm:$0xff] %v5187_v2  ;;  %v953_v19 = vadd.f32 %v952_v43, %v6744_v62  ;;  %1935 = vmatmul.f32.gmra.mxu3 %v5173_v12  ;;  %2285 = vmatmul.f32.gmra.mxu1 %v1693_v24  ;;  %v6747_v24 = vld [vmem:[#allocation27_spill] sm:$0xff]  ;;  %v1703_v2 = vand.u32 4294901760, %v1702_v1 }
 0x1ec   : > { %v1324_v32 = vpop.f32.mrf.mxu0 }
 0x1ed   : > { %v1158_v4 = vadd.f32 %v1157_v42, %v953_v19  ;;  %v1709_v19 = vand.u32 4294901760, %v1708_v20 }
 0x1ee   : > { %v1163_v39 = vpop.f32.mrf.mxu3 }
 0x1ef   : > { %v1321_v53 = vadd.f32 %v1320_v3, %v1158_v4  ;;  %1696 = vmatmul.f32.gmra.mxu2 %v1695_v40  ;;  %2095 = vmatmul.f32.gmra.mxu0 %v1692_v21  ;;  %v5200_v3 = vand.u32 4294901760, %v1534_v55  ;;  %v217_v21 = vld [vmem:[%s4343_s23 + $0x70] sm:$0xff]  ;;  %v1710_v31 = vsub.f32 %v1708_v20, %v1709_v19 }
 0x1f0   : > { %v1475_v44 = vpop.f32.mrf.mxu1  ;;  %v1537_v1 = vsel %vm273_vm1, %v217_v21, 0 }
 0x1f1   : > { %v5196_v43 = vadd.f32 %v1467_v59, %v1321_v53  ;;  %6748 = vst [vmem:[#allocation8_spill] sm:$0xff] %v5200_v3  ;;  %v1716_v59 = vsub.f32 %v1534_v55, %v5200_v3 }
 0x1f2   : > { %v957_v62 = vpop.f32.mrf.mxu2 }
 0x1f3   : > { %6746 = vst [vmem:[#allocation9_spill] sm:$0xff] %v5196_v43  ;;  %v958_v12 = vadd.f32 %v957_v62, %v6747_v24  ;;  %1939 = vmatmul.f32.gmra.mxu3 %v5182_v52  ;;  %2291 = vmatmul.f32.gmra.mxu1 %v1701_v56  ;;  %v6750_v56 = vld [vmem:[#allocation28_spill] sm:$0xff]  ;;  %v1711_v43 = vand.u32 4294901760, %v1710_v31 }
 0x1f4   : > { %v1328_v40 = vpop.f32.mrf.mxu0 }
 0x1f5   : > { %v1164_v42 = vadd.f32 %v1163_v39, %v958_v12  ;;  %v1717_v12 = vand.u32 4294901760, %v1716_v59 }
 0x1f6   : > { %v1169_v4 = vpop.f32.mrf.mxu3 }
 0x1f7   : > { %v1325_v10 = vadd.f32 %v1324_v32, %v1164_v42  ;;  %1704 = vmatmul.f32.gmra.mxu2 %v1703_v2  ;;  %2100 = vmatmul.f32.gmra.mxu0 %v1700_v41  ;;  %v5209_v32 = vand.u32 4294901760, %v1537_v1  ;;  %v218_v41 = vld [vmem:[%s4343_s23 + $0x78] sm:$0xff]  ;;  %v1718_v21 = vsub.f32 %v1716_v59, %v1717_v12 }
 0x1f8   : > { %v1479_v53 = vpop.f32.mrf.mxu1  ;;  %v1540_v31 = vsel %vm273_vm1, %v218_v41, 0 }
 0x1f9   : > { %v5205_v62 = vadd.f32 %v1471_v17, %v1325_v10  ;;  %6751 = vst [vmem:[#allocation10_spill] sm:$0xff] %v5209_v32  ;;  %v1724_v17 = vsub.f32 %v1537_v1, %v5209_v32 }
 0x1fa   : > { %v962_v24 = vpop.f32.mrf.mxu2 }
 0x1fb   : > { %6749 = vst [vmem:[#allocation11_spill] sm:$0xff] %v5205_v62  ;;  %v963_v52 = vadd.f32 %v962_v24, %v6750_v56  ;;  %1943 = vmatmul.f32.gmra.mxu3 %v5191_v60  ;;  %2297 = vmatmul.f32.gmra.mxu1 %v1709_v19  ;;  %v6752_v19 = vld [vmem:[#allocation29_spill] sm:$0xff]  ;;  %v1719_v62 = vand.u32 4294901760, %v1718_v21 }
 0x1fc   : > { %v1332_v2 = vpop.f32.mrf.mxu0 }
 0x1fd   : > { %v1170_v39 = vadd.f32 %v1169_v4, %v963_v52  ;;  %v1725_v52 = vand.u32 4294901760, %v1724_v17 }
 0x1fe   : > { %v1175_v42 = vpop.f32.mrf.mxu3 }
 0x1ff   : > { %v1329_v55 = vadd.f32 %v1328_v40, %v1170_v39  ;;  %1712 = vmatmul.f32.gmra.mxu2 %v1711_v43  ;;  %2105 = vmatmul.f32.gmra.mxu0 %v1708_v20  ;;  %v5218_v40 = vand.u32 4294901760, %v1540_v31  ;;  %v219_v20 = vld [vmem:[%s4343_s23 + $0x80] sm:$0xff]  ;;  %v1726_v48 = vsub.f32 %v1724_v17, %v1725_v52 }
 0x200   : > { %v1483_v10 = vpop.f32.mrf.mxu1 }
 0x201   : > { %v5214_v24 = vadd.f32 %v1475_v44, %v1329_v55  ;;  %v1732_v44 = vsub.f32 %v1540_v31, %v5218_v40  ;;  %v1543_v55 = vsel %vm273_vm1, %v219_v20, 0  ;;  %v6754_v20 = vand.u32 4294901760, %v5070_v36 }
 0x202   : > { %v967_v56 = vpop.f32.mrf.mxu2 }
 0x203   : > { %v968_v60 = vadd.f32 %v967_v56, %v6752_v19  ;;  %1947 = vmatmul.f32.gmra.mxu3 %v5200_v3  ;;  %2303 = vmatmul.f32.gmra.mxu1 %v1717_v12  ;;  %v4229_v12 = vld [vmem:[%s6445_s1 + $0x20] sm:$0xff] }
 0x204   : > { %v1336_v43 = vpop.f32.mrf.mxu0 }
 0x205   : > { %v1176_v4 = vadd.f32 %v1175_v42, %v968_v60  ;;  %v2864_v60 = vand.u32 4294901760, %v4229_v12 }
 0x206   : > { %v1181_v39 = vpop.f32.mrf.mxu3 }
 0x207   : > { %v1333_v1 = vadd.f32 %v1332_v2, %v1176_v4  ;;  %1720 = vmatmul.f32.gmra.mxu2 %v1719_v62  ;;  %2110 = vmatmul.f32.gmra.mxu0 %v1716_v59  ;;  %v1727_v2 = vand.u32 4294901760, %v1726_v48  ;;  %v1733_v59 = vand.u32 4294901760, %v1732_v44  ;;  %v5230_v62 = vand.u32 4294901760, %v1543_v55  ;;  %v220_v4 = vld [vmem:[%s4343_s23 + $0x88] sm:$0xff] }
 0x208   : > { %v1487_v41 = vpop.f32.mrf.mxu1  ;;  %2865 = vmatpush.msrb.mxu0 %v2864_v60  ;;  %v3144_v19 = vsub.f32 %v4229_v12, %v2864_v60  ;;  %3476 = vmatpush.msra.mxu3 %v2864_v60 }
 0x209   : > { %v5223_v21 = vadd.f32 %v1479_v53, %v1333_v1  ;;  %v1734_v48 = vsub.f32 %v1732_v44, %v1733_v59 }
 0x20a   : > { %v972_v56 = vpop.f32.mrf.mxu2  ;;  %3687 = vmatpush.msra.mxu0 %v6754_v20  ;;  %v3145_v3 = vand.u32 4294901760, %v3144_v19  ;;  %3297 = vmatpush.msra.mxu2 %v3144_v19 }
 0x20b   : > { %6753 = vst [vmem:[#allocation13_spill] sm:$0xff] %v5223_v21  ;;  %v973_v42 = vadd.f32 %v972_v56, %v4907_v51  ;;  %1951 = vmatmul.f32.gmra.mxu3 %v5209_v32  ;;  %2309 = vmatmul.f32.gmra.mxu1 %v1725_v52  ;;  %v1740_v52 = vsub.f32 %v1543_v55, %v5230_v62  ;;  %v1546_v32 = vsel %vm273_vm1, %v220_v4, 0  ;;  %v1735_v21 = vand.u32 4294901760, %v1734_v48 }
 0x20c   : > { %v1340_v31 = vpop.f32.mrf.mxu0  ;;  %v3146_v12 = vsub.f32 %v3144_v19, %v3145_v3  ;;  %3691 = vmatpush.msra.mxu0 %v3145_v3 }
 0x20d   : > { %v1182_v53 = vadd.f32 %v1181_v39, %v973_v42 }
 0x20e   : > { %v1187_v1 = vpop.f32.mrf.mxu3  ;;  %v3147_v36 = vand.u32 4294901760, %v3146_v12 }
 0x20f   : > { %v1337_v51 = vadd.f32 %v1336_v43, %v1182_v53  ;;  %1728 = vmatmul.f32.gmra.mxu2 %v1727_v2  ;;  %2115 = vmatmul.f32.gmra.mxu0 %v1724_v17  ;;  %v1741_v43 = vand.u32 4294901760, %v1740_v52  ;;  %v5241_v17 = vand.u32 4294901760, %v1546_v32  ;;  %v221_v53 = vld [vmem:[%s4343_s23 + $0x90] sm:$0xff] }
 0x210   : > { %v1491_v56 = vpop.f32.mrf.mxu1  ;;  %3148 = vmatpush.msrb.mxu1 %v3147_v36 }
 0x211   : > { %v5237_v39 = vadd.f32 %v1483_v10, %v1337_v51  ;;  %v1742_v19 = vsub.f32 %v1740_v52, %v1741_v43  ;;  %v1549_v51 = vsel %vm273_vm1, %v221_v53, 0 }
 0x212   : > { %v977_v42 = vpop.f32.mrf.mxu2  ;;  %3836 = vmatpush.msra.mxu1 %v5065_v58 }
 0x213   : > { %v978_v20 = vadd.f32 %v977_v42, %v4919_v18  ;;  %1955 = vmatmul.f32.gmra.mxu3 %v5218_v40  ;;  %2315 = vmatmul.f32.gmra.mxu1 %v1733_v59  ;;  %v1748_v18 = vsub.f32 %v1546_v32, %v5241_v17  ;;  %v1743_v12 = vand.u32 4294901760, %v1742_v19  ;;  %v222_v42 = vld [vmem:[%s4343_s23 + $0x98] sm:$0xff] }
 0x214   : > { %v1344_v55 = vpop.f32.mrf.mxu0  ;;  %3838 = vmatpush.msra.mxu1 %v2864_v60 }
 0x215   : > { %v1188_v2 = vadd.f32 %v1187_v1, %v978_v20  ;;  %v1749_v58 = vand.u32 4294901760, %v1748_v18 }
 0x216   : > { %v1193_v3 = vpop.f32.mrf.mxu3 }
 0x217   : > { %v1341_v10 = vadd.f32 %v1340_v31, %v1188_v2  ;;  %1736 = vmatmul.f32.gmra.mxu2 %v1735_v21  ;;  %2120 = vmatmul.f32.gmra.mxu0 %v1732_v44  ;;  %v5251_v21 = vand.u32 4294901760, %v1549_v51  ;;  %v1750_v60 = vsub.f32 %v1748_v18, %v1749_v58 }
 0x218   : > { %v2226_v4 = vpop.f32.mrf.mxu1 }
 0x219   : > { %v5247_v59 = vadd.f32 %v1487_v41, %v1341_v10  ;;  %v1756_v41 = vsub.f32 %v1549_v51, %v5251_v21  ;;  %v1751_v10 = vand.u32 4294901760, %v1750_v60 }
 0x21a   : > { %v982_v48 = vpop.f32.mrf.mxu2 }
 0x21b   : > { %v983_v1 = vadd.f32 %v982_v48, %v4928_v61  ;;  %1959 = vmatmul.f32.gmra.mxu3 %v5230_v62  ;;  %2321 = vmatmul.f32.gmra.mxu1 %v1741_v43  ;;  %v1552_v61 = vsel %vm273_vm1, %v222_v42, 0 }
 0x21c   : > { %v2046_v31 = vpop.f32.mrf.mxu0 }
 0x21d   : > { %v1194_v44 = vadd.f32 %v1193_v3, %v983_v1  ;;  %v1757_v3 = vand.u32 4294901760, %v1756_v41 }
 0x21e   : > { %v1896_v32 = vpop.f32.mrf.mxu3 }
 0x21f   : > { %v1345_v36 = vadd.f32 %v1344_v55, %v1194_v44  ;;  %1744 = vmatmul.f32.gmra.mxu2 %v1743_v12  ;;  %2125 = vmatmul.f32.gmra.mxu0 %v1740_v52  ;;  %v5260_v55 = vand.u32 4294901760, %v1552_v61  ;;  %v223_v52 = vld [vmem:[%s4343_s23 + $0xa0] sm:$0xff]  ;;  %v1758_v12 = vsub.f32 %v1756_v41, %v1757_v3 }
 0x220   : > { %v2232_v20 = vpop.f32.mrf.mxu1 }
 0x221   : > { %v5256_v2 = vadd.f32 %v1491_v56, %v1345_v36  ;;  %6755 = vst [vmem:[#allocation12_spill] sm:$0xff] %v5260_v55  ;;  %v1764_v56 = vsub.f32 %v1552_v61, %v5260_v55  ;;  %v1759_v60 = vand.u32 4294901760, %v1758_v12 }
 0x222   : > { %v1617_v53 = vpop.f32.mrf.mxu2 }
 0x223   : > { %v1618_v43 = vadd.f32 %v1617_v53, %v4944_v14  ;;  %1963 = vmatmul.f32.gmra.mxu3 %v5241_v17  ;;  %2327 = vmatmul.f32.gmra.mxu1 %v1749_v58  ;;  %v1555_v14 = vsel %vm273_vm1, %v223_v52, 0 }
 0x224   : > { %v2051_v19 = vpop.f32.mrf.mxu0 }
 0x225   : > { %v1897_v48 = vadd.f32 %v1896_v32, %v1618_v43  ;;  %v1765_v32 = vand.u32 4294901760, %v1764_v56 }
 0x226   : > { %v1900_v1 = vpop.f32.mrf.mxu3 }
 0x227   : > { %v2047_v51 = vadd.f32 %v2046_v31, %v1897_v48  ;;  %1752 = vmatmul.f32.gmra.mxu2 %v1751_v10  ;;  %2130 = vmatmul.f32.gmra.mxu0 %v1748_v18  ;;  %v5269_v31 = vand.u32 4294901760, %v1555_v14  ;;  %v224_v18 = vld [vmem:[%s4343_s23 + $0xa8] sm:$0xff]  ;;  %v1766_v48 = vsub.f32 %v1764_v56, %v1765_v32 }
 0x228   : > { %v2238_v44 = vpop.f32.mrf.mxu1 }
 0x229   : > { %v5265_v42 = vadd.f32 %v2226_v4, %v2047_v51  ;;  %6756 = vst [vmem:[#allocation15_spill] sm:$0xff] %v5269_v31  ;;  %v1772_v4 = vsub.f32 %v1555_v14, %v5269_v31 }
 0x22a   : > { %v1625_v36 = vpop.f32.mrf.mxu2 }
 0x22b   : > { %v1626_v58 = vadd.f32 %v1625_v36, %v4953_v37  ;;  %1967 = vmatmul.f32.gmra.mxu3 %v5251_v21  ;;  %2333 = vmatmul.f32.gmra.mxu1 %v1757_v3  ;;  %v1558_v37 = vsel %vm273_vm1, %v224_v18, 0  ;;  %v1767_v36 = vand.u32 4294901760, %v1766_v48 }
 0x22c   : > { %v2056_v53 = vpop.f32.mrf.mxu0 }
 0x22d   : > { %v1901_v43 = vadd.f32 %v1900_v1, %v1626_v58  ;;  %v1773_v1 = vand.u32 4294901760, %v1772_v4 }
 0x22e   : > { %v1904_v10 = vpop.f32.mrf.mxu3 }
 0x22f   : > { %v2052_v61 = vadd.f32 %v2051_v19, %v1901_v43  ;;  %1760 = vmatmul.f32.gmra.mxu2 %v1759_v60  ;;  %2135 = vmatmul.f32.gmra.mxu0 %v1756_v41  ;;  %v5278_v19 = vand.u32 4294901760, %v1558_v37  ;;  %v225_v41 = vld [vmem:[%s4343_s23 + $0xb0] sm:$0xff]  ;;  %v1774_v18 = vsub.f32 %v1772_v4, %v1773_v1 }
 0x230   : > { %v2244_v52 = vpop.f32.mrf.mxu1 }
 0x231   : > { %v5274_v51 = vadd.f32 %v2232_v20, %v2052_v61  ;;  %6757 = vst [vmem:[#allocation14_spill] sm:$0xff] %v5278_v19  ;;  %v1780_v20 = vsub.f32 %v1558_v37, %v5278_v19 }
 0x232   : > { %v1633_v12 = vpop.f32.mrf.mxu2 }
 0x233   : > { %v1634_v3 = vadd.f32 %v1633_v12, %v4962_v28  ;;  %1971 = vmatmul.f32.gmra.mxu3 %v5260_v55  ;;  %2339 = vmatmul.f32.gmra.mxu1 %v1765_v32  ;;  %v1561_v28 = vsel %vm273_vm1, %v225_v41, 0  ;;  %v1775_v55 = vand.u32 4294901760, %v1774_v18 }
 0x234   : > { %v2061_v58 = vpop.f32.mrf.mxu0 }
 0x235   : > { %v1905_v60 = vadd.f32 %v1904_v10, %v1634_v3  ;;  %v1781_v10 = vand.u32 4294901760, %v1780_v20 }
 0x236   : > { %v1908_v43 = vpop.f32.mrf.mxu3 }
 0x237   : > { %v2057_v14 = vadd.f32 %v2056_v53, %v1905_v60  ;;  %1768 = vmatmul.f32.gmra.mxu2 %v1767_v36  ;;  %2140 = vmatmul.f32.gmra.mxu0 %v1764_v56  ;;  %v5287_v53 = vand.u32 4294901760, %v1561_v28  ;;  %v226_v56 = vld [vmem:[%s4343_s23 + $0xb8] sm:$0xff]  ;;  %v1782_v41 = vsub.f32 %v1780_v20, %v1781_v10 }
 0x238   : > { %v2250_v61 = vpop.f32.mrf.mxu1 }
 0x239   : > { %v5283_v48 = vadd.f32 %v2238_v44, %v2057_v14  ;;  %6758 = vst [vmem:[#allocation16_spill] sm:$0xff] %v5287_v53  ;;  %v1788_v44 = vsub.f32 %v1561_v28, %v5287_v53 }
 0x23a   : > { %v1641_v12 = vpop.f32.mrf.mxu2 }
 0x23b   : > { %v1642_v32 = vadd.f32 %v1641_v12, %v4971_v35  ;;  %1975 = vmatmul.f32.gmra.mxu3 %v5269_v31  ;;  %2345 = vmatmul.f32.gmra.mxu1 %v1773_v1  ;;  %v1564_v35 = vsel %vm273_vm1, %v226_v56, 0  ;;  %v1783_v31 = vand.u32 4294901760, %v1782_v41 }
 0x23c   : > { %v2066_v3 = vpop.f32.mrf.mxu0 }
 0x23d   : > { %v1909_v36 = vadd.f32 %v1908_v43, %v1642_v32  ;;  %v1789_v43 = vand.u32 4294901760, %v1788_v44 }
 0x23e   : > { %v1912_v60 = vpop.f32.mrf.mxu3 }
 0x23f   : > { %v2062_v37 = vadd.f32 %v2061_v58, %v1909_v36  ;;  %1776 = vmatmul.f32.gmra.mxu2 %v1775_v55  ;;  %2145 = vmatmul.f32.gmra.mxu0 %v1772_v4  ;;  %v5296_v58 = vand.u32 4294901760, %v1564_v35  ;;  %v227_v4 = vld [vmem:[%s4343_s23 + $0xc0] sm:$0xff]  ;;  %v1790_v56 = vsub.f32 %v1788_v44, %v1789_v43 }
 0x240   : > { %v2256_v14 = vpop.f32.mrf.mxu1 }
 0x241   : > { %v5292_v18 = vadd.f32 %v2244_v52, %v2062_v37  ;;  %6759 = vst [vmem:[#allocation17_spill] sm:$0xff] %v5296_v58  ;;  %v1796_v52 = vsub.f32 %v1564_v35, %v5296_v58 }
 0x242   : > { %v1649_v12 = vpop.f32.mrf.mxu2 }
 0x243   : > { %v1650_v1 = vadd.f32 %v1649_v12, %v4980_v49  ;;  %1979 = vmatmul.f32.gmra.mxu3 %v5278_v19  ;;  %2351 = vmatmul.f32.gmra.mxu1 %v1781_v10  ;;  %v1567_v49 = vsel %vm273_vm1, %v227_v4, 0  ;;  %v1791_v19 = vand.u32 4294901760, %v1790_v56 }
 0x244   : > { %v2071_v55 = vpop.f32.mrf.mxu0 }
 0x245   : > { %v1913_v32 = vadd.f32 %v1912_v60, %v1650_v1  ;;  %v1797_v60 = vand.u32 4294901760, %v1796_v52 }
 0x246   : > { %v1916_v36 = vpop.f32.mrf.mxu3 }
 0x247   : > { %v2067_v28 = vadd.f32 %v2066_v3, %v1913_v32  ;;  %1784 = vmatmul.f32.gmra.mxu2 %v1783_v31  ;;  %2150 = vmatmul.f32.gmra.mxu0 %v1780_v20  ;;  %v5305_v3 = vand.u32 4294901760, %v1567_v49  ;;  %v228_v20 = vld [vmem:[%s4343_s23 + $0xc8] sm:$0xff]  ;;  %v1798_v4 = vsub.f32 %v1796_v52, %v1797_v60 }
 0x248   : > { %v2262_v37 = vpop.f32.mrf.mxu1 }
 0x249   : > { %v5301_v41 = vadd.f32 %v2250_v61, %v2067_v28  ;;  %6760 = vst [vmem:[#allocation18_spill] sm:$0xff] %v5305_v3  ;;  %v1804_v61 = vsub.f32 %v1567_v49, %v5305_v3 }
 0x24a   : > { %v1657_v12 = vpop.f32.mrf.mxu2 }
 0x24b   : > { %v1658_v10 = vadd.f32 %v1657_v12, %v4989_v63  ;;  %1983 = vmatmul.f32.gmra.mxu3 %v5287_v53  ;;  %2357 = vmatmul.f32.gmra.mxu1 %v1789_v43  ;;  %v1570_v63 = vsel %vm273_vm1, %v228_v20, 0  ;;  %v1799_v53 = vand.u32 4294901760, %v1798_v4 }
 0x24c   : > { %v2076_v31 = vpop.f32.mrf.mxu0 }
 0x24d   : > { %v1917_v1 = vadd.f32 %v1916_v36, %v1658_v10  ;;  %v1805_v36 = vand.u32 4294901760, %v1804_v61 }
 0x24e   : > { %v1920_v32 = vpop.f32.mrf.mxu3 }
 0x24f   : > { %v2072_v35 = vadd.f32 %v2071_v55, %v1917_v1  ;;  %1792 = vmatmul.f32.gmra.mxu2 %v1791_v19  ;;  %2155 = vmatmul.f32.gmra.mxu0 %v1788_v44  ;;  %v5314_v55 = vand.u32 4294901760, %v1570_v63  ;;  %v229_v44 = vld [vmem:[%s4343_s23 + $0xd0] sm:$0xff]  ;;  %v1806_v20 = vsub.f32 %v1804_v61, %v1805_v36 }
 0x250   : > { %v2268_v28 = vpop.f32.mrf.mxu1 }
 0x251   : > { %v5310_v56 = vadd.f32 %v2256_v14, %v2072_v35  ;;  %6761 = vst [vmem:[#allocation19_spill] sm:$0xff] %v5314_v55  ;;  %v1812_v14 = vsub.f32 %v1570_v63, %v5314_v55 }
 0x252   : > { %v1665_v12 = vpop.f32.mrf.mxu2 }
 0x253   : > { %v1666_v43 = vadd.f32 %v1665_v12, %v4998_v13  ;;  %1987 = vmatmul.f32.gmra.mxu3 %v5296_v58  ;;  %2363 = vmatmul.f32.gmra.mxu1 %v1797_v60  ;;  %v1573_v13 = vsel %vm273_vm1, %v229_v44, 0  ;;  %v1807_v58 = vand.u32 4294901760, %v1806_v20 }
 0x254   : > { %v2081_v19 = vpop.f32.mrf.mxu0 }
 0x255   : > { %v1921_v10 = vadd.f32 %v1920_v32, %v1666_v43  ;;  %v1813_v32 = vand.u32 4294901760, %v1812_v14 }
 0x256   : > { %v1924_v1 = vpop.f32.mrf.mxu3 }
 0x257   : > { %v2077_v49 = vadd.f32 %v2076_v31, %v1921_v10  ;;  %1800 = vmatmul.f32.gmra.mxu2 %v1799_v53  ;;  %2160 = vmatmul.f32.gmra.mxu0 %v1796_v52  ;;  %v5323_v31 = vand.u32 4294901760, %v1573_v13  ;;  %v230_v52 = vld [vmem:[%s4343_s23 + $0xd8] sm:$0xff]  ;;  %v1814_v44 = vsub.f32 %v1812_v14, %v1813_v32 }
 0x258   : > { %v2274_v35 = vpop.f32.mrf.mxu1 }
 0x259   : > { %v5319_v4 = vadd.f32 %v2262_v37, %v2077_v49  ;;  %6762 = vst [vmem:[#allocation20_spill] sm:$0xff] %v5323_v31  ;;  %v1820_v37 = vsub.f32 %v1573_v13, %v5323_v31 }
 0x25a   : > { %v1673_v12 = vpop.f32.mrf.mxu2 }
 0x25b   : > { %v1674_v60 = vadd.f32 %v1673_v12, %v5007_v6  ;;  %1991 = vmatmul.f32.gmra.mxu3 %v5305_v3  ;;  %2369 = vmatmul.f32.gmra.mxu1 %v1805_v36  ;;  %v1576_v6 = vsel %vm273_vm1, %v230_v52, 0  ;;  %v1815_v3 = vand.u32 4294901760, %v1814_v44 }
 0x25c   : > { %v2086_v53 = vpop.f32.mrf.mxu0 }
 0x25d   : > { %v1925_v43 = vadd.f32 %v1924_v1, %v1674_v60  ;;  %v1821_v1 = vand.u32 4294901760, %v1820_v37 }
 0x25e   : > { %v1928_v10 = vpop.f32.mrf.mxu3 }
 0x25f   : > { %v2082_v63 = vadd.f32 %v2081_v19, %v1925_v43  ;;  %1808 = vmatmul.f32.gmra.mxu2 %v1807_v58  ;;  %2165 = vmatmul.f32.gmra.mxu0 %v1804_v61  ;;  %v5332_v19 = vand.u32 4294901760, %v1576_v6  ;;  %v231_v61 = vld [vmem:[%s4343_s23 + $0xe0] sm:$0xff]  ;;  %v1822_v52 = vsub.f32 %v1820_v37, %v1821_v1 }
 0x260   : > { %v2280_v49 = vpop.f32.mrf.mxu1 }
 0x261   : > { %v5328_v20 = vadd.f32 %v2268_v28, %v2082_v63  ;;  %6763 = vst [vmem:[#allocation21_spill] sm:$0xff] %v5332_v19  ;;  %v1828_v28 = vsub.f32 %v1576_v6, %v5332_v19 }
 0x262   : > { %v1681_v12 = vpop.f32.mrf.mxu2 }
 0x263   : > { %v1682_v36 = vadd.f32 %v1681_v12, %v5016_v23  ;;  %1995 = vmatmul.f32.gmra.mxu3 %v5314_v55  ;;  %2375 = vmatmul.f32.gmra.mxu1 %v1813_v32  ;;  %v1579_v23 = vsel %vm273_vm1, %v231_v61, 0  ;;  %v1823_v55 = vand.u32 4294901760, %v1822_v52 }
 0x264   : > { %v2091_v58 = vpop.f32.mrf.mxu0 }
 0x265   : > { %v1929_v60 = vadd.f32 %v1928_v10, %v1682_v36  ;;  %v1829_v10 = vand.u32 4294901760, %v1828_v28 }
 0x266   : > { %v1932_v43 = vpop.f32.mrf.mxu3 }
 0x267   : > { %v2087_v13 = vadd.f32 %v2086_v53, %v1929_v60  ;;  %1816 = vmatmul.f32.gmra.mxu2 %v1815_v3  ;;  %2170 = vmatmul.f32.gmra.mxu0 %v1812_v14  ;;  %v5341_v53 = vand.u32 4294901760, %v1579_v23  ;;  %v232_v14 = vld [vmem:[%s4343_s23 + $0xe8] sm:$0xff]  ;;  %v1830_v61 = vsub.f32 %v1828_v28, %v1829_v10 }
 0x268   : > { %v2286_v63 = vpop.f32.mrf.mxu1 }
 0x269   : > { %v5337_v44 = vadd.f32 %v2274_v35, %v2087_v13  ;;  %6764 = vst [vmem:[#allocation22_spill] sm:$0xff] %v5341_v53  ;;  %v1836_v35 = vsub.f32 %v1579_v23, %v5341_v53 }
 0x26a   : > { %v1689_v12 = vpop.f32.mrf.mxu2 }
 0x26b   : > { %v1690_v32 = vadd.f32 %v1689_v12, %v5025_v50  ;;  %1999 = vmatmul.f32.gmra.mxu3 %v5323_v31  ;;  %2381 = vmatmul.f32.gmra.mxu1 %v1821_v1  ;;  %v1582_v50 = vsel %vm273_vm1, %v232_v14, 0  ;;  %v1831_v31 = vand.u32 4294901760, %v1830_v61 }
 0x26c   : > { %v2096_v3 = vpop.f32.mrf.mxu0 }
 0x26d   : > { %v1933_v36 = vadd.f32 %v1932_v43, %v1690_v32  ;;  %v1837_v43 = vand.u32 4294901760, %v1836_v35 }
 0x26e   : > { %v1936_v60 = vpop.f32.mrf.mxu3 }
 0x26f   : > { %v2092_v6 = vadd.f32 %v2091_v58, %v1933_v36  ;;  %1824 = vmatmul.f32.gmra.mxu2 %v1823_v55  ;;  %2175 = vmatmul.f32.gmra.mxu0 %v1820_v37  ;;  %v5350_v58 = vand.u32 4294901760, %v1582_v50  ;;  %v233_v37 = vld [vmem:[%s4343_s23 + $0xf0] sm:$0xff]  ;;  %v1838_v14 = vsub.f32 %v1836_v35, %v1837_v43 }
 0x270   : > { %v2292_v13 = vpop.f32.mrf.mxu1 }
 0x271   : > { %v5346_v52 = vadd.f32 %v2280_v49, %v2092_v6  ;;  %6765 = vst [vmem:[#allocation23_spill] sm:$0xff] %v5350_v58  ;;  %v1844_v49 = vsub.f32 %v1582_v50, %v5350_v58 }
 0x272   : > { %v1697_v12 = vpop.f32.mrf.mxu2 }
 0x273   : > { %v1698_v1 = vadd.f32 %v1697_v12, %v5034_v11  ;;  %2003 = vmatmul.f32.gmra.mxu3 %v5332_v19  ;;  %2387 = vmatmul.f32.gmra.mxu1 %v1829_v10  ;;  %v1585_v11 = vsel %vm273_vm1, %v233_v37, 0  ;;  %v1839_v19 = vand.u32 4294901760, %v1838_v14 }
 0x274   : > { %v2101_v55 = vpop.f32.mrf.mxu0 }
 0x275   : > { %v1937_v32 = vadd.f32 %v1936_v60, %v1698_v1  ;;  %v1845_v60 = vand.u32 4294901760, %v1844_v49 }
 0x276   : > { %v1940_v36 = vpop.f32.mrf.mxu3 }
 0x277   : > { %v2097_v23 = vadd.f32 %v2096_v3, %v1937_v32  ;;  %1832 = vmatmul.f32.gmra.mxu2 %v1831_v31  ;;  %2180 = vmatmul.f32.gmra.mxu0 %v1828_v28  ;;  %v5359_v3 = vand.u32 4294901760, %v1585_v11  ;;  %v234_v28 = vld [vmem:[%s4343_s23 + $0xf8] sm:$0xff]  ;;  %v1846_v37 = vsub.f32 %v1844_v49, %v1845_v60 }
 0x278   : > { %v2298_v6 = vpop.f32.mrf.mxu1 }
 0x279   : > { %v5355_v61 = vadd.f32 %v2286_v63, %v2097_v23  ;;  %6766 = vst [vmem:[#allocation24_spill] sm:$0xff] %v5359_v3  ;;  %v1852_v63 = vsub.f32 %v1585_v11, %v5359_v3 }
 0x27a   : > { %v1705_v12 = vpop.f32.mrf.mxu2 }
 0x27b   : > { %v1706_v10 = vadd.f32 %v1705_v12, %v5043_v54  ;;  %2007 = vmatmul.f32.gmra.mxu3 %v5341_v53  ;;  %2393 = vmatmul.f32.gmra.mxu1 %v1837_v43  ;;  %v1588_v54 = vsel %vm273_vm1, %v234_v28, 0  ;;  %v1847_v53 = vand.u32 4294901760, %v1846_v37 }
 0x27c   : > { %v2106_v31 = vpop.f32.mrf.mxu0 }
 0x27d   : > { %v1941_v1 = vadd.f32 %v1940_v36, %v1706_v10  ;;  %v1853_v36 = vand.u32 4294901760, %v1852_v63 }
 0x27e   : > { %v1944_v32 = vpop.f32.mrf.mxu3 }
 0x27f   : > { %v2102_v50 = vadd.f32 %v2101_v55, %v1941_v1  ;;  %1840 = vmatmul.f32.gmra.mxu2 %v1839_v19  ;;  %2185 = vmatmul.f32.gmra.mxu0 %v1836_v35  ;;  %v5368_v55 = vand.u32 4294901760, %v1588_v54  ;;  %v4197_v35 = vld [vmem:[%s4343_s23 + $0x20] sm:$0xff]  ;;  %v1854_v28 = vsub.f32 %v1852_v63, %v1853_v36 }
 0x280   : > { %v2304_v23 = vpop.f32.mrf.mxu1 }
 0x281   : > { %v5364_v14 = vadd.f32 %v2292_v13, %v2102_v50  ;;  %v1860_v13 = vsub.f32 %v1588_v54, %v5368_v55 }
 0x282   : > { %v1713_v12 = vpop.f32.mrf.mxu2 }
 0x283   : > { %v1714_v43 = vadd.f32 %v1713_v12, %v5054_v7  ;;  %2011 = vmatmul.f32.gmra.mxu3 %v5350_v58  ;;  %2399 = vmatmul.f32.gmra.mxu1 %v1845_v60  ;;  %v2750_v7 = vsel %vm273_vm1, %v4197_v35, 0  ;;  %v1855_v58 = vand.u32 4294901760, %v1854_v28 }
 0x284   : > { %v2111_v19 = vpop.f32.mrf.mxu0 }
 0x285   : > { %v1945_v10 = vadd.f32 %v1944_v32, %v1714_v43  ;;  %v1861_v32 = vand.u32 4294901760, %v1860_v13 }
 0x286   : > { %v1948_v1 = vpop.f32.mrf.mxu3 }
 0x287   : > { %v2107_v11 = vadd.f32 %v2106_v31, %v1945_v10  ;;  %1848 = vmatmul.f32.gmra.mxu2 %v1847_v53  ;;  %2190 = vmatmul.f32.gmra.mxu0 %v1844_v49  ;;  %v5377_v31 = vand.u32 4294901760, %v2750_v7  ;;  %v4198_v49 = vld [vmem:[%s4343_s23 + $0x28] sm:$0xff]  ;;  %v1862_v35 = vsub.f32 %v1860_v13, %v1861_v32 }
 0x288   : > { %v2310_v50 = vpop.f32.mrf.mxu1 }
 0x289   : > { %v5373_v37 = vadd.f32 %v2298_v6, %v2107_v11  ;;  %v5381_v6 = vsub.f32 %v2750_v7, %v5377_v31  ;;  %v2753_v11 = vsel %vm273_vm1, %v4198_v49, 0  ;;  %v4199_v7 = vld [vmem:[%s4343_s23 + $0x30] sm:$0xff] }
 0x28a   : > { %v1721_v12 = vpop.f32.mrf.mxu2  ;;  %v2756_v49 = vsel %vm273_vm1, %v4199_v7, 0 }
 0x28b   : > { %v1722_v60 = vadd.f32 %v1721_v12, %v5079_v27  ;;  %2015 = vmatmul.f32.gmra.mxu3 %v5359_v3  ;;  %2405 = vmatmul.f32.gmra.mxu1 %v1853_v36  ;;  %v1863_v3 = vand.u32 4294901760, %v1862_v35 }
 0x28c   : > { %v2116_v53 = vpop.f32.mrf.mxu0 }
 0x28d   : > { %v1949_v43 = vadd.f32 %v1948_v1, %v1722_v60 }
 0x28e   : > { %v1952_v10 = vpop.f32.mrf.mxu3 }
 0x28f   : > { %v2112_v54 = vadd.f32 %v2111_v19, %v1949_v43  ;;  %1856 = vmatmul.f32.gmra.mxu2 %v1855_v58  ;;  %2195 = vmatmul.f32.gmra.mxu0 %v1852_v63  ;;  %v6550_v58 = vand.u32 4294901760, %v5381_v6  ;;  %v5389_v19 = vand.u32 4294901760, %v2753_v11 }
 0x290   : > { %v2316_v27 = vpop.f32.mrf.mxu1 }
 0x291   : > { %v5384_v28 = vadd.f32 %v2304_v23, %v2112_v54  ;;  %v5396_v23 = vsub.f32 %v2753_v11, %v5389_v19 }
 0x292   : > { %v1729_v36 = vpop.f32.mrf.mxu2 }
 0x293   : > { %v1730_v12 = vadd.f32 %v1729_v36, %v5096_v16  ;;  %2019 = vmatmul.f32.gmra.mxu3 %v5368_v55  ;;  %2411 = vmatmul.f32.gmra.mxu1 %v1861_v32  ;;  %v2869_v16 = vsub.f32 %v5381_v6, %v6550_v58  ;;  %6767 = vst [vmem:[#allocation25_spill] sm:$0xff] %v5396_v23 }
 0x294   : > { %v2121_v63 = vpop.f32.mrf.mxu0 }
 0x295   : > { %v1953_v1 = vadd.f32 %v1952_v10, %v1730_v12  ;;  %v4200_v12 = vld [vmem:[%s4343_s23 + $0x38] sm:$0xff] }
 0x296   : > { %v1956_v60 = vpop.f32.mrf.mxu3 }
 0x297   : > { %v2117_v43 = vadd.f32 %v2116_v53, %v1953_v1  ;;  %1864 = vmatmul.f32.gmra.mxu2 %v1863_v3  ;;  %2200 = vmatmul.f32.gmra.mxu0 %v1860_v13  ;;  %v2870_v3 = vand.u32 4294901760, %v2869_v16  ;;  %v6551_v13 = vand.u32 4294901760, %v5396_v23  ;;  %v5405_v53 = vand.u32 4294901760, %v2756_v49 }
 0x298   : > { %v2322_v32 = vpop.f32.mrf.mxu1 }
 0x299   : > { %v5399_v54 = vadd.f32 %v2310_v50, %v2117_v43  ;;  %v5413_v50 = vsub.f32 %v2756_v49, %v5405_v53  ;;  %v2759_v43 = vsel %vm273_vm1, %v4200_v12, 0 }
 0x29a   : > { %v1737_v35 = vpop.f32.mrf.mxu2 }
 0x29b   : > { %v1738_v10 = vadd.f32 %v1737_v35, %v5106_v25  ;;  %2585 = vmatmul.f32.vlgmr.msrb.gmra.mxu3 %v5063_v47  ;;  %3150 = vmatmul.f32.vlgmr.msrb.gmra.mxu1 %v5377_v31  ;;  %v2877_v25 = vsub.f32 %v5396_v23, %v6551_v13  ;;  %6768 = vst [vmem:[#allocation26_spill] sm:$0xff] %v5413_v50 }
 0x29c   : > { %v2126_v36 = vpop.f32.mrf.mxu0 }
 0x29d   : > { %v1957_v11 = vadd.f32 %v1956_v60, %v1738_v10  ;;  %v5422_v10 = vand.u32 4294901760, %v2759_v43 }
 0x29e   : > { %v1960_v1 = vpop.f32.mrf.mxu3 }
 0x29f   : > { %v2122_v58 = vadd.f32 %v2121_v63, %v1957_v11  ;;  %2438 = vmatmul.f32.vlgmr.msrb.gmra.mxu2 %v5063_v47  ;;  %2871 = vmatmul.f32.vlgmr.msrb.gmra.mxu0 %v2870_v3  ;;  %v2878_v47 = vand.u32 4294901760, %v2877_v25  ;;  %v6554_v63 = vand.u32 4294901760, %v5413_v50  ;;  %v4201_v11 = vld [vmem:[%s4343_s23 + $0x40] sm:$0xff] }
 0x2a0   : > { %v2328_v7 = vpop.f32.mrf.mxu1  ;;  %v2762_v12 = vsel %vm273_vm1, %v4201_v11, 0 }
 0x2a1   : > { %v5416_v16 = vadd.f32 %v2316_v27, %v2122_v58  ;;  %v5430_v27 = vsub.f32 %v2759_v43, %v5422_v10 }
 0x2a2   : > { %v1745_v60 = vpop.f32.mrf.mxu2 }
 0x2a3   : > { %v1746_v35 = vadd.f32 %v1745_v60, %v5115_v30  ;;  %2589 = vmatmul.f32.gmra.mxu3 %v5087_v9  ;;  %3154 = vmatmul.f32.gmra.mxu1 %v5389_v19  ;;  %v2885_v30 = vsub.f32 %v5413_v50, %v6554_v63  ;;  %6769 = vst [vmem:[#allocation27_spill] sm:$0xff] %v5430_v27 }
 0x2a4   : > { %v2131_v3 = vpop.f32.mrf.mxu0 }
 0x2a5   : > { %v1961_v49 = vadd.f32 %v1960_v1, %v1746_v35  ;;  %v5439_v35 = vand.u32 4294901760, %v2762_v12 }
 0x2a6   : > { %v1964_v13 = vpop.f32.mrf.mxu3 }
 0x2a7   : > { %v2127_v23 = vadd.f32 %v2126_v36, %v1961_v49  ;;  %2442 = vmatmul.f32.gmra.mxu2 %v5087_v9  ;;  %2879 = vmatmul.f32.gmra.mxu0 %v2878_v47  ;;  %v2886_v9 = vand.u32 4294901760, %v2885_v30  ;;  %v6557_v36 = vand.u32 4294901760, %v5430_v27  ;;  %v4202_v49 = vld [vmem:[%s4343_s23 + $0x48] sm:$0xff] }
 0x2a8   : > { %v2334_v58 = vpop.f32.mrf.mxu1  ;;  %v2765_v11 = vsel %vm273_vm1, %v4202_v49, 0 }
 0x2a9   : > { %v5433_v25 = vadd.f32 %v2322_v32, %v2127_v23  ;;  %v5447_v23 = vsub.f32 %v2762_v12, %v5439_v35 }
 0x2aa   : > { %v1753_v1 = vpop.f32.mrf.mxu2 }
 0x2ab   : > { %v1754_v60 = vadd.f32 %v1753_v1, %v5124_v0  ;;  %2593 = vmatmul.f32.gmra.mxu3 %v5099_v45  ;;  %3158 = vmatmul.f32.gmra.mxu1 %v5405_v53  ;;  %v2893_v0 = vsub.f32 %v5430_v27, %v6557_v36  ;;  %6770 = vst [vmem:[#allocation28_spill] sm:$0xff] %v5447_v23 }
 0x2ac   : > { %v2136_v47 = vpop.f32.mrf.mxu0 }
 0x2ad   : > { %v1965_v43 = vadd.f32 %v1964_v13, %v1754_v60  ;;  %v5456_v60 = vand.u32 4294901760, %v2765_v11 }
 0x2ae   : > { %v1968_v63 = vpop.f32.mrf.mxu3 }
 0x2af   : > { %v2132_v50 = vadd.f32 %v2131_v3, %v1965_v43  ;;  %2446 = vmatmul.f32.gmra.mxu2 %v5099_v45  ;;  %2887 = vmatmul.f32.gmra.mxu0 %v2886_v9  ;;  %v2894_v45 = vand.u32 4294901760, %v2893_v0  ;;  %v6560_v3 = vand.u32 4294901760, %v5447_v23  ;;  %v4203_v43 = vld [vmem:[%s4343_s23 + $0x50] sm:$0xff] }
 0x2b0   : > { %v2340_v32 = vpop.f32.mrf.mxu1  ;;  %v2768_v49 = vsel %vm273_vm1, %v4203_v43, 0 }
 0x2b1   : > { %v5450_v30 = vadd.f32 %v2328_v7, %v2132_v50  ;;  %v5464_v50 = vsub.f32 %v2765_v11, %v5456_v60 }
 0x2b2   : > { %v1761_v13 = vpop.f32.mrf.mxu2 }
 0x2b3   : > { %v1762_v1 = vadd.f32 %v1761_v13, %v5133_v15  ;;  %2597 = vmatmul.f32.gmra.mxu3 %v5110_v8  ;;  %3162 = vmatmul.f32.gmra.mxu1 %v5422_v10  ;;  %v2901_v15 = vsub.f32 %v5447_v23, %v6560_v3  ;;  %6771 = vst [vmem:[#allocation29_spill] sm:$0xff] %v5464_v50 }
 0x2b4   : > { %v2141_v9 = vpop.f32.mrf.mxu0 }
 0x2b5   : > { %v1969_v12 = vadd.f32 %v1968_v63, %v1762_v1  ;;  %v5473_v1 = vand.u32 4294901760, %v2768_v49 }
 0x2b6   : > { %v1972_v36 = vpop.f32.mrf.mxu3 }
 0x2b7   : > { %v2137_v27 = vadd.f32 %v2136_v47, %v1969_v12  ;;  %2450 = vmatmul.f32.gmra.mxu2 %v5110_v8  ;;  %2895 = vmatmul.f32.gmra.mxu0 %v2894_v45  ;;  %v2902_v8 = vand.u32 4294901760, %v2901_v15  ;;  %v6563_v47 = vand.u32 4294901760, %v5464_v50  ;;  %v4204_v12 = vld [vmem:[%s4343_s23 + $0x58] sm:$0xff] }
 0x2b8   : > { %v2346_v7 = vpop.f32.mrf.mxu1  ;;  %v2771_v43 = vsel %vm273_vm1, %v4204_v12, 0 }
 0x2b9   : > { %v5467_v0 = vadd.f32 %v2334_v58, %v2137_v27  ;;  %v5481_v27 = vsub.f32 %v2768_v49, %v5473_v1 }
 0x2ba   : > { %v1769_v63 = vpop.f32.mrf.mxu2 }
 0x2bb   : > { %v1770_v13 = vadd.f32 %v1769_v63, %v5142_v34  ;;  %2601 = vmatmul.f32.gmra.mxu3 %v5119_v22  ;;  %3166 = vmatmul.f32.gmra.mxu1 %v5439_v35  ;;  %v2909_v34 = vsub.f32 %v5464_v50, %v6563_v47  ;;  %6772 = vst [vmem:[#allocation30_spill] sm:$0xff] %v5481_v27 }
 0x2bc   : > { %v2146_v45 = vpop.f32.mrf.mxu0 }
 0x2bd   : > { %v1973_v11 = vadd.f32 %v1972_v36, %v1770_v13  ;;  %v5490_v13 = vand.u32 4294901760, %v2771_v43 }
 0x2be   : > { %v1976_v3 = vpop.f32.mrf.mxu3 }
 0x2bf   : > { %v2142_v23 = vadd.f32 %v2141_v9, %v1973_v11  ;;  %2454 = vmatmul.f32.gmra.mxu2 %v5119_v22  ;;  %2903 = vmatmul.f32.gmra.mxu0 %v2902_v8  ;;  %v2910_v22 = vand.u32 4294901760, %v2909_v34  ;;  %v6566_v9 = vand.u32 4294901760, %v5481_v27  ;;  %6773 = vst [vmem:[#allocation31_spill] sm:$0xff] %v5490_v13  ;;  %v4205_v11 = vld [vmem:[%s4343_s23 + $0x60] sm:$0xff] }
 0x2c0   : > { %v2352_v58 = vpop.f32.mrf.mxu1  ;;  %v2774_v12 = vsel %vm273_vm1, %v4205_v11, 0 }
 0x2c1   : > { %v5484_v15 = vadd.f32 %v2340_v32, %v2142_v23  ;;  %v5498_v23 = vsub.f32 %v2771_v43, %v5490_v13 }
 0x2c2   : > { %v1777_v36 = vpop.f32.mrf.mxu2 }
 0x2c3   : > { %v1778_v63 = vadd.f32 %v1777_v36, %v5151_v38  ;;  %2605 = vmatmul.f32.gmra.mxu3 %v5128_v57  ;;  %3170 = vmatmul.f32.gmra.mxu1 %v5456_v60  ;;  %v2917_v38 = vsub.f32 %v5481_v27, %v6566_v9  ;;  %6774 = vst [vmem:[#allocation32_spill] sm:$0xff] %v5498_v23 }
 0x2c4   : > { %v2151_v8 = vpop.f32.mrf.mxu0 }
 0x2c5   : > { %v1977_v49 = vadd.f32 %v1976_v3, %v1778_v63  ;;  %v5507_v63 = vand.u32 4294901760, %v2774_v12 }
 0x2c6   : > { %v1980_v47 = vpop.f32.mrf.mxu3 }
 0x2c7   : > { %v2147_v50 = vadd.f32 %v2146_v45, %v1977_v49  ;;  %2458 = vmatmul.f32.gmra.mxu2 %v5128_v57  ;;  %2911 = vmatmul.f32.gmra.mxu0 %v2910_v22  ;;  %v2918_v57 = vand.u32 4294901760, %v2917_v38  ;;  %v6569_v45 = vand.u32 4294901760, %v5498_v23  ;;  %6775 = vst [vmem:[#allocation33_spill] sm:$0xff] %v5507_v63  ;;  %v4206_v49 = vld [vmem:[%s4343_s23 + $0x68] sm:$0xff] }
 0x2c8   : > { %v2358_v32 = vpop.f32.mrf.mxu1  ;;  %v2777_v11 = vsel %vm273_vm1, %v4206_v49, 0 }
 0x2c9   : > { %v5501_v34 = vadd.f32 %v2346_v7, %v2147_v50  ;;  %v5515_v50 = vsub.f32 %v2774_v12, %v5507_v63 }
 0x2ca   : > { %v1785_v3 = vpop.f32.mrf.mxu2 }
 0x2cb   : > { %v1786_v36 = vadd.f32 %v1785_v3, %v5160_v46  ;;  %2609 = vmatmul.f32.gmra.mxu3 %v5137_v5  ;;  %3174 = vmatmul.f32.gmra.mxu1 %v5473_v1  ;;  %v2925_v46 = vsub.f32 %v5498_v23, %v6569_v45  ;;  %6776 = vst [vmem:[#allocation34_spill] sm:$0xff] %v5515_v50 }
 0x2cc   : > { %v2156_v22 = vpop.f32.mrf.mxu0 }
 0x2cd   : > { %v1981_v43 = vadd.f32 %v1980_v47, %v1786_v36  ;;  %v5524_v36 = vand.u32 4294901760, %v2777_v11 }
 0x2ce   : > { %v1984_v9 = vpop.f32.mrf.mxu3 }
 0x2cf   : > { %v2152_v27 = vadd.f32 %v2151_v8, %v1981_v43  ;;  %2462 = vmatmul.f32.gmra.mxu2 %v5137_v5  ;;  %2919 = vmatmul.f32.gmra.mxu0 %v2918_v57  ;;  %v2926_v5 = vand.u32 4294901760, %v2925_v46  ;;  %v6572_v8 = vand.u32 4294901760, %v5515_v50  ;;  %6777 = vst [vmem:[#allocation35_spill] sm:$0xff] %v5524_v36  ;;  %v4207_v43 = vld [vmem:[%s4343_s23 + $0x70] sm:$0xff] }
 0x2d0   : > { %v2364_v7 = vpop.f32.mrf.mxu1  ;;  %v2780_v49 = vsel %vm273_vm1, %v4207_v43, 0 }
 0x2d1   : > { %v5518_v38 = vadd.f32 %v2352_v58, %v2152_v27  ;;  %v5532_v27 = vsub.f32 %v2777_v11, %v5524_v36 }
 0x2d2   : > { %v1793_v47 = vpop.f32.mrf.mxu2 }
 0x2d3   : > { %v1794_v3 = vadd.f32 %v1793_v47, %v5169_v26  ;;  %2613 = vmatmul.f32.gmra.mxu3 %v5146_v29  ;;  %3178 = vmatmul.f32.gmra.mxu1 %v5490_v13  ;;  %v2933_v26 = vsub.f32 %v5515_v50, %v6572_v8  ;;  %6778 = vst [vmem:[#allocation36_spill] sm:$0xff] %v5532_v27  ;;  %v4208_v8 = vld [vmem:[%s4343_s23 + $0x78] sm:$0xff] }
 0x2d4   : > { %v2161_v57 = vpop.f32.mrf.mxu0  ;;  %v2783_v43 = vsel %vm273_vm1, %v4208_v8, 0 }
 0x2d5   : > { %v1985_v12 = vadd.f32 %v1984_v9, %v1794_v3  ;;  %v6577_v3 = vand.u32 4294901760, %v5532_v27 }
 0x2d6   : > { %v1988_v45 = vpop.f32.mrf.mxu3 }
 0x2d7   : > { %v2157_v23 = vadd.f32 %v2156_v22, %v1985_v12  ;;  %2466 = vmatmul.f32.gmra.mxu2 %v5146_v29  ;;  %2927 = vmatmul.f32.gmra.mxu0 %v2926_v5  ;;  %v6780_v22 = vld [vmem:[#allocation3_spill] sm:$0xff]  ;;  %v2934_v29 = vand.u32 4294901760, %v2933_v26  ;;  %v5541_v5 = vand.u32 4294901760, %v2780_v49 }
 0x2d8   : > { %v2370_v58 = vpop.f32.mrf.mxu1 }
 0x2d9   : > { %v5535_v46 = vadd.f32 %v2358_v32, %v2157_v23  ;;  %6781 = vst [vmem:[#allocation3_spill] sm:$0xff] %v5541_v5  ;;  %v5549_v23 = vsub.f32 %v2780_v49, %v5541_v5 }
 0x2da   : > { %v1801_v9 = vpop.f32.mrf.mxu2 }
 0x2db   : > { %6779 = vst [vmem:[#allocation37_spill] sm:$0xff] %v5535_v46  ;;  %v1802_v47 = vadd.f32 %v1801_v9, %v5178_v33  ;;  %2617 = vmatmul.f32.gmra.mxu3 %v6780_v22  ;;  %3182 = vmatmul.f32.gmra.mxu1 %v5507_v63  ;;  %v2941_v33 = vsub.f32 %v5532_v27, %v6577_v3  ;;  %v6784_v9 = vld [vmem:[#allocation7_spill] sm:$0xff]  ;;  %v4209_v27 = vld [vmem:[%s4343_s23 + $0x80] sm:$0xff] }
 0x2dc   : > { %v2166_v12 = vpop.f32.mrf.mxu0  ;;  %6782 = vst [vmem:[#allocation38_spill] sm:$0xff] %v5549_v23 }
 0x2dd   : > { %v1989_v11 = vadd.f32 %v1988_v45, %v1802_v47 }
 0x2de   : > { %v1992_v50 = vpop.f32.mrf.mxu3 }
 0x2df   : > { %v2162_v13 = vadd.f32 %v2161_v57, %v1989_v11  ;;  %2470 = vmatmul.f32.gmra.mxu2 %v6780_v22  ;;  %2935 = vmatmul.f32.gmra.mxu0 %v2934_v29  ;;  %v6785_v57 = vld [vmem:[#allocation2_spill] sm:$0xff]  ;;  %v2942_v22 = vand.u32 4294901760, %v2941_v33  ;;  %v6582_v29 = vand.u32 4294901760, %v5549_v23  ;;  %v5558_v11 = vand.u32 4294901760, %v2783_v43 }
 0x2e0   : > { %v2376_v32 = vpop.f32.mrf.mxu1  ;;  %v2786_v33 = vsel %vm273_vm1, %v4209_v27, 0 }
 0x2e1   : > { %v5552_v26 = vadd.f32 %v2364_v7, %v2162_v13  ;;  %6786 = vst [vmem:[#allocation7_spill] sm:$0xff] %v5558_v11  ;;  %v2949_v13 = vsub.f32 %v5549_v23, %v6582_v29  ;;  %v5566_v7 = vsub.f32 %v2783_v43, %v5558_v11  ;;  %v4210_v23 = vld [vmem:[%s4343_s23 + $0x88] sm:$0xff] }
 0x2e2   : > { %v1809_v45 = vpop.f32.mrf.mxu2 }
 0x2e3   : > { %6783 = vst [vmem:[#allocation39_spill] sm:$0xff] %v5552_v26  ;;  %v1810_v47 = vadd.f32 %v1809_v45, %v6784_v9  ;;  %2621 = vmatmul.f32.gmra.mxu3 %v6785_v57  ;;  %3186 = vmatmul.f32.gmra.mxu1 %v5524_v36  ;;  %v6789_v9 = vld [vmem:[#allocation9_spill] sm:$0xff] }
 0x2e4   : > { %v2171_v3 = vpop.f32.mrf.mxu0  ;;  %6787 = vst [vmem:[#allocation2_spill] sm:$0xff] %v5566_v7 }
 0x2e5   : > { %v1993_v49 = vadd.f32 %v1992_v50, %v1810_v47 }
 0x2e6   : > { %v1996_v63 = vpop.f32.mrf.mxu3 }
 0x2e7   : > { %v2167_v46 = vadd.f32 %v2166_v12, %v1993_v49  ;;  %2474 = vmatmul.f32.gmra.mxu2 %v6785_v57  ;;  %2943 = vmatmul.f32.gmra.mxu0 %v2942_v22  ;;  %v6790_v12 = vld [vmem:[#allocation5_spill] sm:$0xff]  ;;  %v2950_v57 = vand.u32 4294901760, %v2949_v13  ;;  %v6587_v22 = vand.u32 4294901760, %v5566_v7  ;;  %v5575_v49 = vand.u32 4294901760, %v2786_v33 }
 0x2e8   : > { %v2382_v8 = vpop.f32.mrf.mxu1  ;;  %v2789_v13 = vsel %vm273_vm1, %v4210_v23, 0 }
 0x2e9   : > { %v5569_v45 = vadd.f32 %v2370_v58, %v2167_v46  ;;  %6791 = vst [vmem:[#allocation9_spill] sm:$0xff] %v5575_v49  ;;  %v2957_v27 = vsub.f32 %v5566_v7, %v6587_v22  ;;  %v5583_v58 = vsub.f32 %v2786_v33, %v5575_v49  ;;  %v4211_v7 = vld [vmem:[%s4343_s23 + $0x90] sm:$0xff] }
 0x2ea   : > { %v1817_v50 = vpop.f32.mrf.mxu2 }
 0x2eb   : > { %6788 = vst [vmem:[#allocation40_spill] sm:$0xff] %v5569_v45  ;;  %v1818_v47 = vadd.f32 %v1817_v50, %v6789_v9  ;;  %2625 = vmatmul.f32.gmra.mxu3 %v6790_v12  ;;  %3190 = vmatmul.f32.gmra.mxu1 %v5541_v5  ;;  %v6793_v9 = vld [vmem:[#allocation11_spill] sm:$0xff] }
 0x2ec   : > { %v2176_v29 = vpop.f32.mrf.mxu0  ;;  %6792 = vst [vmem:[#allocation5_spill] sm:$0xff] %v5583_v58 }
 0x2ed   : > { %v1997_v43 = vadd.f32 %v1996_v63, %v1818_v47 }
 0x2ee   : > { %v2000_v36 = vpop.f32.mrf.mxu3 }
 0x2ef   : > { %v2172_v26 = vadd.f32 %v2171_v3, %v1997_v43  ;;  %2478 = vmatmul.f32.gmra.mxu2 %v6790_v12  ;;  %2951 = vmatmul.f32.gmra.mxu0 %v2950_v57  ;;  %v6794_v3 = vld [vmem:[#allocation4_spill] sm:$0xff]  ;;  %v2958_v12 = vand.u32 4294901760, %v2957_v27  ;;  %v6592_v57 = vand.u32 4294901760, %v5583_v58  ;;  %v5592_v43 = vand.u32 4294901760, %v2789_v13 }
 0x2f0   : > { %v2388_v46 = vpop.f32.mrf.mxu1  ;;  %v2792_v27 = vsel %vm273_vm1, %v4211_v7, 0 }
 0x2f1   : > { %v5586_v50 = vadd.f32 %v2376_v32, %v2172_v26  ;;  %6795 = vst [vmem:[#allocation11_spill] sm:$0xff] %v5592_v43  ;;  %v2965_v23 = vsub.f32 %v5583_v58, %v6592_v57  ;;  %v5600_v32 = vsub.f32 %v2789_v13, %v5592_v43  ;;  %v4212_v57 = vld [vmem:[%s4343_s23 + $0x98] sm:$0xff] }
 0x2f2   : > { %v1825_v63 = vpop.f32.mrf.mxu2 }
 0x2f3   : > { %v1826_v47 = vadd.f32 %v1825_v63, %v6793_v9  ;;  %2629 = vmatmul.f32.gmra.mxu3 %v6794_v3  ;;  %3194 = vmatmul.f32.gmra.mxu1 %v5558_v11  ;;  %6796 = vst [vmem:[#allocation4_spill] sm:$0xff] %v5600_v32 }
 0x2f4   : > { %v2181_v22 = vpop.f32.mrf.mxu0 }
 0x2f5   : > { %v2001_v33 = vadd.f32 %v2000_v36, %v1826_v47  ;;  %v2966_v47 = vand.u32 4294901760, %v2965_v23 }
 0x2f6   : > { %v2004_v5 = vpop.f32.mrf.mxu3 }
 0x2f7   : > { %v2177_v45 = vadd.f32 %v2176_v29, %v2001_v33  ;;  %2482 = vmatmul.f32.gmra.mxu2 %v6794_v3  ;;  %2959 = vmatmul.f32.gmra.mxu0 %v2958_v12  ;;  %v6798_v29 = vld [vmem:[#allocation6_spill] sm:$0xff]  ;;  %v6597_v3 = vand.u32 4294901760, %v5600_v32  ;;  %v5609_v12 = vand.u32 4294901760, %v2792_v27 }
 0x2f8   : > { %v2394_v26 = vpop.f32.mrf.mxu1 }
 0x2f9   : > { %v5603_v63 = vadd.f32 %v2382_v8, %v2177_v45  ;;  %v5617_v7 = vsub.f32 %v2792_v27, %v5609_v12  ;;  %v2795_v45 = vsel %vm273_vm1, %v4212_v57, 0 }
 0x2fa   : > { %v1833_v36 = vpop.f32.mrf.mxu2 }
 0x2fb   : > { %6797 = vst [vmem:[#allocation41_spill] sm:$0xff] %v5603_v63  ;;  %v1834_v9 = vadd.f32 %v1833_v36, %v5214_v24  ;;  %2633 = vmatmul.f32.gmra.mxu3 %v6798_v29  ;;  %3198 = vmatmul.f32.gmra.mxu1 %v5575_v49  ;;  %v2973_v24 = vsub.f32 %v5600_v32, %v6597_v3  ;;  %v6800_v36 = vld [vmem:[#allocation13_spill] sm:$0xff]  ;;  %v4213_v32 = vld [vmem:[%s4343_s23 + $0xa0] sm:$0xff] }
 0x2fc   : > { %v2186_v33 = vpop.f32.mrf.mxu0  ;;  %6799 = vst [vmem:[#allocation6_spill] sm:$0xff] %v5617_v7 }
 0x2fd   : > { %v2005_v13 = vadd.f32 %v2004_v5, %v1834_v9 }
 0x2fe   : > { %v2008_v58 = vpop.f32.mrf.mxu3 }
 0x2ff   : > { %v2182_v11 = vadd.f32 %v2181_v22, %v2005_v13  ;;  %2486 = vmatmul.f32.gmra.mxu2 %v6798_v29  ;;  %2967 = vmatmul.f32.gmra.mxu0 %v2966_v47  ;;  %v6801_v22 = vld [vmem:[#allocation8_spill] sm:$0xff]  ;;  %v2974_v29 = vand.u32 4294901760, %v2973_v24  ;;  %v6602_v47 = vand.u32 4294901760, %v5617_v7  ;;  %v5626_v13 = vand.u32 4294901760, %v2795_v45 }
 0x300   : > { %v2400_v8 = vpop.f32.mrf.mxu1  ;;  %v2798_v24 = vsel %vm273_vm1, %v4213_v32, 0 }
 0x301   : > { %v5620_v23 = vadd.f32 %v2388_v46, %v2182_v11  ;;  %v2981_v11 = vsub.f32 %v5617_v7, %v6602_v47  ;;  %v5634_v46 = vsub.f32 %v2795_v45, %v5626_v13  ;;  %v4214_v47 = vld [vmem:[%s4343_s23 + $0xa8] sm:$0xff] }
 0x302   : > { %v1841_v5 = vpop.f32.mrf.mxu2 }
 0x303   : > { %v1842_v9 = vadd.f32 %v1841_v5, %v6800_v36  ;;  %2637 = vmatmul.f32.gmra.mxu3 %v6801_v22  ;;  %3202 = vmatmul.f32.gmra.mxu1 %v5592_v43  ;;  %6802 = vst [vmem:[#allocation13_spill] sm:$0xff] %v5634_v46 }
 0x304   : > { %v2191_v3 = vpop.f32.mrf.mxu0 }
 0x305   : > { %v2009_v27 = vadd.f32 %v2008_v58, %v1842_v9  ;;  %v2982_v9 = vand.u32 4294901760, %v2981_v11 }
 0x306   : > { %v2012_v49 = vpop.f32.mrf.mxu3 }
 0x307   : > { %v2187_v63 = vadd.f32 %v2186_v33, %v2009_v27  ;;  %2490 = vmatmul.f32.gmra.mxu2 %v6801_v22  ;;  %2975 = vmatmul.f32.gmra.mxu0 %v2974_v29  ;;  %v6803_v33 = vld [vmem:[#allocation10_spill] sm:$0xff]  ;;  %v6607_v22 = vand.u32 4294901760, %v5634_v46  ;;  %v5643_v29 = vand.u32 4294901760, %v2798_v24 }
 0x308   : > { %v2406_v57 = vpop.f32.mrf.mxu1 }
 0x309   : > { %v5637_v5 = vadd.f32 %v2394_v26, %v2187_v63  ;;  %v5651_v32 = vsub.f32 %v2798_v24, %v5643_v29  ;;  %v2801_v63 = vsel %vm273_vm1, %v4214_v47, 0 }
 0x30a   : > { %v1849_v58 = vpop.f32.mrf.mxu2 }
 0x30b   : > { %v1850_v36 = vadd.f32 %v1849_v58, %v5237_v39  ;;  %2641 = vmatmul.f32.gmra.mxu3 %v6803_v33  ;;  %3206 = vmatmul.f32.gmra.mxu1 %v5609_v12  ;;  %v2989_v39 = vsub.f32 %v5634_v46, %v6607_v22 }
 0x30c   : > { %v2196_v27 = vpop.f32.mrf.mxu0 }
 0x30d   : > { %v2013_v45 = vadd.f32 %v2012_v49, %v1850_v36  ;;  %v6610_v36 = vand.u32 4294901760, %v5651_v32 }
 0x30e   : > { %v2016_v7 = vpop.f32.mrf.mxu3 }
 0x30f   : > { %v2192_v43 = vadd.f32 %v2191_v3, %v2013_v45  ;;  %2494 = vmatmul.f32.gmra.mxu2 %v6803_v33  ;;  %2983 = vmatmul.f32.gmra.mxu0 %v2982_v9  ;;  %v2990_v3 = vand.u32 4294901760, %v2989_v39  ;;  %v5660_v33 = vand.u32 4294901760, %v2801_v63  ;;  %v4215_v45 = vld [vmem:[%s4343_s23 + $0xb0] sm:$0xff] }
 0x310   : > { %v2412_v26 = vpop.f32.mrf.mxu1  ;;  %v2804_v47 = vsel %vm273_vm1, %v4215_v45, 0 }
 0x311   : > { %v5654_v11 = vadd.f32 %v2400_v8, %v2192_v43  ;;  %v5668_v43 = vsub.f32 %v2801_v63, %v5660_v33 }
 0x312   : > { %v1857_v49 = vpop.f32.mrf.mxu2 }
 0x313   : > { %v1858_v58 = vadd.f32 %v1857_v49, %v5247_v59  ;;  %2645 = vmatmul.f32.gmra.mxu3 %v5218_v40  ;;  %3210 = vmatmul.f32.gmra.mxu1 %v5626_v13  ;;  %v2997_v59 = vsub.f32 %v5651_v32, %v6610_v36  ;;  %v6611_v49 = vand.u32 4294901760, %v5668_v43 }
 0x314   : > { %v2201_v9 = vpop.f32.mrf.mxu0 }
 0x315   : > { %v2017_v24 = vadd.f32 %v2016_v7, %v1858_v58  ;;  %v5679_v58 = vand.u32 4294901760, %v2804_v47 }
 0x316   : > { %v2020_v22 = vpop.f32.mrf.mxu3 }
 0x317   : > { %v2197_v46 = vadd.f32 %v2196_v27, %v2017_v24  ;;  %2498 = vmatmul.f32.gmra.mxu2 %v5218_v40  ;;  %2991 = vmatmul.f32.gmra.mxu0 %v2990_v3  ;;  %v2998_v40 = vand.u32 4294901760, %v2997_v59  ;;  %v4216_v24 = vld [vmem:[%s4343_s23 + $0xb8] sm:$0xff] }
 0x318   : > { %v5670_v8 = vpop.f32.mrf.mxu1  ;;  %v2807_v59 = vsel %vm273_vm1, %v4216_v24, 0 }
 0x319   : > { %v5673_v39 = vadd.f32 %v2406_v57, %v2197_v46  ;;  %v5689_v46 = vsub.f32 %v2804_v47, %v5679_v58 }
 0x31a   : > { %v1865_v7 = vpop.f32.mrf.mxu2 }
 0x31b   : > { %v1866_v27 = vadd.f32 %v1865_v7, %v5256_v2  ;;  %2649 = vmatmul.f32.gmra.mxu3 %v5230_v62  ;;  %3214 = vmatmul.f32.gmra.mxu1 %v5643_v29  ;;  %v3005_v2 = vsub.f32 %v5668_v43, %v6611_v49  ;;  %6804 = vst [vmem:[#allocation8_spill] sm:$0xff] %v5689_v46  ;;  %v4217_v49 = vld [vmem:[%s4343_s23 + $0xc0] sm:$0xff] }
 0x31c   : > { %v5681_v63 = vpop.f32.mrf.mxu0 }
 0x31d   : > { %v2021_v3 = vadd.f32 %v2020_v22, %v1866_v27  ;;  %v6612_v27 = vand.u32 4294901760, %v5689_v46 }
 0x31e   : > { %v2586_v36 = vpop.f32.mrf.mxu3 }
 0x31f   : > { %v2202_v45 = vadd.f32 %v2201_v9, %v2021_v3  ;;  %2502 = vmatmul.f32.gmra.mxu2 %v5230_v62  ;;  %2999 = vmatmul.f32.gmra.mxu0 %v2998_v40  ;;  %v3006_v62 = vand.u32 4294901760, %v3005_v2  ;;  %v5700_v40 = vand.u32 4294901760, %v2807_v59  ;;  %v2810_v2 = vsel %vm273_vm1, %v4217_v49, 0 }
 0x320   : > { %v5691_v57 = vpop.f32.mrf.mxu1 }
 0x321   : > { %v5694_v7 = vadd.f32 %v2412_v26, %v2202_v45  ;;  %v5712_v26 = vsub.f32 %v2807_v59, %v5700_v40 }
 0x322   : > { %v2439_v22 = vpop.f32.mrf.mxu2 }
 0x323   : > { %v2440_v9 = vadd.f32 %v2439_v22, %v5265_v42  ;;  %2653 = vmatmul.f32.gmra.mxu3 %v5241_v17  ;;  %3218 = vmatmul.f32.gmra.mxu1 %v5660_v33  ;;  %v3013_v42 = vsub.f32 %v5689_v46, %v6612_v27  ;;  %6805 = vst [vmem:[#allocation10_spill] sm:$0xff] %v5712_v26  ;;  %v4218_v46 = vld [vmem:[%s4343_s23 + $0xc8] sm:$0xff] }
 0x324   : > { %v5702_v47 = vpop.f32.mrf.mxu0 }
 0x325   : > { %v5704_v3 = vadd.f32 %v2586_v36, %v2440_v9  ;;  %v3014_v9 = vand.u32 4294901760, %v3013_v42 }
 0x326   : > { %v2590_v24 = vpop.f32.mrf.mxu3 }
 0x327   : > { %2506 = vmatmul.f32.gmra.mxu2 %v5241_v17  ;;  %3007 = vmatmul.f32.gmra.mxu0 %v3006_v62  ;;  %v6615_v17 = vand.u32 4294901760, %v5712_v26  ;;  %v5721_v62 = vand.u32 4294901760, %v2810_v2 }
 0x328   : > { %v5714_v45 = vpop.f32.mrf.mxu1 }
 0x329   : > { %6806 = vst [vmem:[#allocation42_spill] sm:$0xff] %v5714_v45  ;;  %v5733_v49 = vsub.f32 %v2810_v2, %v5721_v62 }
 0x32a   : > { %v2443_v22 = vpop.f32.mrf.mxu2 }
 0x32b   : > { %v2444_v36 = vadd.f32 %v2443_v22, %v5274_v51  ;;  %2657 = vmatmul.f32.gmra.mxu3 %v5251_v21  ;;  %3222 = vmatmul.f32.gmra.mxu1 %v5679_v58  ;;  %v3021_v51 = vsub.f32 %v5712_v26, %v6615_v17  ;;  %6809 = vst [vmem:[#allocation45_spill] sm:$0xff] %v5733_v49  ;;  %v2813_v22 = vsel %vm273_vm1, %v4218_v46, 0  ;;  %v4219_v26 = vld [vmem:[%s4343_s23 + $0xd0] sm:$0xff] }
 0x32c   : > { %v5723_v27 = vpop.f32.mrf.mxu0 }
 0x32d   : > { %6807 = vst [vmem:[#allocation43_spill] sm:$0xff] %v5723_v27  ;;  %v5725_v59 = vadd.f32 %v2590_v24, %v2444_v36  ;;  %v6811_v36 = vld [vmem:[#allocation12_spill] sm:$0xff] }
 0x32e   : > { %v2594_v45 = vpop.f32.mrf.mxu3 }
 0x32f   : > { %6808 = vst [vmem:[#allocation44_spill] sm:$0xff] %v5725_v59  ;;  %2510 = vmatmul.f32.gmra.mxu2 %v5251_v21  ;;  %3015 = vmatmul.f32.gmra.mxu0 %v3014_v9  ;;  %v3022_v59 = vand.u32 4294901760, %v3021_v51  ;;  %v6618_v21 = vand.u32 4294901760, %v5733_v49  ;;  %v5742_v9 = vand.u32 4294901760, %v2813_v22  ;;  %v2816_v51 = vsel %vm273_vm1, %v4219_v26, 0 }
 0x330   : > { %v5735_v42 = vpop.f32.mrf.mxu1 }
 0x331   : > { %6810 = vst [vmem:[#allocation46_spill] sm:$0xff] %v5735_v42  ;;  %v5754_v46 = vsub.f32 %v2813_v22, %v5742_v9 }
 0x332   : > { %v2447_v27 = vpop.f32.mrf.mxu2 }
 0x333   : > { %v2448_v24 = vadd.f32 %v2447_v27, %v5283_v48  ;;  %2661 = vmatmul.f32.gmra.mxu3 %v6811_v36  ;;  %3226 = vmatmul.f32.gmra.mxu1 %v5700_v40  ;;  %v3029_v48 = vsub.f32 %v5733_v49, %v6618_v21  ;;  %6814 = vst [vmem:[#allocation48_spill] sm:$0xff] %v5754_v46  ;;  %v4220_v49 = vld [vmem:[%s4343_s23 + $0xd8] sm:$0xff] }
 0x334   : > { %v5744_v17 = vpop.f32.mrf.mxu0 }
 0x335   : > { %6812 = vst [vmem:[#allocation12_spill] sm:$0xff] %v5744_v17  ;;  %v5746_v2 = vadd.f32 %v2594_v45, %v2448_v24  ;;  %v6816_v24 = vld [vmem:[#allocation15_spill] sm:$0xff] }
 0x336   : > { %v2598_v42 = vpop.f32.mrf.mxu3 }
 0x337   : > { %6813 = vst [vmem:[#allocation47_spill] sm:$0xff] %v5746_v2  ;;  %2514 = vmatmul.f32.gmra.mxu2 %v6811_v36  ;;  %3023 = vmatmul.f32.gmra.mxu0 %v3022_v59  ;;  %v3030_v2 = vand.u32 4294901760, %v3029_v48  ;;  %v6621_v59 = vand.u32 4294901760, %v5754_v46  ;;  %v5763_v36 = vand.u32 4294901760, %v2816_v51  ;;  %v2819_v48 = vsel %vm273_vm1, %v4220_v49, 0 }
 0x338   : > { %v5756_v27 = vpop.f32.mrf.mxu1 }
 0x339   : > { %6815 = vst [vmem:[#allocation49_spill] sm:$0xff] %v5756_v27  ;;  %v5775_v26 = vsub.f32 %v2816_v51, %v5763_v36 }
 0x33a   : > { %v2451_v17 = vpop.f32.mrf.mxu2 }
 0x33b   : > { %v2452_v45 = vadd.f32 %v2451_v17, %v5292_v18  ;;  %2665 = vmatmul.f32.gmra.mxu3 %v6816_v24  ;;  %3230 = vmatmul.f32.gmra.mxu1 %v5721_v62  ;;  %v3037_v18 = vsub.f32 %v5754_v46, %v6621_v59  ;;  %6819 = vst [vmem:[#allocation51_spill] sm:$0xff] %v5775_v26  ;;  %v4221_v46 = vld [vmem:[%s4343_s23 + $0xe0] sm:$0xff] }
 0x33c   : > { %v5765_v21 = vpop.f32.mrf.mxu0 }
 0x33d   : > { %6817 = vst [vmem:[#allocation15_spill] sm:$0xff] %v5765_v21  ;;  %v5767_v22 = vadd.f32 %v2598_v42, %v2452_v45  ;;  %v6821_v45 = vld [vmem:[#allocation14_spill] sm:$0xff] }
 0x33e   : > { %v2602_v27 = vpop.f32.mrf.mxu3 }
 0x33f   : > { %6818 = vst [vmem:[#allocation50_spill] sm:$0xff] %v5767_v22  ;;  %2518 = vmatmul.f32.gmra.mxu2 %v6816_v24  ;;  %3031 = vmatmul.f32.gmra.mxu0 %v3030_v2  ;;  %v3038_v22 = vand.u32 4294901760, %v3037_v18  ;;  %v6624_v2 = vand.u32 4294901760, %v5775_v26  ;;  %v5784_v24 = vand.u32 4294901760, %v2819_v48  ;;  %v2822_v18 = vsel %vm273_vm1, %v4221_v46, 0 }
 0x340   : > { %v5777_v17 = vpop.f32.mrf.mxu1 }
 0x341   : > { %6820 = vst [vmem:[#allocation52_spill] sm:$0xff] %v5777_v17  ;;  %v5796_v49 = vsub.f32 %v2819_v48, %v5784_v24 }
 0x342   : > { %v2455_v21 = vpop.f32.mrf.mxu2 }
 0x343   : > { %v2456_v42 = vadd.f32 %v2455_v21, %v5301_v41  ;;  %2669 = vmatmul.f32.gmra.mxu3 %v6821_v45  ;;  %3234 = vmatmul.f32.gmra.mxu1 %v5742_v9  ;;  %v3045_v41 = vsub.f32 %v5775_v26, %v6624_v2  ;;  %6824 = vst [vmem:[#allocation54_spill] sm:$0xff] %v5796_v49  ;;  %v4222_v26 = vld [vmem:[%s4343_s23 + $0xe8] sm:$0xff] }
 0x344   : > { %v5786_v59 = vpop.f32.mrf.mxu0 }
 0x345   : > { %6822 = vst [vmem:[#allocation14_spill] sm:$0xff] %v5786_v59  ;;  %v5788_v51 = vadd.f32 %v2602_v27, %v2456_v42  ;;  %v6826_v42 = vld [vmem:[#allocation16_spill] sm:$0xff] }
 0x346   : > { %v2606_v17 = vpop.f32.mrf.mxu3 }
 0x347   : > { %6823 = vst [vmem:[#allocation53_spill] sm:$0xff] %v5788_v51  ;;  %2522 = vmatmul.f32.gmra.mxu2 %v6821_v45  ;;  %3039 = vmatmul.f32.gmra.mxu0 %v3038_v22  ;;  %v3046_v51 = vand.u32 4294901760, %v3045_v41  ;;  %v6627_v22 = vand.u32 4294901760, %v5796_v49  ;;  %v5805_v45 = vand.u32 4294901760, %v2822_v18  ;;  %v2825_v41 = vsel %vm273_vm1, %v4222_v26, 0 }
 0x348   : > { %v5798_v21 = vpop.f32.mrf.mxu1 }
 0x349   : > { %6825 = vst [vmem:[#allocation55_spill] sm:$0xff] %v5798_v21  ;;  %v5817_v46 = vsub.f32 %v2822_v18, %v5805_v45 }
 0x34a   : > { %v2459_v59 = vpop.f32.mrf.mxu2 }
 0x34b   : > { %v2460_v27 = vadd.f32 %v2459_v59, %v5310_v56  ;;  %2673 = vmatmul.f32.gmra.mxu3 %v6826_v42  ;;  %3238 = vmatmul.f32.gmra.mxu1 %v5763_v36  ;;  %v3053_v56 = vsub.f32 %v5796_v49, %v6627_v22  ;;  %6829 = vst [vmem:[#allocation57_spill] sm:$0xff] %v5817_v46  ;;  %v4223_v49 = vld [vmem:[%s4343_s23 + $0xf0] sm:$0xff] }
 0x34c   : > { %v5807_v2 = vpop.f32.mrf.mxu0 }
 0x34d   : > { %6827 = vst [vmem:[#allocation16_spill] sm:$0xff] %v5807_v2  ;;  %v5809_v48 = vadd.f32 %v2606_v17, %v2460_v27  ;;  %v6831_v27 = vld [vmem:[#allocation17_spill] sm:$0xff] }
 0x34e   : > { %v2610_v21 = vpop.f32.mrf.mxu3 }
 0x34f   : > { %6828 = vst [vmem:[#allocation56_spill] sm:$0xff] %v5809_v48  ;;  %2526 = vmatmul.f32.gmra.mxu2 %v6826_v42  ;;  %3047 = vmatmul.f32.gmra.mxu0 %v3046_v51  ;;  %v3054_v48 = vand.u32 4294901760, %v3053_v56  ;;  %v6630_v51 = vand.u32 4294901760, %v5817_v46  ;;  %v5826_v42 = vand.u32 4294901760, %v2825_v41  ;;  %v2828_v56 = vsel %vm273_vm1, %v4223_v49, 0 }
 0x350   : > { %v5819_v59 = vpop.f32.mrf.mxu1 }
 0x351   : > { %6830 = vst [vmem:[#allocation58_spill] sm:$0xff] %v5819_v59  ;;  %v5838_v26 = vsub.f32 %v2825_v41, %v5826_v42 }
 0x352   : > { %v2463_v2 = vpop.f32.mrf.mxu2 }
 0x353   : > { %v2464_v17 = vadd.f32 %v2463_v2, %v5319_v4  ;;  %2677 = vmatmul.f32.gmra.mxu3 %v6831_v27  ;;  %3242 = vmatmul.f32.gmra.mxu1 %v5784_v24  ;;  %v3061_v4 = vsub.f32 %v5817_v46, %v6630_v51  ;;  %6834 = vst [vmem:[#allocation60_spill] sm:$0xff] %v5838_v26  ;;  %v4224_v46 = vld [vmem:[%s4343_s23 + $0xf8] sm:$0xff] }
 0x354   : > { %v5828_v22 = vpop.f32.mrf.mxu0 }
 0x355   : > { %6832 = vst [vmem:[#allocation17_spill] sm:$0xff] %v5828_v22  ;;  %v5830_v18 = vadd.f32 %v2610_v21, %v2464_v17  ;;  %v6836_v17 = vld [vmem:[#allocation18_spill] sm:$0xff] }
 0x356   : > { %v2614_v59 = vpop.f32.mrf.mxu3 }
 0x357   : > { %6833 = vst [vmem:[#allocation59_spill] sm:$0xff] %v5830_v18  ;;  %2530 = vmatmul.f32.gmra.mxu2 %v6831_v27  ;;  %3055 = vmatmul.f32.gmra.mxu0 %v3054_v48  ;;  %v3062_v18 = vand.u32 4294901760, %v3061_v4  ;;  %v6633_v48 = vand.u32 4294901760, %v5838_v26  ;;  %v5847_v27 = vand.u32 4294901760, %v2828_v56  ;;  %v2831_v4 = vsel %vm273_vm1, %v4224_v46, 0 }
 0x358   : > { %v5840_v2 = vpop.f32.mrf.mxu1 }
 0x359   : > { %6835 = vst [vmem:[#allocation61_spill] sm:$0xff] %v5840_v2  ;;  %v5859_v49 = vsub.f32 %v2828_v56, %v5847_v27 }
 0x35a   : > { %v2467_v22 = vpop.f32.mrf.mxu2 }
 0x35b   : > { %v2468_v21 = vadd.f32 %v2467_v22, %v5328_v20  ;;  %2681 = vmatmul.f32.gmra.mxu3 %v6836_v17  ;;  %3246 = vmatmul.f32.gmra.mxu1 %v5805_v45  ;;  %v3069_v20 = vsub.f32 %v5838_v26, %v6633_v48  ;;  %6839 = vst [vmem:[#allocation63_spill] sm:$0xff] %v5859_v49  ;;  %v4225_v26 = vld [vmem:[%s4343_s23 + $0x100] sm:$0xff] }
 0x35c   : > { %v5849_v51 = vpop.f32.mrf.mxu0 }
 0x35d   : > { %6837 = vst [vmem:[#allocation18_spill] sm:$0xff] %v5849_v51  ;;  %v5851_v41 = vadd.f32 %v2614_v59, %v2468_v21  ;;  %v6841_v21 = vld [vmem:[#allocation19_spill] sm:$0xff] }
 0x35e   : > { %v2618_v2 = vpop.f32.mrf.mxu3 }
 0x35f   : > { %6838 = vst [vmem:[#allocation62_spill] sm:$0xff] %v5851_v41  ;;  %2534 = vmatmul.f32.gmra.mxu2 %v6836_v17  ;;  %3063 = vmatmul.f32.gmra.mxu0 %v3062_v18  ;;  %v3070_v41 = vand.u32 4294901760, %v3069_v20  ;;  %v6636_v18 = vand.u32 4294901760, %v5859_v49  ;;  %v5868_v17 = vand.u32 4294901760, %v2831_v4  ;;  %v2834_v20 = vsel %vm273_vm1, %v4225_v26, 0 }
 0x360   : > { %v5861_v22 = vpop.f32.mrf.mxu1 }
 0x361   : > { %6840 = vst [vmem:[#allocation64_spill] sm:$0xff] %v5861_v22  ;;  %v5880_v46 = vsub.f32 %v2831_v4, %v5868_v17 }
 0x362   : > { %v2471_v51 = vpop.f32.mrf.mxu2 }
 0x363   : > { %v2472_v59 = vadd.f32 %v2471_v51, %v5337_v44  ;;  %2685 = vmatmul.f32.gmra.mxu3 %v6841_v21  ;;  %3250 = vmatmul.f32.gmra.mxu1 %v5826_v42  ;;  %v3077_v44 = vsub.f32 %v5859_v49, %v6636_v18  ;;  %6844 = vst [vmem:[#allocation66_spill] sm:$0xff] %v5880_v46  ;;  %v4226_v49 = vld [vmem:[%s4343_s23 + $0x108] sm:$0xff] }
 0x364   : > { %v5870_v48 = vpop.f32.mrf.mxu0 }
 0x365   : > { %6842 = vst [vmem:[#allocation19_spill] sm:$0xff] %v5870_v48  ;;  %v5872_v56 = vadd.f32 %v2618_v2, %v2472_v59  ;;  %v6846_v59 = vld [vmem:[#allocation20_spill] sm:$0xff] }
 0x366   : > { %v2622_v22 = vpop.f32.mrf.mxu3 }
 0x367   : > { %6843 = vst [vmem:[#allocation65_spill] sm:$0xff] %v5872_v56  ;;  %2538 = vmatmul.f32.gmra.mxu2 %v6841_v21  ;;  %3071 = vmatmul.f32.gmra.mxu0 %v3070_v41  ;;  %v3078_v56 = vand.u32 4294901760, %v3077_v44  ;;  %v6639_v41 = vand.u32 4294901760, %v5880_v46  ;;  %v5889_v21 = vand.u32 4294901760, %v2834_v20  ;;  %v2837_v44 = vsel %vm273_vm1, %v4226_v49, 0 }
 0x368   : > { %v5882_v51 = vpop.f32.mrf.mxu1 }
 0x369   : > { %6845 = vst [vmem:[#allocation67_spill] sm:$0xff] %v5882_v51  ;;  %v5901_v26 = vsub.f32 %v2834_v20, %v5889_v21 }
 0x36a   : > { %v2475_v48 = vpop.f32.mrf.mxu2  ;;  %6847 = vst [vmem:[#allocation20_spill] sm:$0xff] %v5889_v21 }
 0x36b   : > { %v2476_v2 = vadd.f32 %v2475_v48, %v5346_v52  ;;  %2689 = vmatmul.f32.gmra.mxu3 %v6846_v59  ;;  %3254 = vmatmul.f32.gmra.mxu1 %v5847_v27  ;;  %v3085_v52 = vsub.f32 %v5880_v46, %v6639_v41  ;;  %6850 = vst [vmem:[#allocation70_spill] sm:$0xff] %v5901_v26  ;;  %v4227_v46 = vld [vmem:[%s4343_s23 + $0x110] sm:$0xff] }
 0x36c   : > { %v5891_v18 = vpop.f32.mrf.mxu0 }
 0x36d   : > { %6848 = vst [vmem:[#allocation68_spill] sm:$0xff] %v5891_v18  ;;  %v5893_v4 = vadd.f32 %v2622_v22, %v2476_v2  ;;  %v6852_v2 = vld [vmem:[#allocation21_spill] sm:$0xff] }
 0x36e   : > { %v2626_v51 = vpop.f32.mrf.mxu3 }
 0x36f   : > { %6849 = vst [vmem:[#allocation69_spill] sm:$0xff] %v5893_v4  ;;  %2542 = vmatmul.f32.gmra.mxu2 %v6846_v59  ;;  %3079 = vmatmul.f32.gmra.mxu0 %v3078_v56  ;;  %v3086_v4 = vand.u32 4294901760, %v3085_v52  ;;  %v6642_v56 = vand.u32 4294901760, %v5901_v26  ;;  %v5910_v59 = vand.u32 4294901760, %v2837_v44  ;;  %v2840_v52 = vsel %vm273_vm1, %v4227_v46, 0 }
 0x370   : > { %v5903_v48 = vpop.f32.mrf.mxu1 }
 0x371   : > { %6851 = vst [vmem:[#allocation71_spill] sm:$0xff] %v5903_v48  ;;  %v5922_v49 = vsub.f32 %v2837_v44, %v5910_v59 }
 0x372   : > { %v2479_v18 = vpop.f32.mrf.mxu2  ;;  %6853 = vst [vmem:[#allocation21_spill] sm:$0xff] %v5910_v59 }
 0x373   : > { %v2480_v22 = vadd.f32 %v2479_v18, %v5355_v61  ;;  %2693 = vmatmul.f32.gmra.mxu3 %v6852_v2  ;;  %3258 = vmatmul.f32.gmra.mxu1 %v5868_v17  ;;  %v3093_v61 = vsub.f32 %v5901_v26, %v6642_v56  ;;  %6856 = vst [vmem:[#allocation74_spill] sm:$0xff] %v5922_v49  ;;  %v4228_v26 = vld [vmem:[%s4343_s23 + $0x118] sm:$0xff] }
 0x374   : > { %v5912_v41 = vpop.f32.mrf.mxu0 }
 0x375   : > { %6854 = vst [vmem:[#allocation72_spill] sm:$0xff] %v5912_v41  ;;  %v5914_v20 = vadd.f32 %v2626_v51, %v2480_v22  ;;  %v6858_v22 = vld [vmem:[#allocation22_spill] sm:$0xff] }
 0x376   : > { %v2630_v48 = vpop.f32.mrf.mxu3 }
 0x377   : > { %6855 = vst [vmem:[#allocation73_spill] sm:$0xff] %v5914_v20  ;;  %2546 = vmatmul.f32.gmra.mxu2 %v6852_v2  ;;  %3087 = vmatmul.f32.gmra.mxu0 %v3086_v4  ;;  %v3094_v20 = vand.u32 4294901760, %v3093_v61  ;;  %v6647_v4 = vand.u32 4294901760, %v5922_v49  ;;  %v5931_v2 = vand.u32 4294901760, %v2840_v52  ;;  %v2843_v61 = vsel %vm273_vm1, %v4228_v26, 0 }
 0x378   : > { %v5924_v18 = vpop.f32.mrf.mxu1 }
 0x379   : > { %6857 = vst [vmem:[#allocation75_spill] sm:$0xff] %v5924_v18  ;;  %v5943_v46 = vsub.f32 %v2840_v52, %v5931_v2 }
 0x37a   : > { %v2483_v41 = vpop.f32.mrf.mxu2 }
 0x37b   : > { %v2484_v51 = vadd.f32 %v2483_v41, %v5364_v14  ;;  %2697 = vmatmul.f32.gmra.mxu3 %v6858_v22  ;;  %3262 = vmatmul.f32.gmra.mxu1 %v5889_v21  ;;  %v3101_v14 = vsub.f32 %v5922_v49, %v6647_v4 }
 0x37c   : > { %v5933_v56 = vpop.f32.mrf.mxu0 }
 0x37d   : > { %v5935_v44 = vadd.f32 %v2630_v48, %v2484_v51  ;;  %v6861_v51 = vld [vmem:[#allocation23_spill] sm:$0xff] }
 0x37e   : > { %v2634_v18 = vpop.f32.mrf.mxu3 }
 0x37f   : > { %6859 = vst [vmem:[#allocation22_spill] sm:$0xff] %v5935_v44  ;;  %2550 = vmatmul.f32.gmra.mxu2 %v6858_v22  ;;  %3095 = vmatmul.f32.gmra.mxu0 %v3094_v20  ;;  %v3102_v44 = vand.u32 4294901760, %v3101_v14  ;;  %v6652_v20 = vand.u32 4294901760, %v5943_v46  ;;  %v5952_v22 = vand.u32 4294901760, %v2843_v61 }
 0x380   : > { %v5945_v41 = vpop.f32.mrf.mxu1 }
 0x381   : > { %6860 = vst [vmem:[#allocation76_spill] sm:$0xff] %v5945_v41 }
 0x382   : > { %v2487_v21 = vpop.f32.mrf.mxu2 }
 0x383   : > { %v2488_v48 = vadd.f32 %v2487_v21, %v5373_v37  ;;  %2701 = vmatmul.f32.gmra.mxu3 %v6861_v51  ;;  %3266 = vmatmul.f32.gmra.mxu1 %v5910_v59  ;;  %v3109_v37 = vsub.f32 %v5943_v46, %v6652_v20  ;;  %v5963_v21 = vsub.f32 %v2843_v61, %v5952_v22  ;;  %v6863_v59 = vld [vmem:[#allocation24_spill] sm:$0xff] }
 0x384   : > { %v5954_v4 = vpop.f32.mrf.mxu0 }
 0x385   : > { %v5956_v52 = vadd.f32 %v2634_v18, %v2488_v48  ;;  %v3110_v18 = vand.u32 4294901760, %v3109_v37  ;;  %v6653_v48 = vand.u32 4294901760, %v5963_v21 }
 0x386   : > { %v2638_v49 = vpop.f32.mrf.mxu3 }
 0x387   : > { %2554 = vmatmul.f32.gmra.mxu2 %v6861_v51  ;;  %3103 = vmatmul.f32.gmra.mxu0 %v3102_v44  ;;  %v3117_v61 = vsub.f32 %v5963_v21, %v6653_v48 }
 0x388   : > { %v5965_v26 = vpop.f32.mrf.mxu1 }
 0x389   : > { %6862 = vst [vmem:[#allocation23_spill] sm:$0xff] %v5965_v26  ;;  %v3118_v26 = vand.u32 4294901760, %v3117_v61 }
 0x38a   : > { %v2491_v14 = vpop.f32.mrf.mxu2 }
 0x38b   : > { %v2492_v41 = vadd.f32 %v2491_v14, %v5384_v28  ;;  %2705 = vmatmul.f32.gmra.mxu3 %v6863_v59  ;;  %3270 = vmatmul.f32.gmra.mxu1 %v5931_v2 }
 0x38c   : > { %v5971_v44 = vpop.f32.mrf.mxu0 }
 0x38d   : > { %v5973_v51 = vadd.f32 %v2638_v49, %v2492_v41 }
 0x38e   : > { %v2642_v20 = vpop.f32.mrf.mxu3 }
 0x38f   : > { %2558 = vmatmul.f32.gmra.mxu2 %v6863_v59  ;;  %3111 = vmatmul.f32.gmra.mxu0 %v3110_v18 }
 0x390   : > { %v5979_v28 = vpop.f32.mrf.mxu1 }
 0x391   : > { %6864 = vst [vmem:[#allocation24_spill] sm:$0xff] %v5979_v28 }
 0x392   : > { %v2495_v14 = vpop.f32.mrf.mxu2 }
 0x393   : > { %v2496_v37 = vadd.f32 %v2495_v14, %v5399_v54  ;;  %2709 = vmatmul.f32.gmra.mxu3 %v5368_v55  ;;  %3274 = vmatmul.f32.gmra.mxu1 %v5952_v22  ;;  %v6866_v54 = vand.u32 4294901760, %v5381_v6 }
 0x394   : > { %v5984_v49 = vpop.f32.mrf.mxu0 }
 0x395   : > { %v5986_v41 = vadd.f32 %v2642_v20, %v2496_v37 }
 0x396   : > { %v2646_v59 = vpop.f32.mrf.mxu3 }
 0x397   : > { %2562 = vmatmul.f32.gmra.mxu2 %v5368_v55  ;;  %3119 = vmatmul.f32.gmra.mxu0 %v3118_v26 }
 0x398   : > { %v5989_v18 = vpop.f32.mrf.mxu1 }
 0x399   : > { %6865 = vst [vmem:[#allocation77_spill] sm:$0xff] %v5989_v18 }
 0x39a   : > { %v2499_v48 = vpop.f32.mrf.mxu2 }
 0x39b   : > { %v2500_v28 = vadd.f32 %v2499_v48, %v5416_v16  ;;  %3480 = vmatmul.f32.vlgmr.msra.gmra.mxu3 %v6866_v54  ;;  %3840 = vmatmul.f32.vlgmr.msra.gmra.mxu1 %v5377_v31  ;;  %v6868_v16 = vld [vmem:[#allocation25_spill] sm:$0xff] }
 0x39c   : > { %v5995_v61 = vpop.f32.mrf.mxu0  ;;  %v6869_v48 = vand.u32 4294901760, %v6868_v16 }
 0x39d   : > { %v5997_v14 = vadd.f32 %v2646_v59, %v2500_v28 }
 0x39e   : > { %v2650_v20 = vpop.f32.mrf.mxu3 }
 0x39f   : > { %3300 = vmatmul.f32.vlgmr.msra.gmra.mxu2 %v5381_v6  ;;  %3693 = vmatmul.f32.vlgmr.msra.gmra.mxu0 %v5377_v31 }
 0x3a0   : > { %v6001_v55 = vpop.f32.mrf.mxu1 }
 0x3a1   : > { %6867 = vst [vmem:[#allocation78_spill] sm:$0xff] %v6001_v55 }
 0x3a2   : > { %v2503_v26 = vpop.f32.mrf.mxu2 }
 0x3a3   : > { %v2504_v37 = vadd.f32 %v2503_v26, %v5433_v25  ;;  %3486 = vmatmul.f32.gmra.mxu3 %v6869_v48  ;;  %3844 = vmatmul.f32.gmra.mxu1 %v5389_v19  ;;  %v6871_v25 = vld [vmem:[#allocation26_spill] sm:$0xff] }
 0x3a4   : > { %v6007_v54 = vpop.f32.mrf.mxu0  ;;  %v6872_v26 = vand.u32 4294901760, %v6871_v25 }
 0x3a5   : > { %v6009_v18 = vadd.f32 %v2650_v20, %v2504_v37 }
 0x3a6   : > { %v2654_v28 = vpop.f32.mrf.mxu3 }
 0x3a7   : > { %3305 = vmatmul.f32.gmra.mxu2 %v6868_v16  ;;  %3697 = vmatmul.f32.gmra.mxu0 %v5389_v19 }
 0x3a8   : > { %v6013_v31 = vpop.f32.mrf.mxu1 }
 0x3a9   : > { %6870 = vst [vmem:[#allocation25_spill] sm:$0xff] %v6013_v31 }
 0x3aa   : > { %v2507_v6 = vpop.f32.mrf.mxu2 }
 0x3ab   : > { %v2508_v59 = vadd.f32 %v2507_v6, %v5450_v30  ;;  %3492 = vmatmul.f32.gmra.mxu3 %v6872_v26  ;;  %3848 = vmatmul.f32.gmra.mxu1 %v5405_v53  ;;  %v6874_v30 = vld [vmem:[#allocation27_spill] sm:$0xff] }
 0x3ac   : > { %v6019_v48 = vpop.f32.mrf.mxu0  ;;  %v6875_v6 = vand.u32 4294901760, %v6874_v30 }
 0x3ad   : > { %v6021_v55 = vadd.f32 %v2654_v28, %v2508_v59 }
 0x3ae   : > { %v2658_v20 = vpop.f32.mrf.mxu3 }
 0x3af   : > { %3310 = vmatmul.f32.gmra.mxu2 %v6871_v25  ;;  %3701 = vmatmul.f32.gmra.mxu0 %v5405_v53 }
 0x3b0   : > { %v6025_v19 = vpop.f32.mrf.mxu1 }
 0x3b1   : > { %6873 = vst [vmem:[#allocation26_spill] sm:$0xff] %v6025_v19 }
 0x3b2   : > { %v2511_v37 = vpop.f32.mrf.mxu2 }
 0x3b3   : > { %v2512_v16 = vadd.f32 %v2511_v37, %v5467_v0  ;;  %3498 = vmatmul.f32.gmra.mxu3 %v6875_v6  ;;  %3852 = vmatmul.f32.gmra.mxu1 %v5422_v10  ;;  %v6877_v0 = vld [vmem:[#allocation28_spill] sm:$0xff] }
 0x3b4   : > { %v6031_v26 = vpop.f32.mrf.mxu0  ;;  %v6878_v37 = vand.u32 4294901760, %v6877_v0 }
 0x3b5   : > { %v6033_v31 = vadd.f32 %v2658_v20, %v2512_v16 }
 0x3b6   : > { %v2662_v28 = vpop.f32.mrf.mxu3 }
 0x3b7   : > { %3315 = vmatmul.f32.gmra.mxu2 %v6874_v30  ;;  %3705 = vmatmul.f32.gmra.mxu0 %v5422_v10 }
 0x3b8   : > { %v6037_v53 = vpop.f32.mrf.mxu1 }
 0x3b9   : > { %6876 = vst [vmem:[#allocation27_spill] sm:$0xff] %v6037_v53 }
 0x3ba   : > { %v2515_v59 = vpop.f32.mrf.mxu2 }
 0x3bb   : > { %v2516_v25 = vadd.f32 %v2515_v59, %v5484_v15  ;;  %3504 = vmatmul.f32.gmra.mxu3 %v6878_v37  ;;  %3856 = vmatmul.f32.gmra.mxu1 %v5439_v35  ;;  %v6880_v15 = vld [vmem:[#allocation29_spill] sm:$0xff] }
 0x3bc   : > { %v6043_v6 = vpop.f32.mrf.mxu0  ;;  %v6881_v59 = vand.u32 4294901760, %v6880_v15 }
 0x3bd   : > { %v6045_v19 = vadd.f32 %v2662_v28, %v2516_v25 }
 0x3be   : > { %v2666_v20 = vpop.f32.mrf.mxu3 }
 0x3bf   : > { %3320 = vmatmul.f32.gmra.mxu2 %v6877_v0  ;;  %3709 = vmatmul.f32.gmra.mxu0 %v5439_v35 }
 0x3c0   : > { %v6049_v10 = vpop.f32.mrf.mxu1 }
 0x3c1   : > { %6879 = vst [vmem:[#allocation28_spill] sm:$0xff] %v6049_v10 }
 0x3c2   : > { %v2519_v16 = vpop.f32.mrf.mxu2 }
 0x3c3   : > { %v2520_v30 = vadd.f32 %v2519_v16, %v5501_v34  ;;  %3510 = vmatmul.f32.gmra.mxu3 %v6881_v59  ;;  %3860 = vmatmul.f32.gmra.mxu1 %v5456_v60  ;;  %v6884_v34 = vld [vmem:[#allocation30_spill] sm:$0xff] }
 0x3c4   : > { %v6055_v37 = vpop.f32.mrf.mxu0  ;;  %v6885_v16 = vand.u32 4294901760, %v6884_v34 }
 0x3c5   : > { %v6057_v53 = vadd.f32 %v2666_v20, %v2520_v30 }
 0x3c6   : > { %v2670_v28 = vpop.f32.mrf.mxu3 }
 0x3c7   : > { %6882 = vst [vmem:[#allocation29_spill] sm:$0xff] %v6057_v53  ;;  %3325 = vmatmul.f32.gmra.mxu2 %v6880_v15  ;;  %3713 = vmatmul.f32.gmra.mxu0 %v5456_v60  ;;  %v6889_v15 = vld [vmem:[#allocation37_spill] sm:$0xff] }
 0x3c8   : > { %v6061_v35 = vpop.f32.mrf.mxu1 }
 0x3c9   : > { %6883 = vst [vmem:[#allocation79_spill] sm:$0xff] %v6061_v35 }
 0x3ca   : > { %v2523_v25 = vpop.f32.mrf.mxu2 }
 0x3cb   : > { %v2524_v0 = vadd.f32 %v2523_v25, %v5518_v38  ;;  %3516 = vmatmul.f32.gmra.mxu3 %v6885_v16  ;;  %3864 = vmatmul.f32.gmra.mxu1 %v5473_v1  ;;  %v6890_v38 = vld [vmem:[#allocation32_spill] sm:$0xff]  ;;  %v6892_v16 = vld [vmem:[#allocation31_spill] sm:$0xff] }
 0x3cc   : > { %v6067_v59 = vpop.f32.mrf.mxu0  ;;  %v6891_v25 = vand.u32 4294901760, %v6890_v38 }
 0x3cd   : > { %6886 = vst [vmem:[#allocation30_spill] sm:$0xff] %v6067_v59  ;;  %v6069_v10 = vadd.f32 %v2670_v28, %v2524_v0 }
 0x3ce   : > { %v2674_v20 = vpop.f32.mrf.mxu3 }
 0x3cf   : > { %6887 = vst [vmem:[#allocation80_spill] sm:$0xff] %v6069_v10  ;;  %3330 = vmatmul.f32.gmra.mxu2 %v6884_v34  ;;  %3717 = vmatmul.f32.gmra.mxu0 %v5473_v1  ;;  %v6896_v34 = vld [vmem:[#allocation39_spill] sm:$0xff] }
 0x3d0   : > { %v6073_v60 = vpop.f32.mrf.mxu1 }
 0x3d1   : > { %6888 = vst [vmem:[#allocation81_spill] sm:$0xff] %v6073_v60 }
 0x3d2   : > { %v2527_v30 = vpop.f32.mrf.mxu2 }
 0x3d3   : > { %v2528_v35 = vadd.f32 %v2527_v30, %v6889_v15  ;;  %3522 = vmatmul.f32.gmra.mxu3 %v6891_v25  ;;  %3868 = vmatmul.f32.gmra.mxu1 %v6892_v16  ;;  %v6897_v30 = vld [vmem:[#allocation34_spill] sm:$0xff]  ;;  %v6899_v25 = vld [vmem:[#allocation33_spill] sm:$0xff] }
 0x3d4   : > { %v6079_v53 = vpop.f32.mrf.mxu0  ;;  %v6898_v15 = vand.u32 4294901760, %v6897_v30 }
 0x3d5   : > { %6893 = vst [vmem:[#allocation37_spill] sm:$0xff] %v6079_v53  ;;  %v6081_v59 = vadd.f32 %v2674_v20, %v2528_v35 }
 0x3d6   : > { %v2678_v28 = vpop.f32.mrf.mxu3 }
 0x3d7   : > { %6894 = vst [vmem:[#allocation32_spill] sm:$0xff] %v6081_v59  ;;  %3335 = vmatmul.f32.gmra.mxu2 %v6890_v38  ;;  %3721 = vmatmul.f32.gmra.mxu0 %v6892_v16  ;;  %v6902_v16 = vld [vmem:[#allocation40_spill] sm:$0xff] }
 0x3d8   : > { %v6085_v1 = vpop.f32.mrf.mxu1 }
 0x3d9   : > { %6895 = vst [vmem:[#allocation31_spill] sm:$0xff] %v6085_v1 }
 0x3da   : > { %v2531_v0 = vpop.f32.mrf.mxu2 }
 0x3db   : > { %v2532_v60 = vadd.f32 %v2531_v0, %v6896_v34  ;;  %3528 = vmatmul.f32.gmra.mxu3 %v6898_v15  ;;  %3872 = vmatmul.f32.gmra.mxu1 %v6899_v25  ;;  %v6903_v0 = vld [vmem:[#allocation36_spill] sm:$0xff]  ;;  %v6905_v15 = vld [vmem:[#allocation35_spill] sm:$0xff] }
 0x3dc   : > { %v6091_v10 = vpop.f32.mrf.mxu0  ;;  %v6904_v34 = vand.u32 4294901760, %v6903_v0 }
 0x3dd   : > { %6900 = vst [vmem:[#allocation39_spill] sm:$0xff] %v6091_v10  ;;  %v6093_v53 = vadd.f32 %v2678_v28, %v2532_v60 }
 0x3de   : > { %v2682_v35 = vpop.f32.mrf.mxu3 }
 0x3df   : > { %3340 = vmatmul.f32.gmra.mxu2 %v6897_v30  ;;  %3725 = vmatmul.f32.gmra.mxu0 %v6899_v25 }
 0x3e0   : > { %v6097_v20 = vpop.f32.mrf.mxu1 }
 0x3e1   : > { %6901 = vst [vmem:[#allocation34_spill] sm:$0xff] %v6097_v20 }
 0x3e2   : > { %v2535_v38 = vpop.f32.mrf.mxu2 }
 0x3e3   : > { %v2536_v1 = vadd.f32 %v2535_v38, %v6902_v16  ;;  %3534 = vmatmul.f32.gmra.mxu3 %v6904_v34  ;;  %3876 = vmatmul.f32.gmra.mxu1 %v6905_v15  ;;  %v6909_v38 = vld [vmem:[#allocation38_spill] sm:$0xff]  ;;  %v6911_v34 = vld [vmem:[#allocation3_spill] sm:$0xff] }
 0x3e4   : > { %v6103_v59 = vpop.f32.mrf.mxu0  ;;  %v6910_v16 = vand.u32 4294901760, %v6909_v38 }
 0x3e5   : > { %6906 = vst [vmem:[#allocation33_spill] sm:$0xff] %v6103_v59  ;;  %v6105_v10 = vadd.f32 %v2682_v35, %v2536_v1 }
 0x3e6   : > { %v2686_v60 = vpop.f32.mrf.mxu3 }
 0x3e7   : > { %6907 = vst [vmem:[#allocation40_spill] sm:$0xff] %v6105_v10  ;;  %3345 = vmatmul.f32.gmra.mxu2 %v6903_v0  ;;  %3729 = vmatmul.f32.gmra.mxu0 %v6905_v15  ;;  %v6914_v15 = vld [vmem:[#allocation41_spill] sm:$0xff] }
 0x3e8   : > { %v6109_v28 = vpop.f32.mrf.mxu1 }
 0x3e9   : > { %6908 = vst [vmem:[#allocation36_spill] sm:$0xff] %v6109_v28 }
 0x3ea   : > { %v2539_v30 = vpop.f32.mrf.mxu2 }
 0x3eb   : > { %v2540_v25 = vadd.f32 %v2539_v30, %v5586_v50  ;;  %3540 = vmatmul.f32.gmra.mxu3 %v6910_v16  ;;  %3880 = vmatmul.f32.gmra.mxu1 %v6911_v34  ;;  %v6915_v50 = vld [vmem:[#allocation2_spill] sm:$0xff]  ;;  %v6917_v16 = vld [vmem:[#allocation7_spill] sm:$0xff] }
 0x3ec   : > { %v6115_v20 = vpop.f32.mrf.mxu0  ;;  %v6916_v30 = vand.u32 4294901760, %v6915_v50 }
 0x3ed   : > { %6912 = vst [vmem:[#allocation35_spill] sm:$0xff] %v6115_v20  ;;  %v6117_v59 = vadd.f32 %v2686_v60, %v2540_v25 }
 0x3ee   : > { %v2690_v1 = vpop.f32.mrf.mxu3 }
 0x3ef   : > { %3350 = vmatmul.f32.gmra.mxu2 %v6909_v38  ;;  %3733 = vmatmul.f32.gmra.mxu0 %v6911_v34 }
 0x3f0   : > { %v6121_v35 = vpop.f32.mrf.mxu1 }
 0x3f1   : > { %6913 = vst [vmem:[#allocation38_spill] sm:$0xff] %v6121_v35 }
 0x3f2   : > { %v2543_v0 = vpop.f32.mrf.mxu2 }
 0x3f3   : > { %v2544_v28 = vadd.f32 %v2543_v0, %v6914_v15  ;;  %3546 = vmatmul.f32.gmra.mxu3 %v6916_v30  ;;  %3884 = vmatmul.f32.gmra.mxu1 %v6917_v16  ;;  %v6920_v0 = vld [vmem:[#allocation5_spill] sm:$0xff] }
 0x3f4   : > { %v6127_v10 = vpop.f32.mrf.mxu0  ;;  %v6921_v15 = vand.u32 4294901760, %v6920_v0  ;;  %v6922_v30 = vld [vmem:[#allocation9_spill] sm:$0xff] }
 0x3f5   : > { %6918 = vst [vmem:[#allocation3_spill] sm:$0xff] %v6127_v10  ;;  %v6129_v20 = vadd.f32 %v2690_v1, %v2544_v28 }
 0x3f6   : > { %v2694_v60 = vpop.f32.mrf.mxu3 }
 0x3f7   : > { %3355 = vmatmul.f32.gmra.mxu2 %v6915_v50  ;;  %3737 = vmatmul.f32.gmra.mxu0 %v6917_v16 }
 0x3f8   : > { %v6133_v25 = vpop.f32.mrf.mxu1 }
 0x3f9   : > { %6919 = vst [vmem:[#allocation41_spill] sm:$0xff] %v6133_v25 }
 0x3fa   : > { %v2547_v38 = vpop.f32.mrf.mxu2 }
 0x3fb   : > { %v2548_v34 = vadd.f32 %v2547_v38, %v5620_v23  ;;  %3552 = vmatmul.f32.gmra.mxu3 %v6921_v15  ;;  %3888 = vmatmul.f32.gmra.mxu1 %v6922_v30  ;;  %v6925_v23 = vld [vmem:[#allocation4_spill] sm:$0xff]  ;;  %v6927_v15 = vld [vmem:[#allocation11_spill] sm:$0xff] }
 0x3fc   : > { %v6139_v35 = vpop.f32.mrf.mxu0  ;;  %v6926_v38 = vand.u32 4294901760, %v6925_v23 }
 0x3fd   : > { %6923 = vst [vmem:[#allocation2_spill] sm:$0xff] %v6139_v35  ;;  %v6141_v10 = vadd.f32 %v2694_v60, %v2548_v34 }
 0x3fe   : > { %v2698_v28 = vpop.f32.mrf.mxu3 }
 0x3ff   : > { %3360 = vmatmul.f32.gmra.mxu2 %v6920_v0  ;;  %3741 = vmatmul.f32.gmra.mxu0 %v6922_v30 }
 0x400   : > { %v6145_v1 = vpop.f32.mrf.mxu1 }
 0x401   : > { %6924 = vst [vmem:[#allocation7_spill] sm:$0xff] %v6145_v1 }
 0x402   : > { %v2551_v50 = vpop.f32.mrf.mxu2 }
 0x403   : > { %v2552_v16 = vadd.f32 %v2551_v50, %v5637_v5  ;;  %3558 = vmatmul.f32.gmra.mxu3 %v6926_v38  ;;  %3892 = vmatmul.f32.gmra.mxu1 %v6927_v15  ;;  %v6929_v5 = vld [vmem:[#allocation6_spill] sm:$0xff] }
 0x404   : > { %v6151_v25 = vpop.f32.mrf.mxu0  ;;  %v6930_v50 = vand.u32 4294901760, %v6929_v5 }
 0x405   : > { %v6153_v35 = vadd.f32 %v2698_v28, %v2552_v16 }
 0x406   : > { %v2702_v60 = vpop.f32.mrf.mxu3 }
 0x407   : > { %3365 = vmatmul.f32.gmra.mxu2 %v6925_v23  ;;  %3745 = vmatmul.f32.gmra.mxu0 %v6927_v15 }
 0x408   : > { %v6157_v34 = vpop.f32.mrf.mxu1 }
 0x409   : > { %6928 = vst [vmem:[#allocation5_spill] sm:$0xff] %v6157_v34 }
 0x40a   : > { %v2555_v0 = vpop.f32.mrf.mxu2 }
 0x40b   : > { %v2556_v30 = vadd.f32 %v2555_v0, %v5654_v11  ;;  %3564 = vmatmul.f32.gmra.mxu3 %v6930_v50  ;;  %3896 = vmatmul.f32.gmra.mxu1 %v5609_v12  ;;  %v6932_v11 = vld [vmem:[#allocation13_spill] sm:$0xff] }
 0x40c   : > { %v6163_v38 = vpop.f32.mrf.mxu0  ;;  %v6933_v0 = vand.u32 4294901760, %v6932_v11 }
 0x40d   : > { %v6165_v1 = vadd.f32 %v2702_v60, %v2556_v30 }
 0x40e   : > { %v2706_v28 = vpop.f32.mrf.mxu3 }
 0x40f   : > { %3370 = vmatmul.f32.gmra.mxu2 %v6929_v5  ;;  %3749 = vmatmul.f32.gmra.mxu0 %v5609_v12 }
 0x410   : > { %v6169_v16 = vpop.f32.mrf.mxu1 }
 0x411   : > { %6931 = vst [vmem:[#allocation9_spill] sm:$0xff] %v6169_v16 }
 0x412   : > { %v2559_v23 = vpop.f32.mrf.mxu2 }
 0x413   : > { %v2560_v15 = vadd.f32 %v2559_v23, %v5673_v39  ;;  %3570 = vmatmul.f32.gmra.mxu3 %v6933_v0  ;;  %3900 = vmatmul.f32.gmra.mxu1 %v5626_v13  ;;  %v6935_v39 = vand.u32 4294901760, %v5651_v32 }
 0x414   : > { %v6175_v50 = vpop.f32.mrf.mxu0 }
 0x415   : > { %v6177_v34 = vadd.f32 %v2706_v28, %v2560_v15 }
 0x416   : > { %v2710_v60 = vpop.f32.mrf.mxu3 }
 0x417   : > { %6934 = vst [vmem:[#allocation4_spill] sm:$0xff] %v6177_v34  ;;  %3375 = vmatmul.f32.gmra.mxu2 %v6932_v11  ;;  %3753 = vmatmul.f32.gmra.mxu0 %v5626_v13  ;;  %v3152_v13 = vadd.f32 %v5670_v8, %v5681_v63  ;;  %v6937_v11 = vand.u32 4294901760, %v5668_v43  ;;  %v6202_v63 = vld [vmem:[%s6446_s2] ss:$0 sm:$0xff] }
 0x418   : > { %v3841_v12 = vpop.f32.mrf.mxu1  ;;  %v6943_v34 = vld [vmem:[#allocation10_spill] sm:$0xff] }
 0x41a   : > { %v2563_v30 = vpop.f32.mrf.mxu2 }
 0x41b   : > { %v2564_v5 = vadd.f32 %v2563_v30, %v5694_v7  ;;  %3576 = vmatmul.f32.gmra.mxu3 %v6935_v39  ;;  %3904 = vmatmul.f32.gmra.mxu1 %v5643_v29 }
 0x41c   : > { %v3694_v23 = vpop.f32.mrf.mxu0 }
 0x41d   : > { %v6185_v0 = vadd.f32 %v2710_v60, %v2564_v5 }
 0x41e   : > { %v3481_v16 = vpop.f32.mrf.mxu3 }
 0x41f   : > { %6936 = vst [vmem:[#allocation11_spill] sm:$0xff] %v6185_v0  ;;  %3380 = vmatmul.f32.gmra.mxu2 %v5651_v32  ;;  %3757 = vmatmul.f32.gmra.mxu0 %v5643_v29  ;;  %v3156_v32 = vadd.f32 %v5691_v57, %v5702_v47 }
 0x420   : > { %v3845_v28 = vpop.f32.mrf.mxu1 }
 0x422   : > { %v3301_v15 = vpop.f32.mrf.mxu2 }
 0x423   : > { %v3302_v7 = vadd.f32 %v3301_v15, %v3152_v13  ;;  %3582 = vmatmul.f32.gmra.mxu3 %v6937_v11  ;;  %3908 = vmatmul.f32.gmra.mxu1 %v5660_v33  ;;  %v6940_v11 = vld [vmem:[#allocation43_spill] sm:$0xff] }
 0x424   : > { %v3698_v30 = vpop.f32.mrf.mxu0 }
 0x425   : > { %v3482_v60 = vadd.f32 %v3481_v16, %v3302_v7 }
 0x426   : > { %v3487_v5 = vpop.f32.mrf.mxu3 }
 0x427   : > { %v3695_v39 = vadd.f32 %v3694_v23, %v3482_v60  ;;  %3385 = vmatmul.f32.gmra.mxu2 %v5668_v43  ;;  %3761 = vmatmul.f32.gmra.mxu0 %v5660_v33  ;;  %v6938_v23 = vld [vmem:[#allocation8_spill] sm:$0xff]  ;;  %v6941_v60 = vld [vmem:[#allocation42_spill] sm:$0xff] }
 0x428   : > { %v3849_v29 = vpop.f32.mrf.mxu1  ;;  %v6939_v7 = vand.u32 4294901760, %v6938_v23 }
 0x429   : > { %v3842_v8 = vadd.f32 %v3841_v12, %v3695_v39  ;;  %v3160_v39 = vadd.f32 %v6941_v60, %v6940_v11 }
 0x42a   : > { %v3306_v13 = vpop.f32.mrf.mxu2 }
 0x42b   : > { %v3968_v16 = vadd.f32 %v3842_v8, %v5704_v3  ;;  %v3307_v15 = vadd.f32 %v3306_v13, %v3156_v32  ;;  %3588 = vmatmul.f32.gmra.mxu3 %v6939_v7  ;;  %3912 = vmatmul.f32.gmra.mxu1 %v5679_v58  ;;  %v6942_v13 = vld [vmem:[#allocation44_spill] sm:$0xff] }
 0x42c   : > { %v3702_v33 = vpop.f32.mrf.mxu0 }
 0x42d   : > { %v4004_v43 = vadd.f32 %v6202_v63, %v3968_v16  ;;  %v3488_v57 = vadd.f32 %v3487_v5, %v3307_v15  ;;  %v6944_v16 = vand.u32 4294901760, %v6943_v34 }
 0x42e   : > { %v3493_v47 = vpop.f32.mrf.mxu3 }
 0x42f   : > { %4036 = vst [vmem:[%s6211_s10] sm:$0xff] %v4004_v43  ;;  %v3699_v3 = vadd.f32 %v3698_v30, %v3488_v57  ;;  %3390 = vmatmul.f32.gmra.mxu2 %v6938_v23  ;;  %3765 = vmatmul.f32.gmra.mxu0 %v5679_v58  ;;  %v6945_v43 = vld [vmem:[#allocation12_spill] sm:$0xff]  ;;  %v6946_v57 = vld [vmem:[#allocation46_spill] sm:$0xff] }
 0x430   : > { %v3853_v12 = vpop.f32.mrf.mxu1 }
 0x431   : > { %v3846_v32 = vadd.f32 %v3845_v28, %v3699_v3  ;;  %v3164_v3 = vadd.f32 %v6946_v57, %v6945_v43  ;;  %v6952_v57 = vld [vmem:[#allocation50_spill] sm:$0xff] }
 0x432   : > { %v3311_v8 = vpop.f32.mrf.mxu2 }
 0x433   : > { %v3969_v7 = vadd.f32 %v3846_v32, %v6942_v13  ;;  %v3312_v0 = vadd.f32 %v3311_v8, %v3160_v39  ;;  %3594 = vmatmul.f32.gmra.mxu3 %v6944_v16  ;;  %3916 = vmatmul.f32.gmra.mxu1 %v5700_v40  ;;  %v6947_v39 = vld [vmem:[#allocation47_spill] sm:$0xff]  ;;  %v6948_v13 = vld [vmem:[#allocation45_spill] sm:$0xff] }
 0x434   : > { %v3706_v5 = vpop.f32.mrf.mxu0  ;;  %v6950_v16 = vld [vmem:[#allocation15_spill] sm:$0xff] }
 0x435   : > { %v4005_v30 = vadd.f32 %v6202_v63, %v3969_v7  ;;  %v3494_v15 = vadd.f32 %v3493_v47, %v3312_v0  ;;  %v6949_v7 = vand.u32 4294901760, %v6948_v13 }
 0x436   : > { %v3499_v23 = vpop.f32.mrf.mxu3 }
 0x437   : > { %4037 = vst [vmem:[%s6211_s10 + $0x8] sm:$0xff] %v4005_v30  ;;  %v3703_v58 = vadd.f32 %v3702_v33, %v3494_v15  ;;  %3395 = vmatmul.f32.gmra.mxu2 %v6943_v34  ;;  %3769 = vmatmul.f32.gmra.mxu0 %v5700_v40  ;;  %v6951_v30 = vld [vmem:[#allocation49_spill] sm:$0xff] }
 0x438   : > { %v3857_v28 = vpop.f32.mrf.mxu1  ;;  %v3168_v15 = vadd.f32 %v6951_v30, %v6950_v16  ;;  %v6957_v16 = vld [vmem:[#allocation53_spill] sm:$0xff] }
 0x439   : > { %v3850_v11 = vadd.f32 %v3849_v29, %v3703_v58 }
 0x43a   : > { %v3316_v60 = vpop.f32.mrf.mxu2 }
 0x43b   : > { %v3970_v32 = vadd.f32 %v3850_v11, %v6947_v39  ;;  %v3317_v8 = vadd.f32 %v3316_v60, %v3164_v3  ;;  %3600 = vmatmul.f32.gmra.mxu3 %v6949_v7  ;;  %3920 = vmatmul.f32.gmra.mxu1 %v5721_v62  ;;  %v6953_v60 = vld [vmem:[#allocation48_spill] sm:$0xff] }
 0x43c   : > { %v3710_v0 = vpop.f32.mrf.mxu0  ;;  %v6954_v39 = vand.u32 4294901760, %v6953_v60  ;;  %v6956_v7 = vld [vmem:[#allocation52_spill] sm:$0xff] }
 0x43d   : > { %v4006_v33 = vadd.f32 %v6202_v63, %v3970_v32  ;;  %v3500_v34 = vadd.f32 %v3499_v23, %v3317_v8 }
 0x43e   : > { %v3505_v47 = vpop.f32.mrf.mxu3 }
 0x43f   : > { %4038 = vst [vmem:[%s6211_s10 + $0x10] sm:$0xff] %v4006_v33  ;;  %v3707_v40 = vadd.f32 %v3706_v5, %v3500_v34  ;;  %3400 = vmatmul.f32.gmra.mxu2 %v6948_v13  ;;  %3773 = vmatmul.f32.gmra.mxu0 %v5721_v62  ;;  %v6955_v13 = vld [vmem:[#allocation14_spill] sm:$0xff] }
 0x440   : > { %v3861_v29 = vpop.f32.mrf.mxu1  ;;  %v3172_v33 = vadd.f32 %v6956_v7, %v6955_v13 }
 0x441   : > { %v3854_v58 = vadd.f32 %v3853_v12, %v3707_v40 }
 0x442   : > { %v3321_v43 = vpop.f32.mrf.mxu2 }
 0x443   : > { %v3971_v3 = vadd.f32 %v3854_v58, %v6952_v57  ;;  %v3322_v11 = vadd.f32 %v3321_v43, %v3168_v15  ;;  %3606 = vmatmul.f32.gmra.mxu3 %v6954_v39  ;;  %3924 = vmatmul.f32.gmra.mxu1 %v5742_v9  ;;  %v6958_v58 = vld [vmem:[#allocation51_spill] sm:$0xff] }
 0x444   : > { %v3714_v23 = vpop.f32.mrf.mxu0  ;;  %v6959_v43 = vand.u32 4294901760, %v6958_v58 }
 0x445   : > { %v4007_v5 = vadd.f32 %v6202_v63, %v3971_v3  ;;  %v3506_v32 = vadd.f32 %v3505_v47, %v3322_v11  ;;  %v6960_v11 = vld [vmem:[#allocation16_spill] sm:$0xff] }
 0x446   : > { %v3511_v8 = vpop.f32.mrf.mxu3 }
 0x447   : > { %4039 = vst [vmem:[%s6211_s10 + $0x18] sm:$0xff] %v4007_v5  ;;  %v3711_v62 = vadd.f32 %v3710_v0, %v3506_v32  ;;  %3405 = vmatmul.f32.gmra.mxu2 %v6953_v60  ;;  %3777 = vmatmul.f32.gmra.mxu0 %v5742_v9  ;;  %v6961_v60 = vld [vmem:[#allocation55_spill] sm:$0xff] }
 0x448   : > { %v3865_v12 = vpop.f32.mrf.mxu1  ;;  %v3176_v39 = vadd.f32 %v6961_v60, %v6960_v11  ;;  %v6968_v60 = vld [vmem:[#allocation57_spill] sm:$0xff] }
 0x449   : > { %v3858_v34 = vadd.f32 %v3857_v28, %v3711_v62  ;;  %v6962_v62 = vld [vmem:[#allocation56_spill] sm:$0xff] }
 0x44a   : > { %v3326_v40 = vpop.f32.mrf.mxu2 }
 0x44b   : > { %v3972_v30 = vadd.f32 %v3858_v34, %v6957_v16  ;;  %v3327_v15 = vadd.f32 %v3326_v40, %v3172_v33  ;;  %3612 = vmatmul.f32.gmra.mxu3 %v6959_v43  ;;  %3928 = vmatmul.f32.gmra.mxu1 %v5763_v36  ;;  %v6963_v33 = vld [vmem:[#allocation54_spill] sm:$0xff] }
 0x44c   : > { %v3718_v47 = vpop.f32.mrf.mxu0  ;;  %v6964_v34 = vand.u32 4294901760, %v6963_v33 }
 0x44d   : > { %v4008_v0 = vadd.f32 %v6202_v63, %v3972_v30  ;;  %v3512_v57 = vadd.f32 %v3511_v8, %v3327_v15  ;;  %v6965_v30 = vld [vmem:[#allocation17_spill] sm:$0xff]  ;;  %v6966_v15 = vld [vmem:[#allocation58_spill] sm:$0xff] }
 0x44e   : > { %v3517_v3 = vpop.f32.mrf.mxu3 }
 0x44f   : > { %4040 = vst [vmem:[%s6211_s10 + $0x20] sm:$0xff] %v4008_v0  ;;  %v3715_v9 = vadd.f32 %v3714_v23, %v3512_v57  ;;  %3410 = vmatmul.f32.gmra.mxu2 %v6958_v58  ;;  %3781 = vmatmul.f32.gmra.mxu0 %v5763_v36  ;;  %v3180_v58 = vadd.f32 %v6966_v15, %v6965_v30  ;;  %v6967_v57 = vld [vmem:[#allocation59_spill] sm:$0xff]  ;;  %v6973_v30 = vld [vmem:[#allocation60_spill] sm:$0xff] }
 0x450   : > { %v3869_v28 = vpop.f32.mrf.mxu1  ;;  %v6974_v15 = vand.u32 4294901760, %v6973_v30 }
 0x451   : > { %v3862_v5 = vadd.f32 %v3861_v29, %v3715_v9 }
 0x452   : > { %v3331_v32 = vpop.f32.mrf.mxu2 }
 0x453   : > { %v3973_v13 = vadd.f32 %v3862_v5, %v6962_v62  ;;  %v3332_v7 = vadd.f32 %v3331_v32, %v3176_v39  ;;  %3618 = vmatmul.f32.gmra.mxu3 %v6964_v34  ;;  %3932 = vmatmul.f32.gmra.mxu1 %v5784_v24  ;;  %v6969_v39 = vand.u32 4294901760, %v6968_v60  ;;  %v6970_v62 = vld [vmem:[#allocation18_spill] sm:$0xff] }
 0x454   : > { %v3722_v8 = vpop.f32.mrf.mxu0 }
 0x455   : > { %v4009_v23 = vadd.f32 %v6202_v63, %v3973_v13  ;;  %v3518_v40 = vadd.f32 %v3517_v3, %v3332_v7  ;;  %v6971_v13 = vld [vmem:[#allocation61_spill] sm:$0xff] }
 0x456   : > { %v3523_v16 = vpop.f32.mrf.mxu3  ;;  %v3184_v7 = vadd.f32 %v6971_v13, %v6970_v62 }
 0x457   : > { %4041 = vst [vmem:[%s6211_s10 + $0x28] sm:$0xff] %v4009_v23  ;;  %v3719_v36 = vadd.f32 %v3718_v47, %v3518_v40  ;;  %3415 = vmatmul.f32.gmra.mxu2 %v6963_v33  ;;  %3785 = vmatmul.f32.gmra.mxu0 %v5784_v24  ;;  %v6972_v23 = vld [vmem:[#allocation62_spill] sm:$0xff] }
 0x458   : > { %v3873_v29 = vpop.f32.mrf.mxu1 }
 0x459   : > { %v3866_v43 = vadd.f32 %v3865_v12, %v3719_v36 }
 0x45a   : > { %v3336_v0 = vpop.f32.mrf.mxu2 }
 0x45b   : > { %v3974_v9 = vadd.f32 %v3866_v43, %v6967_v57  ;;  %v3337_v11 = vadd.f32 %v3336_v0, %v3180_v58  ;;  %3624 = vmatmul.f32.gmra.mxu3 %v6969_v39  ;;  %3936 = vmatmul.f32.gmra.mxu1 %v5805_v45  ;;  %v6975_v0 = vld [vmem:[#allocation19_spill] sm:$0xff]  ;;  %v6976_v57 = vld [vmem:[#allocation64_spill] sm:$0xff]  ;;  %v6977_v39 = vld [vmem:[#allocation65_spill] sm:$0xff] }
 0x45c   : > { %v3726_v3 = vpop.f32.mrf.mxu0 }
 0x45d   : > { %v4010_v47 = vadd.f32 %v6202_v63, %v3974_v9  ;;  %v3524_v5 = vadd.f32 %v3523_v16, %v3337_v11  ;;  %v3188_v9 = vadd.f32 %v6976_v57, %v6975_v0 }
 0x45e   : > { %v3529_v32 = vpop.f32.mrf.mxu3 }
 0x45f   : > { %4042 = vst [vmem:[%s6211_s10 + $0x30] sm:$0xff] %v4010_v47  ;;  %v3723_v24 = vadd.f32 %v3722_v8, %v3524_v5  ;;  %3420 = vmatmul.f32.gmra.mxu2 %v6968_v60  ;;  %3789 = vmatmul.f32.gmra.mxu0 %v5805_v45 }
 0x460   : > { %v3877_v12 = vpop.f32.mrf.mxu1 }
 0x461   : > { %v3870_v33 = vadd.f32 %v3869_v28, %v3723_v24  ;;  %v6978_v24 = vld [vmem:[#allocation63_spill] sm:$0xff] }
 0x462   : > { %v3341_v34 = vpop.f32.mrf.mxu2  ;;  %v6979_v62 = vand.u32 4294901760, %v6978_v24 }
 0x463   : > { %v3975_v40 = vadd.f32 %v3870_v33, %v6972_v23  ;;  %v3342_v36 = vadd.f32 %v3341_v34, %v3184_v7  ;;  %3630 = vmatmul.f32.gmra.mxu3 %v6974_v15  ;;  %3940 = vmatmul.f32.gmra.mxu1 %v5826_v42  ;;  %v6980_v33 = vld [vmem:[#allocation68_spill] sm:$0xff]  ;;  %v6981_v34 = vld [vmem:[#allocation67_spill] sm:$0xff] }
 0x464   : > { %v3730_v16 = vpop.f32.mrf.mxu0  ;;  %v3192_v23 = vadd.f32 %v6981_v34, %v6980_v33 }
 0x465   : > { %v4011_v8 = vadd.f32 %v6202_v63, %v3975_v40  ;;  %v3530_v58 = vadd.f32 %v3529_v32, %v3342_v36 }
 0x466   : > { %v3535_v43 = vpop.f32.mrf.mxu3 }
 0x467   : > { %4043 = vst [vmem:[%s6211_s10 + $0x38] sm:$0xff] %v4011_v8  ;;  %v3727_v45 = vadd.f32 %v3726_v3, %v3530_v58  ;;  %3425 = vmatmul.f32.gmra.mxu2 %v6973_v30  ;;  %3793 = vmatmul.f32.gmra.mxu0 %v5826_v42  ;;  %v6982_v30 = vld [vmem:[#allocation69_spill] sm:$0xff]  ;;  %v6983_v58 = vld [vmem:[#allocation66_spill] sm:$0xff] }
 0x468   : > { %v3881_v28 = vpop.f32.mrf.mxu1 }
 0x469   : > { %v3874_v11 = vadd.f32 %v3873_v29, %v3727_v45  ;;  %v6984_v45 = vand.u32 4294901760, %v6983_v58 }
 0x46a   : > { %v3346_v60 = vpop.f32.mrf.mxu2 }
 0x46b   : > { %v3976_v47 = vadd.f32 %v3874_v11, %v6977_v39  ;;  %v3347_v5 = vadd.f32 %v3346_v60, %v3188_v9  ;;  %3636 = vmatmul.f32.gmra.mxu3 %v6979_v62  ;;  %3944 = vmatmul.f32.gmra.mxu1 %v5847_v27  ;;  %v6985_v9 = vld [vmem:[#allocation72_spill] sm:$0xff]  ;;  %v6986_v11 = vld [vmem:[#allocation71_spill] sm:$0xff] }
 0x46c   : > { %v3734_v32 = vpop.f32.mrf.mxu0  ;;  %v3196_v60 = vadd.f32 %v6986_v11, %v6985_v9 }
 0x46d   : > { %v4012_v3 = vadd.f32 %v6202_v63, %v3976_v47  ;;  %v3536_v13 = vadd.f32 %v3535_v43, %v3347_v5  ;;  %v6987_v5 = vld [vmem:[#allocation73_spill] sm:$0xff] }
 0x46e   : > { %v3541_v7 = vpop.f32.mrf.mxu3 }
 0x46f   : > { %4044 = vst [vmem:[%s6211_s10 + $0x40] sm:$0xff] %v4012_v3  ;;  %v3731_v42 = vadd.f32 %v3730_v16, %v3536_v13  ;;  %3430 = vmatmul.f32.gmra.mxu2 %v6978_v24  ;;  %3797 = vmatmul.f32.gmra.mxu0 %v5847_v27  ;;  %v6988_v3 = vld [vmem:[#allocation70_spill] sm:$0xff] }
 0x470   : > { %v3885_v29 = vpop.f32.mrf.mxu1  ;;  %v6989_v13 = vand.u32 4294901760, %v6988_v3 }
 0x471   : > { %v3878_v40 = vadd.f32 %v3877_v12, %v3731_v42 }
 0x472   : > { %v3351_v36 = vpop.f32.mrf.mxu2 }
 0x473   : > { %v3977_v15 = vadd.f32 %v3878_v40, %v6982_v30  ;;  %v3352_v8 = vadd.f32 %v3351_v36, %v3192_v23  ;;  %3642 = vmatmul.f32.gmra.mxu3 %v6984_v45  ;;  %3948 = vmatmul.f32.gmra.mxu1 %v5868_v17  ;;  %v6991_v23 = vld [vmem:[#allocation75_spill] sm:$0xff]  ;;  %v6993_v45 = vld [vmem:[#allocation74_spill] sm:$0xff] }
 0x474   : > { %v3738_v43 = vpop.f32.mrf.mxu0  ;;  %v3200_v40 = vadd.f32 %v6991_v23, %v5933_v56 }
 0x475   : > { %v4013_v16 = vadd.f32 %v6202_v63, %v3977_v15  ;;  %v3542_v0 = vadd.f32 %v3541_v7, %v3352_v8  ;;  %v6990_v7 = vld [vmem:[#allocation20_spill] sm:$0xff]  ;;  %v6992_v15 = vld [vmem:[#allocation22_spill] sm:$0xff] }
 0x476   : > { %v3547_v57 = vpop.f32.mrf.mxu3 }
 0x477   : > { %4045 = vst [vmem:[%s6211_s10 + $0x48] sm:$0xff] %v4013_v16  ;;  %v3735_v27 = vadd.f32 %v3734_v32, %v3542_v0  ;;  %3435 = vmatmul.f32.gmra.mxu2 %v6983_v58  ;;  %3801 = vmatmul.f32.gmra.mxu0 %v5868_v17  ;;  %v6994_v16 = vand.u32 4294901760, %v6993_v45  ;;  %v6995_v0 = vld [vmem:[#allocation21_spill] sm:$0xff] }
 0x478   : > { %v3889_v12 = vpop.f32.mrf.mxu1 }
 0x479   : > { %v3882_v39 = vadd.f32 %v3881_v28, %v3735_v27 }
 0x47a   : > { %v3356_v47 = vpop.f32.mrf.mxu2 }
 0x47b   : > { %v3978_v24 = vadd.f32 %v3882_v39, %v6987_v5  ;;  %v3357_v62 = vadd.f32 %v3356_v47, %v3196_v60  ;;  %3648 = vmatmul.f32.gmra.mxu3 %v6989_v13  ;;  %3952 = vmatmul.f32.gmra.mxu1 %v6990_v7 }
 0x47c   : > { %v3742_v42 = vpop.f32.mrf.mxu0 }
 0x47d   : > { %v4014_v32 = vadd.f32 %v6202_v63, %v3978_v24  ;;  %v3548_v33 = vadd.f32 %v3547_v57, %v3357_v62  ;;  %v6997_v62 = vand.u32 4294901760, %v5943_v46 }
 0x47e   : > { %v3553_v34 = vpop.f32.mrf.mxu3 }
 0x47f   : > { %4046 = vst [vmem:[%s6211_s10 + $0x50] sm:$0xff] %v4014_v32  ;;  %v3739_v17 = vadd.f32 %v3738_v43, %v3548_v33  ;;  %3440 = vmatmul.f32.gmra.mxu2 %v6988_v3  ;;  %3805 = vmatmul.f32.gmra.mxu0 %v6990_v7 }
 0x480   : > { %v3893_v28 = vpop.f32.mrf.mxu1 }
 0x481   : > { %v3886_v36 = vadd.f32 %v3885_v29, %v3739_v17  ;;  %v6996_v29 = vld [vmem:[#allocation76_spill] sm:$0xff] }
 0x482   : > { %v3361_v30 = vpop.f32.mrf.mxu2  ;;  %v3204_v60 = vadd.f32 %v6996_v29, %v5954_v4 }
 0x483   : > { %v3979_v8 = vadd.f32 %v3886_v36, %v6992_v15  ;;  %v3362_v58 = vadd.f32 %v3361_v30, %v3200_v40  ;;  %3654 = vmatmul.f32.gmra.mxu3 %v6994_v16  ;;  %3956 = vmatmul.f32.gmra.mxu1 %v6995_v0  ;;  %v6999_v40 = vand.u32 4294901760, %v5963_v21 }
 0x484   : > { %v3746_v57 = vpop.f32.mrf.mxu0 }
 0x485   : > { %v4015_v43 = vadd.f32 %v6202_v63, %v3979_v8  ;;  %v3554_v27 = vadd.f32 %v3553_v34, %v3362_v58 }
 0x486   : > { %v3559_v9 = vpop.f32.mrf.mxu3 }
 0x487   : > { %4047 = vst [vmem:[%s6211_s10 + $0x58] sm:$0xff] %v4015_v43  ;;  %v3743_v11 = vadd.f32 %v3742_v42, %v3554_v27  ;;  %3445 = vmatmul.f32.gmra.mxu2 %v6993_v45  ;;  %3809 = vmatmul.f32.gmra.mxu0 %v6995_v0 }
 0x488   : > { %v3897_v56 = vpop.f32.mrf.mxu1 }
 0x489   : > { %v3890_v39 = vadd.f32 %v3889_v12, %v3743_v11 }
 0x48a   : > { %v3366_v47 = vpop.f32.mrf.mxu2 }
 0x48b   : > { %v3980_v5 = vadd.f32 %v3890_v39, %v5956_v52  ;;  %v3367_v24 = vadd.f32 %v3366_v47, %v3204_v60  ;;  %3660 = vmatmul.f32.gmra.mxu3 %v6997_v62  ;;  %3960 = vmatmul.f32.gmra.mxu1 %v5931_v2  ;;  %v6998_v52 = vld [vmem:[#allocation23_spill] sm:$0xff] }
 0x48c   : > { %v3750_v3 = vpop.f32.mrf.mxu0  ;;  %v3208_v12 = vadd.f32 %v6998_v52, %v5971_v44 }
 0x48d   : > { %v4016_v13 = vadd.f32 %v6202_v63, %v3980_v5  ;;  %v3560_v7 = vadd.f32 %v3559_v9, %v3367_v24 }
 0x48e   : > { %v3565_v42 = vpop.f32.mrf.mxu3 }
 0x48f   : > { %4048 = vst [vmem:[%s6211_s10 + $0x60] sm:$0xff] %v4016_v13  ;;  %v3747_v32 = vadd.f32 %v3746_v57, %v3560_v7  ;;  %3450 = vmatmul.f32.gmra.mxu2 %v5943_v46  ;;  %3813 = vmatmul.f32.gmra.mxu0 %v5931_v2 }
 0x490   : > { %v3901_v4 = vpop.f32.mrf.mxu1 }
 0x491   : > { %v3894_v33 = vadd.f32 %v3893_v28, %v3747_v32 }
 0x492   : > { %v3371_v34 = vpop.f32.mrf.mxu2 }
 0x493   : > { %v3981_v17 = vadd.f32 %v3894_v33, %v5973_v51  ;;  %v3372_v23 = vadd.f32 %v3371_v34, %v3208_v12  ;;  %3666 = vmatmul.f32.gmra.mxu3 %v6999_v40  ;;  %3964 = vmatmul.f32.gmra.mxu1 %v5952_v22  ;;  %v7000_v51 = vld [vmem:[#allocation24_spill] sm:$0xff] }
 0x494   : > { %v3754_v36 = vpop.f32.mrf.mxu0  ;;  %v3212_v28 = vadd.f32 %v7000_v51, %v5984_v49 }
 0x495   : > { %v4017_v30 = vadd.f32 %v6202_v63, %v3981_v17  ;;  %v3566_v46 = vadd.f32 %v3565_v42, %v3372_v23  ;;  %v7003_v17 = vld [vmem:[#allocation25_spill] sm:$0xff] }
 0x496   : > { %v3571_v2 = vpop.f32.mrf.mxu3  ;;  %v3224_v23 = vadd.f32 %v7003_v17, %v6019_v48 }
 0x497   : > { %4049 = vst [vmem:[%s6211_s10 + $0x68] sm:$0xff] %v4017_v30  ;;  %v3751_v15 = vadd.f32 %v3750_v3, %v3566_v46  ;;  %3455 = vmatmul.f32.gmra.mxu2 %v5963_v21  ;;  %3817 = vmatmul.f32.gmra.mxu0 %v5952_v22  ;;  %v7001_v22 = vld [vmem:[#allocation77_spill] sm:$0xff]  ;;  %v7002_v3 = vld [vmem:[#allocation78_spill] sm:$0xff] }
 0x498   : > { %v3905_v44 = vpop.f32.mrf.mxu1  ;;  %v3216_v11 = vadd.f32 %v7001_v22, %v5995_v61  ;;  %v3220_v13 = vadd.f32 %v7002_v3, %v6007_v54 }
 0x499   : > { %v3898_v8 = vadd.f32 %v3897_v56, %v3751_v15 }
 0x49a   : > { %v3376_v58 = vpop.f32.mrf.mxu2 }
 0x49b   : > { %v3982_v45 = vadd.f32 %v3898_v8, %v5986_v41  ;;  %v3377_v16 = vadd.f32 %v3376_v58, %v3212_v28  ;;  %v7004_v28 = vld [vmem:[#allocation26_spill] sm:$0xff] }
 0x49c   : > { %v3758_v0 = vpop.f32.mrf.mxu0  ;;  %v3228_v8 = vadd.f32 %v7004_v28, %v6031_v26 }
 0x49d   : > { %v4018_v57 = vadd.f32 %v6202_v63, %v3982_v45  ;;  %v3572_v43 = vadd.f32 %v3571_v2, %v3377_v16 }
 0x49e   : > { %v3577_v27 = vpop.f32.mrf.mxu3 }
 0x49f   : > { %4050 = vst [vmem:[%s6211_s10 + $0x70] sm:$0xff] %v4018_v57  ;;  %v3755_v9 = vadd.f32 %v3754_v36, %v3572_v43 }
 0x4a0   : > { %v3909_v21 = vpop.f32.mrf.mxu1 }
 0x4a1   : > { %v3902_v29 = vadd.f32 %v3901_v4, %v3755_v9 }
 0x4a2   : > { %v3381_v60 = vpop.f32.mrf.mxu2 }
 0x4a3   : > { %v3983_v49 = vadd.f32 %v3902_v29, %v5997_v14  ;;  %v3382_v56 = vadd.f32 %v3381_v60, %v3216_v11 }
 0x4a4   : > { %v3762_v39 = vpop.f32.mrf.mxu0 }
 0x4a5   : > { %v4019_v41 = vadd.f32 %v6202_v63, %v3983_v49  ;;  %v3578_v47 = vadd.f32 %v3577_v27, %v3382_v56 }
 0x4a6   : > { %v3583_v5 = vpop.f32.mrf.mxu3 }
 0x4a7   : > { %4051 = vst [vmem:[%s6211_s10 + $0x78] sm:$0xff] %v4019_v41  ;;  %v3759_v24 = vadd.f32 %v3758_v0, %v3578_v47 }
 0x4a8   : > { %v3913_v62 = vpop.f32.mrf.mxu1 }
 0x4a9   : > { %v3906_v7 = vadd.f32 %v3905_v44, %v3759_v24 }
 0x4aa   : > { %v3386_v42 = vpop.f32.mrf.mxu2 }
 0x4ab   : > { %v3984_v61 = vadd.f32 %v3906_v7, %v6009_v18  ;;  %v3387_v32 = vadd.f32 %v3386_v42, %v3220_v13 }
 0x4ac   : > { %v3766_v4 = vpop.f32.mrf.mxu0 }
 0x4ad   : > { %v4020_v14 = vadd.f32 %v6202_v63, %v3984_v61  ;;  %v3584_v52 = vadd.f32 %v3583_v5, %v3387_v32  ;;  %v7006_v5 = vld [vmem:[#allocation28_spill] sm:$0xff] }
 0x4ae   : > { %v3589_v12 = vpop.f32.mrf.mxu3  ;;  %v3236_v24 = vadd.f32 %v7006_v5, %v6055_v37  ;;  %v7010_v37 = vld [vmem:[#allocation80_spill] sm:$0xff]  ;;  %v7017_v5 = vld [vmem:[#allocation34_spill] sm:$0xff] }
 0x4af   : > { %4052 = vst [vmem:[%s6211_s10 + $0x80] sm:$0xff] %v4020_v14  ;;  %v3763_v33 = vadd.f32 %v3762_v39, %v3584_v52  ;;  %v7008_v52 = vld [vmem:[#allocation30_spill] sm:$0xff] }
 0x4b0   : > { %v3917_v34 = vpop.f32.mrf.mxu1 }
 0x4b1   : > { %v3910_v40 = vadd.f32 %v3909_v21, %v3763_v33  ;;  %v7005_v21 = vld [vmem:[#allocation27_spill] sm:$0xff] }
 0x4b2   : > { %v3391_v36 = vpop.f32.mrf.mxu2  ;;  %v3232_v22 = vadd.f32 %v7005_v21, %v6043_v6  ;;  %v7007_v6 = vld [vmem:[#allocation29_spill] sm:$0xff] }
 0x4b3   : > { %v3985_v54 = vadd.f32 %v3910_v40, %v6021_v55  ;;  %v3392_v30 = vadd.f32 %v3391_v36, %v3224_v23 }
 0x4b4   : > { %v3770_v46 = vpop.f32.mrf.mxu0 }
 0x4b5   : > { %v4021_v18 = vadd.f32 %v6202_v63, %v3985_v54  ;;  %v3590_v2 = vadd.f32 %v3589_v12, %v3392_v30  ;;  %v7009_v12 = vld [vmem:[#allocation79_spill] sm:$0xff] }
 0x4b6   : > { %v3595_v15 = vpop.f32.mrf.mxu3  ;;  %v3240_v33 = vadd.f32 %v7009_v12, %v7008_v52  ;;  %v7020_v52 = vld [vmem:[#allocation36_spill] sm:$0xff] }
 0x4b7   : > { %4053 = vst [vmem:[%s6211_s10 + $0x88] sm:$0xff] %v4021_v18  ;;  %v3767_v44 = vadd.f32 %v3766_v4, %v3590_v2 }
 0x4b8   : > { %v3921_v51 = vpop.f32.mrf.mxu1 }
 0x4b9   : > { %v3914_v58 = vadd.f32 %v3913_v62, %v3767_v44  ;;  %v7012_v44 = vld [vmem:[#allocation81_spill] sm:$0xff] }
 0x4ba   : > { %v3396_v45 = vpop.f32.mrf.mxu2 }
 0x4bb   : > { %v3986_v48 = vadd.f32 %v3914_v58, %v6033_v31  ;;  %v3397_v16 = vadd.f32 %v3396_v45, %v3228_v8  ;;  %v7013_v58 = vld [vmem:[#allocation32_spill] sm:$0xff] }
 0x4bc   : > { %v3774_v0 = vpop.f32.mrf.mxu0 }
 0x4bd   : > { %v4022_v55 = vadd.f32 %v6202_v63, %v3986_v48  ;;  %v3596_v57 = vadd.f32 %v3595_v15, %v3397_v16  ;;  %v7011_v15 = vld [vmem:[#allocation37_spill] sm:$0xff] }
 0x4be   : > { %v3601_v43 = vpop.f32.mrf.mxu3 }
 0x4bf   : > { %4054 = vst [vmem:[%s6211_s10 + $0x90] sm:$0xff] %v4022_v55  ;;  %v3771_v27 = vadd.f32 %v3770_v46, %v3596_v57 }
 0x4c0   : > { %v3925_v9 = vpop.f32.mrf.mxu1 }
 0x4c1   : > { %v3918_v11 = vadd.f32 %v3917_v34, %v3771_v27  ;;  %v7014_v27 = vld [vmem:[#allocation39_spill] sm:$0xff] }
 0x4c2   : > { %v3401_v29 = vpop.f32.mrf.mxu2 }
 0x4c3   : > { %v3987_v26 = vadd.f32 %v3918_v11, %v6045_v19  ;;  %v3402_v60 = vadd.f32 %v3401_v29, %v3232_v22 }
 0x4c4   : > { %v3778_v49 = vpop.f32.mrf.mxu0 }
 0x4c5   : > { %v4023_v31 = vadd.f32 %v6202_v63, %v3987_v26  ;;  %v3602_v56 = vadd.f32 %v3601_v43, %v3402_v60 }
 0x4c6   : > { %v3607_v39 = vpop.f32.mrf.mxu3 }
 0x4c7   : > { %4055 = vst [vmem:[%s6211_s10 + $0x98] sm:$0xff] %v4023_v31  ;;  %v3775_v41 = vadd.f32 %v3774_v0, %v3602_v56 }
 0x4c8   : > { %v3929_v47 = vpop.f32.mrf.mxu1 }
 0x4c9   : > { %v3922_v62 = vadd.f32 %v3921_v51, %v3775_v41  ;;  %v3244_v51 = vadd.f32 %v7012_v44, %v7011_v15 }
 0x4ca   : > { %v3406_v3 = vpop.f32.mrf.mxu2 }
 0x4cb   : > { %v3988_v13 = vadd.f32 %v3922_v62, %v7007_v6  ;;  %v3407_v7 = vadd.f32 %v3406_v3, %v3236_v24  ;;  %v7018_v6 = vld [vmem:[#allocation40_spill] sm:$0xff] }
 0x4cc   : > { %v3782_v42 = vpop.f32.mrf.mxu0 }
 0x4cd   : > { %v4024_v19 = vadd.f32 %v6202_v63, %v3988_v13  ;;  %v3608_v61 = vadd.f32 %v3607_v39, %v3407_v7 }
 0x4ce   : > { %v3613_v32 = vpop.f32.mrf.mxu3 }
 0x4cf   : > { %4056 = vst [vmem:[%s6211_s10 + $0xa0] sm:$0xff] %v4024_v19  ;;  %v3779_v4 = vadd.f32 %v3778_v49, %v3608_v61 }
 0x4d0   : > { %v3933_v14 = vpop.f32.mrf.mxu1 }
 0x4d1   : > { %v3926_v34 = vadd.f32 %v3925_v9, %v3779_v4  ;;  %v7015_v9 = vld [vmem:[#allocation31_spill] sm:$0xff] }
 0x4d2   : > { %v3411_v17 = vpop.f32.mrf.mxu2  ;;  %v3248_v21 = vadd.f32 %v7015_v9, %v7014_v27 }
 0x4d3   : > { %v3989_v23 = vadd.f32 %v3926_v34, %v7010_v37  ;;  %v3412_v40 = vadd.f32 %v3411_v17, %v3240_v33 }
 0x4d4   : > { %v3786_v36 = vpop.f32.mrf.mxu0 }
 0x4d5   : > { %v4025_v54 = vadd.f32 %v6202_v63, %v3989_v23  ;;  %v3614_v30 = vadd.f32 %v3613_v32, %v3412_v40 }
 0x4d6   : > { %v3619_v46 = vpop.f32.mrf.mxu3 }
 0x4d7   : > { %4057 = vst [vmem:[%s6211_s10 + $0xa8] sm:$0xff] %v4025_v54  ;;  %v3783_v18 = vadd.f32 %v3782_v42, %v3614_v30 }
 0x4d8   : > { %v3937_v2 = vpop.f32.mrf.mxu1 }
 0x4d9   : > { %v3930_v28 = vadd.f32 %v3929_v47, %v3783_v18  ;;  %v7016_v47 = vld [vmem:[#allocation33_spill] sm:$0xff]  ;;  %v7021_v18 = vld [vmem:[#allocation3_spill] sm:$0xff] }
 0x4da   : > { %v3416_v8 = vpop.f32.mrf.mxu2  ;;  %v3252_v24 = vadd.f32 %v7017_v5, %v7016_v47 }
 0x4db   : > { %v3990_v45 = vadd.f32 %v3930_v28, %v7013_v58  ;;  %v3417_v48 = vadd.f32 %v3416_v8, %v3244_v51 }
 0x4dc   : > { %v3790_v16 = vpop.f32.mrf.mxu0 }
 0x4dd   : > { %v4026_v0 = vadd.f32 %v6202_v63, %v3990_v45  ;;  %v3620_v55 = vadd.f32 %v3619_v46, %v3417_v48 }
 0x4de   : > { %v3625_v57 = vpop.f32.mrf.mxu3 }
 0x4df   : > { %4058 = vst [vmem:[%s6211_s10 + $0xb0] sm:$0xff] %v4026_v0  ;;  %v3787_v43 = vadd.f32 %v3786_v36, %v3620_v55  ;;  %v7023_v55 = vld [vmem:[#allocation2_spill] sm:$0xff] }
 0x4e0   : > { %v3941_v29 = vpop.f32.mrf.mxu1 }
 0x4e1   : > { %v3934_v22 = vadd.f32 %v3933_v14, %v3787_v43  ;;  %v7019_v14 = vld [vmem:[#allocation35_spill] sm:$0xff] }
 0x4e2   : > { %v3421_v11 = vpop.f32.mrf.mxu2  ;;  %v3256_v12 = vadd.f32 %v7020_v52, %v7019_v14  ;;  %v7027_v14 = vld [vmem:[#allocation9_spill] sm:$0xff] }
 0x4e3   : > { %v3991_v26 = vadd.f32 %v3934_v22, %v6093_v53  ;;  %v3422_v60 = vadd.f32 %v3421_v11, %v3248_v21  ;;  %v3276_v52 = vadd.f32 %v7027_v14, %v6175_v50 }
 0x4e4   : > { %v3794_v49 = vpop.f32.mrf.mxu0 }
 0x4e5   : > { %v4027_v31 = vadd.f32 %v6202_v63, %v3991_v26  ;;  %v3626_v56 = vadd.f32 %v3625_v57, %v3422_v60  ;;  %v7024_v57 = vld [vmem:[#allocation41_spill] sm:$0xff] }
 0x4e6   : > { %v3631_v39 = vpop.f32.mrf.mxu3  ;;  %v3264_v43 = vadd.f32 %v7024_v57, %v7023_v55 }
 0x4e7   : > { %4059 = vst [vmem:[%s6211_s10 + $0xb8] sm:$0xff] %v4027_v31  ;;  %v3791_v41 = vadd.f32 %v3790_v16, %v3626_v56 }
 0x4e8   : > { %v3945_v19 = vpop.f32.mrf.mxu1 }
 0x4e9   : > { %v3938_v62 = vadd.f32 %v3937_v2, %v3791_v41  ;;  %v7022_v2 = vld [vmem:[#allocation38_spill] sm:$0xff] }
 0x4ea   : > { %v3426_v3 = vpop.f32.mrf.mxu2  ;;  %v3260_v15 = vadd.f32 %v7022_v2, %v7021_v18 }
 0x4eb   : > { %v3992_v13 = vadd.f32 %v3938_v62, %v7018_v6  ;;  %v3427_v7 = vadd.f32 %v3426_v3, %v3252_v24  ;;  %v7026_v6 = vld [vmem:[#allocation5_spill] sm:$0xff] }
 0x4ec   : > { %v3798_v42 = vpop.f32.mrf.mxu0 }
 0x4ed   : > { %v4028_v53 = vadd.f32 %v6202_v63, %v3992_v13  ;;  %v3632_v61 = vadd.f32 %v3631_v39, %v3427_v7  ;;  %v3272_v13 = vadd.f32 %v7026_v6, %v6163_v38 }
 0x4ee   : > { %v3637_v32 = vpop.f32.mrf.mxu3 }
 0x4ef   : > { %4060 = vst [vmem:[%s6211_s10 + $0xc0] sm:$0xff] %v4028_v53  ;;  %v3795_v4 = vadd.f32 %v3794_v49, %v3632_v61  ;;  %v7025_v49 = vld [vmem:[#allocation7_spill] sm:$0xff] }
 0x4f0   : > { %v3949_v30 = vpop.f32.mrf.mxu1  ;;  %v3268_v31 = vadd.f32 %v7025_v49, %v6151_v25 }
 0x4f1   : > { %v3942_v33 = vadd.f32 %v3941_v29, %v3795_v4 }
 0x4f2   : > { %v3431_v34 = vpop.f32.mrf.mxu2 }
 0x4f3   : > { %v3993_v17 = vadd.f32 %v3942_v33, %v6117_v59  ;;  %v3432_v37 = vadd.f32 %v3431_v34, %v3256_v12  ;;  %v7028_v34 = vld [vmem:[#allocation4_spill] sm:$0xff] }
 0x4f4   : > { %v3802_v23 = vpop.f32.mrf.mxu0 }
 0x4f5   : > { %v4029_v40 = vadd.f32 %v6202_v63, %v3993_v17  ;;  %v3638_v36 = vadd.f32 %v3637_v32, %v3432_v37 }
 0x4f6   : > { %v3643_v54 = vpop.f32.mrf.mxu3 }
 0x4f7   : > { %4061 = vst [vmem:[%s6211_s10 + $0xc8] sm:$0xff] %v4029_v40  ;;  %v3799_v46 = vadd.f32 %v3798_v42, %v3638_v36 }
 0x4f8   : > { %v3953_v0 = vpop.f32.mrf.mxu1 }
 0x4f9   : > { %v3946_v44 = vadd.f32 %v3945_v19, %v3799_v46  ;;  %v7029_v46 = vld [vmem:[#allocation11_spill] sm:$0xff] }
 0x4fa   : > { %v3436_v51 = vpop.f32.mrf.mxu2 }
 0x4fb   : > { %v3994_v28 = vadd.f32 %v3946_v44, %v6129_v20  ;;  %v3437_v8 = vadd.f32 %v3436_v51, %v3260_v15 }
 0x4fc   : > { %v3806_v48 = vpop.f32.mrf.mxu0 }
 0x4fd   : > { %v4030_v59 = vadd.f32 %v6202_v63, %v3994_v28  ;;  %v3644_v58 = vadd.f32 %v3643_v54, %v3437_v8 }
 0x4fe   : > { %v3649_v45 = vpop.f32.mrf.mxu3 }
 0x4ff   : > { %4062 = vst [vmem:[%s6211_s10 + $0xd0] sm:$0xff] %v4030_v59  ;;  %v3803_v16 = vadd.f32 %v3802_v23, %v3644_v58 }
 0x500   : > { %v3957_v41 = vpop.f32.mrf.mxu1 }
 0x501   : > { %v3950_v27 = vadd.f32 %v3949_v30, %v3803_v16 }
 0x502   : > { %v3441_v9 = vpop.f32.mrf.mxu2 }
 0x503   : > { %v3995_v21 = vadd.f32 %v3950_v27, %v6141_v10  ;;  %v3442_v22 = vadd.f32 %v3441_v9, %v3264_v43 }
 0x504   : > { %v3810_v60 = vpop.f32.mrf.mxu0 }
 0x505   : > { %v4031_v20 = vadd.f32 %v6202_v63, %v3995_v21  ;;  %v3650_v11 = vadd.f32 %v3649_v45, %v3442_v22 }
 0x506   : > { %v3655_v29 = vpop.f32.mrf.mxu3 }
 0x507   : > { %4063 = vst [vmem:[%s6211_s10 + $0xd8] sm:$0xff] %v4031_v20  ;;  %v3807_v26 = vadd.f32 %v3806_v48, %v3650_v11 }
 0x508   : > { %v3961_v61 = vpop.f32.mrf.mxu1 }
 0x509   : > { %v3954_v56 = vadd.f32 %v3953_v0, %v3807_v26 }
 0x50a   : > { %v3446_v39 = vpop.f32.mrf.mxu2 }
 0x50b   : > { %v3996_v47 = vadd.f32 %v3954_v56, %v6153_v35  ;;  %v3447_v5 = vadd.f32 %v3446_v39, %v3268_v31 }
 0x50c   : > { %v3814_v19 = vpop.f32.mrf.mxu0 }
 0x50d   : > { %v4032_v10 = vadd.f32 %v6202_v63, %v3996_v47  ;;  %v3656_v24 = vadd.f32 %v3655_v29, %v3447_v5 }
 0x50e   : > { %v3661_v3 = vpop.f32.mrf.mxu3 }
 0x50f   : > { %4064 = vst [vmem:[%s6211_s10 + $0xe0] sm:$0xff] %v4032_v10  ;;  %v3811_v62 = vadd.f32 %v3810_v60, %v3656_v24 }
 0x510   : > { %v3965_v36 = vpop.f32.mrf.mxu1 }
 0x511   : > { %v3958_v7 = vadd.f32 %v3957_v41, %v3811_v62 }
 0x512   : > { %v3451_v42 = vpop.f32.mrf.mxu2 }
 0x513   : > { %v3997_v25 = vadd.f32 %v3958_v7, %v6165_v1  ;;  %v3452_v53 = vadd.f32 %v3451_v42, %v3272_v13 }
 0x514   : > { %v3818_v23 = vpop.f32.mrf.mxu0 }
 0x515   : > { %v4033_v35 = vadd.f32 %v6202_v63, %v3997_v25  ;;  %v3662_v32 = vadd.f32 %v3661_v3, %v3452_v53 }
 0x516   : > { %v3667_v38 = vpop.f32.mrf.mxu3 }
 0x517   : > { %4065 = vst [vmem:[%s6211_s10 + $0xe8] sm:$0xff] %v4033_v35  ;;  %v3815_v4 = vadd.f32 %v3814_v19, %v3662_v32 }
 0x519   : > { %v3962_v12 = vadd.f32 %v3961_v61, %v3815_v4 }
 0x51a   : > { %v3456_v33 = vpop.f32.mrf.mxu2 }
 0x51b   : > { %v3998_v17 = vadd.f32 %v3962_v12, %v7028_v34  ;;  %v3457_v37 = vadd.f32 %v3456_v33, %v3276_v52 }
 0x51d   : > { %v4034_v1 = vadd.f32 %v6202_v63, %v3998_v17  ;;  %v3668_v40 = vadd.f32 %v3667_v38, %v3457_v37 }
 0x51f   : > { %4066 = vst [vmem:[%s6211_s10 + $0xf0] sm:$0xff] %v4034_v1  ;;  %v3819_v54 = vadd.f32 %v3818_v23, %v3668_v40 }
 0x521   : > { %v3966_v30 = vadd.f32 %v3965_v36, %v3819_v54 }
 0x523   : > { %v3999_v18 = vadd.f32 %v3966_v30, %v7029_v46 }
 0x525   : > { %v4035_v2 = vadd.f32 %v6202_v63, %v3999_v18 }
 0x527   : > { %4067 = vst [vmem:[%s6211_s10 + $0xf8] sm:$0xff] %v4035_v2 }
 0x528 PF: > { %s13_s14 = sadd.s32 1, %s4286_s14   ;;  %s7030_s12 = smov %s4282_s13 }
 0x529   : > { %p10_p5 = scmp.ge.s32.totalorder %s13_s14, 4   ;;  %s7031_s13 = smov %s7033_s15 }
 0x52b   :  { %12 = sbr.rel (!%p10_p5) target bundleno = 2 (0x2), region = 66 }

</bundles_post_ra>
